<compile_context>
chip_gen: v7x
topology: tpu7x:2x2x1
jax: 0.10.0
libtpu: 0.0.40
codegen_flags: <defaults>
</compile_context>

<pallas_src>
import functools

import numpy as np

import jax
import jax.numpy as jnp
from jax import lax
from jax.experimental import pallas as pl
from jax.experimental.pallas import tpu as pltpu


# ----------------------------------------------------------------------------
# Host-precomputed constants (pure functions of H, W)
# ----------------------------------------------------------------------------
def _conv_masks(h, w):
    """(9, h*w) 0/1 validity mask for 3x3 taps, (oy, ox) row-major."""
    n = h * w
    r, c = np.divmod(np.arange(n), w)
    m = np.zeros((9, n), np.float32)
    t = 0
    for oy in (-1, 0, 1):
        for ox in (-1, 0, 1):
            m[t] = ((r + oy >= 0) & (r + oy < h) & (c + ox >= 0) & (c + ox < w))
            t += 1
    return m


def _pool_select(h, w):
    """(4, h*w, (h//2)*(w//2)) 0/1 decimation matrices, one per window tap."""
    h2, w2 = h // 2, w // 2
    n, n2 = h * w, h2 * w2
    dst = np.arange(n2)
    base = 2 * (dst // w2) * w + 2 * (dst % w2)
    src = np.arange(n)[:, None]
    mats = np.zeros((4, n, n2), np.float32)
    k = 0
    for di in (0, 1):
        for dj in (0, 1):
            mats[k] = (src == (base + di * w + dj)[None, :])
            k += 1
    return mats


def _up_scatter(h, w):
    """(4, h*w, 4*h*w) 0/1 scatter matrices for ConvTranspose2d(2, 2)."""
    n1 = h * w
    n2 = 4 * n1
    w_out = 2 * w
    src = np.arange(n1)
    r, c = np.divmod(src, w)
    dst = np.arange(n2)[None, :]
    mats = np.zeros((4, n1, n2), np.float32)
    k = 0
    for ki in (0, 1):
        for kj in (0, 1):
            tgt = ((2 * r + ki) * w_out + 2 * c + kj)[:, None]
            mats[k] = (dst == tgt)
            k += 1
    return mats


# ----------------------------------------------------------------------------
# In-kernel building blocks (channels-major, spatially flattened activations)
# ----------------------------------------------------------------------------
def _conv3x3(pieces, w_ref, b_ref, mask_ref, pad_ref, w, *, relu):
    """3x3 'same' conv as ONE fused MXU matmul.

    pieces : list of (Ci, n) activations; they are staged contiguously so the
             channel concat needed by skip connections is folded into the
             staging write (no jnp.concatenate of the inputs).
    w_ref  : (Cout, 9*Cin) packed weight (tap-major columns).
    b_ref  : (Cout, 1) bias.
    mask_ref: (9, n) precomputed edge-validity masks.
    pad_ref: VMEM staging buffer (>= Cin, n + 2*(w+1)), zero-haloed so each
             tap is a shifted view of the same buffer.
    """
    n = pieces[0].shape[1]
    cin = sum(piece.shape[0] for piece in pieces)
    p = w + 1                                        # halo for linearised taps
    pad_ref[0:cin, 0:p] = jnp.zeros((cin, p), jnp.float32)
    pad_ref[0:cin, p + n:p + n + p] = jnp.zeros((cin, p), jnp.float32)
    off = 0
    for piece in pieces:
        c = piece.shape[0]
        pad_ref[off:off + c, p:p + n] = piece
        off += c

    taps = []
    t = 0
    for oy in (-1, 0, 1):
        for ox in (-1, 0, 1):
            s = oy * w + ox
            win = pad_ref[0:cin, p + s:p + s + n]    # shifted view of input
            if oy == 0 and ox == 0:
                taps.append(win)                     # center tap: always valid
            else:
                taps.append(win * mask_ref[t:t + 1, :])
            t += 1
    col = jnp.concatenate(taps, axis=0)              # (9*cin, n) im2col
    out = jnp.dot(w_ref[...], col, preferred_element_type=jnp.float32)
    out = out + b_ref[...]
    return jnp.maximum(out, 0.0) if relu else out


def _maxpool2x2(a, sel_ref):
    """2x2/stride-2 max pool via precomputed 0/1 decimation matrices."""
    out = None
    for k in range(4):
        g = jnp.dot(a, sel_ref[k], preferred_element_type=jnp.float32)
        out = g if out is None else jnp.maximum(out, g)
    return out


def _upsample2x2(a, w_ref, b_ref, scat_ref):
    """ConvTranspose2d(kernel=2, stride=2).

    w_ref   : (4*Cout, Cin) stacked tap weights (tap-major rows).
    scat_ref: (4, n1, 4*n1) precomputed 0/1 scatter matrices.
    """
    cout = b_ref.shape[0]
    y = jnp.dot(w_ref[...], a, preferred_element_type=jnp.float32)  # (4*cout, n1)
    out = None
    for k in range(4):
        o = jnp.dot(y[k * cout:(k + 1) * cout, :], scat_ref[k],
                    preferred_element_type=jnp.float32)
        out = o if out is None else out + o
    return out + b_ref[...]


# ----------------------------------------------------------------------------
# Fused UNetConfidNetEncoder kernel (batch_block elements per grid step)
# ----------------------------------------------------------------------------
def _fused_unet_kernel(
        # inputs
        x_ref,
        e0w_ref, e0b_ref, e1w_ref, e1b_ref, btw_ref, btb_ref,
        u0w_ref, u0b_ref, d0w_ref, d0b_ref,
        u1w_ref, u1b_ref, d1w_ref, d1b_ref,
        lastw_ref, lastb_ref,
        maskA_ref, maskB_ref, maskC_ref,
        poolA_ref, poolB_ref,
        scatC_ref, scatB_ref,
        # outputs
        confid_ref, seg_ref,
        # scratch
        pad_a, pad_b, pad_c,
        *, W, c1, apply_sigmoid):
    W2, W4 = W // 2, W // 4
    bb = x_ref.shape[0]
    for bi in range(bb):                          # static unroll over batch block
        x = x_ref[bi]                                                 # (Cin, N)

        # ---- encoder ----
        s0 = _conv3x3([x], e0w_ref, e0b_ref, maskA_ref, pad_a, W, relu=True)
        p0 = _maxpool2x2(s0, poolA_ref)
        s1 = _conv3x3([p0], e1w_ref, e1b_ref, maskB_ref, pad_b, W2, relu=True)
        p1 = _maxpool2x2(s1, poolB_ref)
        enc = _conv3x3([p1], btw_ref, btb_ref, maskC_ref, pad_c, W4, relu=True)

        # ---- decoder (ConfidNet variant) ----
        u0 = _upsample2x2(enc, u0w_ref, u0b_ref, scatC_ref)
        d0 = _conv3x3([u0, s1], d0w_ref, d0b_ref, maskB_ref, pad_b, W2, relu=True)
        u1 = _upsample2x2(d0, u1w_ref, u1b_ref, scatB_ref)

        # confid input = concat([u1, s0]) -- written straight into the output
        confid_ref[bi, 0:c1, :] = u1
        confid_ref[bi, c1:2 * c1, :] = s0

        d1 = _conv3x3([u1, s0], d1w_ref, d1b_ref, maskA_ref, pad_a, W, relu=True)
        seg = jnp.dot(lastw_ref[...], d1,
                      preferred_element_type=jnp.float32) + lastb_ref[...]
        if apply_sigmoid:
            seg = jax.nn.sigmoid(seg)
        seg_ref[bi] = seg


# ----------------------------------------------------------------------------
# Parameter init (torch-style layouts) + packing into kernel-friendly layouts
# ----------------------------------------------------------------------------
def init_params(key, c_in=4, base=8, num_classes=3):
    ks = jax.random.split(key, 16)

    def conv_w(k, cout, cin, ksz):          # torch Conv2d weight (O, I, K, K)
        return 0.1 * jax.random.normal(k, (cout, cin, ksz, ksz), jnp.float32)

    def convT_w(k, cin, cout):              # torch ConvTranspose2d (I, O, 2, 2)
        return 0.1 * jax.random.normal(k, (cin, cout, 2, 2), jnp.float32)

    def bias(k, c):
        return 0.05 * jax.random.normal(k, (c,), jnp.float32)

    c1, c2, c3 = base, base * 2, base * 4
    return dict(
        enc0_w=conv_w(ks[0], c1, c_in, 3), enc0_b=bias(ks[1], c1),
        enc1_w=conv_w(ks[2], c2, c1, 3), enc1_b=bias(ks[3], c2),
        bott_w=conv_w(ks[4], c3, c2, 3), bott_b=bias(ks[5], c3),
        up0_w=convT_w(ks[6], c3, c2), up0_b=bias(ks[7], c2),
        dec0_w=conv_w(ks[8], c2, c2 + c2, 3), dec0_b=bias(ks[9], c2),
        up1_w=convT_w(ks[10], c2, c1), up1_b=bias(ks[11], c1),
        dec1_w=conv_w(ks[12], c1, c1 + c1, 3), dec1_b=bias(ks[13], c1),
        last_w=conv_w(ks[14], num_classes, c1, 1), last_b=bias(ks[15], num_classes),
    )


def _pack_params(p, cin_pad):
    """torch layouts -> kernel layouts (fused-tap matmuls)."""
    def conv_flat(w, in_pad=None):          # (O, I, 3, 3) -> (O, 9*I), tap-major
        o, i = w.shape[0], w.shape[1]
        if in_pad is not None and in_pad != i:
            w = jnp.pad(w, ((0, 0), (0, in_pad - i), (0, 0), (0, 0)))
            i = in_pad
        return jnp.transpose(w, (0, 2, 3, 1)).reshape(o, 9 * i)

    def convT_stack(w):                     # (I, O, 2, 2) -> (4*O, I), tap-major
        i, o = w.shape[0], w.shape[1]
        return jnp.transpose(w, (2, 3, 1, 0)).reshape(4 * o, i)

    def b2d(b):
        return b.reshape(-1, 1)

    return dict(
        enc0_w=conv_flat(p["enc0_w"], cin_pad), enc0_b=b2d(p["enc0_b"]),
        enc1_w=conv_flat(p["enc1_w"]), enc1_b=b2d(p["enc1_b"]),
        bott_w=conv_flat(p["bott_w"]), bott_b=b2d(p["bott_b"]),
        up0_w=convT_stack(p["up0_w"]), up0_b=b2d(p["up0_b"]),
        dec0_w=conv_flat(p["dec0_w"]), dec0_b=b2d(p["dec0_b"]),
        up1_w=convT_stack(p["up1_w"]), up1_b=b2d(p["up1_b"]),
        dec1_w=conv_flat(p["dec1_w"]), dec1_b=b2d(p["dec1_b"]),
        last_w=p["last_w"][:, :, 0, 0],         # (ncls, c1)
        last_b=b2d(p["last_b"]),
    )


def _const_spec(arr):
    nd = arr.ndim
    return pl.BlockSpec(arr.shape, lambda b, _nd=nd: (0,) * _nd)


# ----------------------------------------------------------------------------
# Public forward (NCHW in, NCHW out) -- matches the PyTorch module semantics
# ----------------------------------------------------------------------------
@functools.partial(jax.jit, static_argnames=("logits", "batch_block"))
def unet_confidnet_encoder_forward(params, x_nchw, logits=False, batch_block=1):
    B, cin, H, W = x_nchw.shape
    assert H % 4 == 0 and W % 4 == 0, "two 2x2 pool levels need H, W % 4 == 0"
    assert B % batch_block == 0
    N = H * W

    c1 = params["enc0_w"].shape[0]
    c2 = params["enc1_w"].shape[0]
    ncls = params["last_w"].shape[0]
    cin_p = max(8, -(-cin // 8) * 8)        # pad input channels to sublane tile

    kp = _pack_params(params, cin_pad=cin_p)

    xf = x_nchw.reshape(B, cin, N).astype(jnp.float32)   # NCHW -> (B, C, H*W)
    if cin_p != cin:
        xf = jnp.pad(xf, ((0, 0), (0, cin_p - cin), (0, 0)))

    # Static tensors: computed on host (numpy), baked as compile-time consts.
    maskA = _conv_masks(H, W)
    maskB = _conv_masks(H // 2, W // 2)
    maskC = _conv_masks(H // 4, W // 4)
    poolA = _pool_select(H, W)
    poolB = _pool_select(H // 2, W // 2)
    scatC = _up_scatter(H // 4, W // 4)
    scatB = _up_scatter(H // 2, W // 2)

    param_list = [kp[k] for k in (
        "enc0_w", "enc0_b", "enc1_w", "enc1_b", "bott_w", "bott_b",
        "up0_w", "up0_b", "dec0_w", "dec0_b", "up1_w", "up1_b",
        "dec1_w", "dec1_b", "last_w", "last_b")]
    const_list = param_list + [maskA, maskB, maskC, poolA, poolB, scatC, scatB]

    kernel = functools.partial(_fused_unet_kernel, W=W, c1=c1,
                               apply_sigmoid=not logits)
    nb = B // batch_block

    confid, seg = pl.pallas_call(
        kernel,
        out_shape=(jax.ShapeDtypeStruct((B, 2 * c1, N), jnp.float32),
                   jax.ShapeDtypeStruct((B, ncls, N), jnp.float32)),
        grid=(nb,),
        in_specs=[pl.BlockSpec((batch_block, cin_p, N), lambda b: (b, 0, 0))] +
                 [_const_spec(a) for a in const_list],
        out_specs=(pl.BlockSpec((batch_block, 2 * c1, N), lambda b: (b, 0, 0)),
                   pl.BlockSpec((batch_block, ncls, N), lambda b: (b, 0, 0))),
        scratch_shapes=[
            pltpu.VMEM((max(cin_p, 2 * c1), N + 2 * (W + 1)), jnp.float32),
            pltpu.VMEM((max(c1, 2 * c2), N // 4 + 2 * (W // 2 + 1)), jnp.float32),
            pltpu.VMEM((c2, N // 16 + 2 * (W // 4 + 1)), jnp.float32),
        ],
        compiler_params=pltpu.CompilerParams(
            dimension_semantics=("parallel",)),
    )(xf, *const_list)

    # (B, C, H*W) is already NCHW-flattened -> plain reshape, no transpose.
    return confid.reshape(B, 2 * c1, H, W), seg.reshape(B, ncls, H, W)


# ----------------------------------------------------------------------------
# Pure-JAX (XLA) reference for validation
# ----------------------------------------------------------------------------
def _conv_ref(x, w_oikk, b, act):
    w = jnp.transpose(w_oikk, (2, 3, 1, 0))                  # OIHW -> HWIO
    y = lax.conv_general_dilated(
        x, w, (1, 1), "SAME", dimension_numbers=("NHWC", "HWIO", "NHWC"),
        precision=lax.Precision.HIGHEST) + b
    if act == "relu":
        y = jnp.maximum(y, 0.0)
    elif act == "sigmoid":
        y = jax.nn.sigmoid(y)
    return y


def _pool_ref(x):
    return lax.reduce_window(x, -jnp.inf, lax.max, (1, 2, 2, 1), (1, 2, 2, 1),
                             "VALID")


def _up_ref(x, w_iokk, b):
    B, H, W, _ = x.shape
    O = w_iokk.shape[1]
    y = jnp.einsum("bhwc,cokl->bhwklo", x, w_iokk,
                   precision=lax.Precision.HIGHEST) + b
    return (y.transpose(0, 1, 3, 2, 4, 5).reshape(B, 2 * H, 2 * W, O))


def _forward_ref(p, x_nchw, logits):
    x = jnp.transpose(x_nchw, (0, 2, 3, 1))                  # NCHW -> NHWC
    s0 = _conv_ref(x, p["enc0_w"], p["enc0_b"], "relu")
    s1 = _conv_ref(_pool_ref(s0), p["enc1_w"], p["enc1_b"], "relu")
    enc = _conv_ref(_pool_ref(s1), p["bott_w"], p["bott_b"], "relu")
    u0 = _up_ref(enc, p["up0_w"], p["up0_b"])
    xd = _conv_ref(jnp.concatenate([u0, s1], -1), p["dec0_w"], p["dec0_b"], "relu")
    u1 = _up_ref(xd, p["up1_w"], p["up1_b"])
    xd = _conv_ref(jnp.concatenate([u1, s0], -1), p["dec1_w"], p["dec1_b"], "relu")
    seg = _conv_ref(xd, p["last_w"], p["last_b"], "none" if logits else "sigmoid")
    confid = jnp.concatenate([u1, s0], -1)
    return (jnp.transpose(confid, (0, 3, 1, 2)), jnp.transpose(seg, (0, 3, 1, 2)))


if __name__ == "__main__":
    key = jax.random.PRNGKey(0)
    pkey, xkey = jax.random.split(key)
    params = init_params(pkey)

    x = jax.random.normal(xkey, (2, 4, 16, 16), jnp.float32)   # NCHW like PyTorch
    confid_in, seg = unet_confidnet_encoder_forward(params, x, logits=False)
    jax.block_until_ready((confid_in, seg))

    assert confid_in.shape == (2, 16, 16, 16), confid_in.shape
    assert seg.shape == (2, 3, 16, 16), seg.shape

    ref_confid, ref_seg = _forward_ref(params, x, logits=False)
    assert jnp.allclose(confid_in, ref_confid, atol=1e-3, rtol=1e-3)
    assert jnp.allclose(seg, ref_seg, atol=1e-3, rtol=1e-3)

    # Batch-blocked variant (single grid step; preferred on 1-TC v5e/v6e).
    confid_bb, seg_bb = unet_confidnet_encoder_forward(
        params, x, logits=False, batch_block=2)
    jax.block_until_ready((confid_bb, seg_bb))
    assert jnp.allclose(confid_bb, ref_confid, atol=1e-3, rtol=1e-3)
    assert jnp.allclose(seg_bb, ref_seg, atol=1e-3, rtol=1e-3)

    print("KERNEL_OK")
</pallas_src>

<mosaic_0001>
module attributes {stable_mosaic.version = 11 : i64} {
  func.func @_fused_unet_kernel(%arg0: i32, %arg1: memref<1x8x256xf32, #tpu.memory_space<vmem>>, %arg2: memref<8x72xf32, #tpu.memory_space<vmem>>, %arg3: memref<8x1xf32, #tpu.memory_space<vmem>>, %arg4: memref<16x72xf32, #tpu.memory_space<vmem>>, %arg5: memref<16x1xf32, #tpu.memory_space<vmem>>, %arg6: memref<32x144xf32, #tpu.memory_space<vmem>>, %arg7: memref<32x1xf32, #tpu.memory_space<vmem>>, %arg8: memref<64x32xf32, #tpu.memory_space<vmem>>, %arg9: memref<16x1xf32, #tpu.memory_space<vmem>>, %arg10: memref<16x288xf32, #tpu.memory_space<vmem>>, %arg11: memref<16x1xf32, #tpu.memory_space<vmem>>, %arg12: memref<32x16xf32, #tpu.memory_space<vmem>>, %arg13: memref<8x1xf32, #tpu.memory_space<vmem>>, %arg14: memref<8x144xf32, #tpu.memory_space<vmem>>, %arg15: memref<8x1xf32, #tpu.memory_space<vmem>>, %arg16: memref<3x8xf32, #tpu.memory_space<vmem>>, %arg17: memref<3x1xf32, #tpu.memory_space<vmem>>, %arg18: memref<9x256xf32, #tpu.memory_space<vmem>>, %arg19: memref<9x64xf32, #tpu.memory_space<vmem>>, %arg20: memref<9x16xf32, #tpu.memory_space<vmem>>, %arg21: memref<4x256x64xf32, #tpu.memory_space<vmem>>, %arg22: memref<4x64x16xf32, #tpu.memory_space<vmem>>, %arg23: memref<4x16x64xf32, #tpu.memory_space<vmem>>, %arg24: memref<4x64x256xf32, #tpu.memory_space<vmem>>, %arg25: memref<1x16x256xf32, #tpu.memory_space<vmem>>, %arg26: memref<1x3x256xf32, #tpu.memory_space<vmem>>, %arg27: memref<16x290xf32, #tpu.memory_space<vmem>>, %arg28: memref<32x82xf32, #tpu.memory_space<vmem>>, %arg29: memref<16x26xf32, #tpu.memory_space<vmem>>) attributes {dimension_semantics = [#tpu.dimension_semantics<parallel>], iteration_bounds = array<i64: 2>, scalar_prefetch = 0 : i64, scratch_operands = 3 : i64, tpu.core_type = #tpu.core_type<tc>, window_params = [{transform_indices = @transform_0, window_bounds = array<i64: 1, 8, 256>}, {pipeline_mode = #tpu.pipeline_mode<synchronous>, transform_indices = @transform_1, window_bounds = array<i64: 8, 72>}, {pipeline_mode = #tpu.pipeline_mode<synchronous>, transform_indices = @transform_2, window_bounds = array<i64: 8, 1>}, {pipeline_mode = #tpu.pipeline_mode<synchronous>, transform_indices = @transform_3, window_bounds = array<i64: 16, 72>}, {pipeline_mode = #tpu.pipeline_mode<synchronous>, transform_indices = @transform_4, window_bounds = array<i64: 16, 1>}, {pipeline_mode = #tpu.pipeline_mode<synchronous>, transform_indices = @transform_5, window_bounds = array<i64: 32, 144>}, {pipeline_mode = #tpu.pipeline_mode<synchronous>, transform_indices = @transform_6, window_bounds = array<i64: 32, 1>}, {pipeline_mode = #tpu.pipeline_mode<synchronous>, transform_indices = @transform_7, window_bounds = array<i64: 64, 32>}, {pipeline_mode = #tpu.pipeline_mode<synchronous>, transform_indices = @transform_8, window_bounds = array<i64: 16, 1>}, {pipeline_mode = #tpu.pipeline_mode<synchronous>, transform_indices = @transform_9, window_bounds = array<i64: 16, 288>}, {pipeline_mode = #tpu.pipeline_mode<synchronous>, transform_indices = @transform_10, window_bounds = array<i64: 16, 1>}, {pipeline_mode = #tpu.pipeline_mode<synchronous>, transform_indices = @transform_11, window_bounds = array<i64: 32, 16>}, {pipeline_mode = #tpu.pipeline_mode<synchronous>, transform_indices = @transform_12, window_bounds = array<i64: 8, 1>}, {pipeline_mode = #tpu.pipeline_mode<synchronous>, transform_indices = @transform_13, window_bounds = array<i64: 8, 144>}, {pipeline_mode = #tpu.pipeline_mode<synchronous>, transform_indices = @transform_14, window_bounds = array<i64: 8, 1>}, {pipeline_mode = #tpu.pipeline_mode<synchronous>, transform_indices = @transform_15, window_bounds = array<i64: 3, 8>}, {pipeline_mode = #tpu.pipeline_mode<synchronous>, transform_indices = @transform_16, window_bounds = array<i64: 3, 1>}, {pipeline_mode = #tpu.pipeline_mode<synchronous>, transform_indices = @transform_17, window_bounds = array<i64: 9, 256>}, {pipeline_mode = #tpu.pipeline_mode<synchronous>, transform_indices = @transform_18, window_bounds = array<i64: 9, 64>}, {pipeline_mode = #tpu.pipeline_mode<synchronous>, transform_indices = @transform_19, window_bounds = array<i64: 9, 16>}, {pipeline_mode = #tpu.pipeline_mode<synchronous>, transform_indices = @transform_20, window_bounds = array<i64: 4, 256, 64>}, {pipeline_mode = #tpu.pipeline_mode<synchronous>, transform_indices = @transform_21, window_bounds = array<i64: 4, 64, 16>}, {pipeline_mode = #tpu.pipeline_mode<synchronous>, transform_indices = @transform_22, window_bounds = array<i64: 4, 16, 64>}, {pipeline_mode = #tpu.pipeline_mode<synchronous>, transform_indices = @transform_23, window_bounds = array<i64: 4, 64, 256>}, {transform_indices = @transform_24, window_bounds = array<i64: 1, 16, 256>}, {transform_indices = @transform_25, window_bounds = array<i64: 1, 3, 256>}]} {
    %c0 = arith.constant 0 : index
    %c0_0 = arith.constant 0 : index
    %c0_1 = arith.constant 0 : index
    %0 = vector.load %arg1[%c0, %c0_0, %c0_1] : memref<1x8x256xf32, #tpu.memory_space<vmem>>, vector<1x8x256xf32>
    %1 = vector.shape_cast %0 : vector<1x8x256xf32> to vector<8x256xf32>
    %cst = arith.constant 0.000000e+00 : f32
    %2 = vector.broadcast %cst : f32 to vector<8x17xf32>
    %c0_2 = arith.constant 0 : index
    %c0_3 = arith.constant 0 : index
    %3 = vector.load %arg27[%c0_2, %c0_3] : memref<16x290xf32, #tpu.memory_space<vmem>>, vector<8x17xf32>
    tpu.vector_store %arg27[%c0_2, %c0_3], %2 {strides = array<i32>} : memref<16x290xf32, #tpu.memory_space<vmem>>, vector<8x17xf32>,
    %cst_4 = arith.constant 0.000000e+00 : f32
    %4 = vector.broadcast %cst_4 : f32 to vector<8x17xf32>
    %c0_5 = arith.constant 0 : index
    %c273 = arith.constant 273 : index
    %5 = vector.load %arg27[%c0_5, %c273] : memref<16x290xf32, #tpu.memory_space<vmem>>, vector<8x17xf32>
    tpu.vector_store %arg27[%c0_5, %c273], %4 {strides = array<i32>} : memref<16x290xf32, #tpu.memory_space<vmem>>, vector<8x17xf32>,
    %c0_6 = arith.constant 0 : index
    %c17 = arith.constant 17 : index
    %6 = vector.load %arg27[%c0_6, %c17] : memref<16x290xf32, #tpu.memory_space<vmem>>, vector<8x256xf32>
    tpu.vector_store %arg27[%c0_6, %c17], %1 {strides = array<i32>} : memref<16x290xf32, #tpu.memory_space<vmem>>, vector<8x256xf32>,
    %c0_7 = arith.constant 0 : index
    %c0_8 = arith.constant 0 : index
    %7 = vector.load %arg27[%c0_7, %c0_8] : memref<16x290xf32, #tpu.memory_space<vmem>>, vector<8x256xf32>
    %c0_9 = arith.constant 0 : index
    %c0_10 = arith.constant 0 : index
    %8 = vector.load %arg18[%c0_9, %c0_10] : memref<9x256xf32, #tpu.memory_space<vmem>>, vector<1x256xf32>
    %9 = vector.broadcast %8 : vector<1x256xf32> to vector<8x256xf32>
    %10 = arith.mulf %7, %9 : vector<8x256xf32>
    %c0_11 = arith.constant 0 : index
    %c1 = arith.constant 1 : index
    %11 = vector.load %arg27[%c0_11, %c1] : memref<16x290xf32, #tpu.memory_space<vmem>>, vector<8x256xf32>
    %c1_12 = arith.constant 1 : index
    %c0_13 = arith.constant 0 : index
    %12 = vector.load %arg18[%c1_12, %c0_13] : memref<9x256xf32, #tpu.memory_space<vmem>>, vector<1x256xf32>
    %13 = vector.broadcast %12 : vector<1x256xf32> to vector<8x256xf32>
    %14 = arith.mulf %11, %13 : vector<8x256xf32>
    %c0_14 = arith.constant 0 : index
    %c2 = arith.constant 2 : index
    %15 = vector.load %arg27[%c0_14, %c2] : memref<16x290xf32, #tpu.memory_space<vmem>>, vector<8x256xf32>
    %c2_15 = arith.constant 2 : index
    %c0_16 = arith.constant 0 : index
    %16 = vector.load %arg18[%c2_15, %c0_16] : memref<9x256xf32, #tpu.memory_space<vmem>>, vector<1x256xf32>
    %17 = vector.broadcast %16 : vector<1x256xf32> to vector<8x256xf32>
    %18 = arith.mulf %15, %17 : vector<8x256xf32>
    %c0_17 = arith.constant 0 : index
    %c16 = arith.constant 16 : index
    %19 = vector.load %arg27[%c0_17, %c16] : memref<16x290xf32, #tpu.memory_space<vmem>>, vector<8x256xf32>
    %c3 = arith.constant 3 : index
    %c0_18 = arith.constant 0 : index
    %20 = vector.load %arg18[%c3, %c0_18] : memref<9x256xf32, #tpu.memory_space<vmem>>, vector<1x256xf32>
    %21 = vector.broadcast %20 : vector<1x256xf32> to vector<8x256xf32>
    %22 = arith.mulf %19, %21 : vector<8x256xf32>
    %c0_19 = arith.constant 0 : index
    %c17_20 = arith.constant 17 : index
    %23 = vector.load %arg27[%c0_19, %c17_20] : memref<16x290xf32, #tpu.memory_space<vmem>>, vector<8x256xf32>
    %c0_21 = arith.constant 0 : index
    %c18 = arith.constant 18 : index
    %24 = vector.load %arg27[%c0_21, %c18] : memref<16x290xf32, #tpu.memory_space<vmem>>, vector<8x256xf32>
    %c5 = arith.constant 5 : index
    %c0_22 = arith.constant 0 : index
    %25 = vector.load %arg18[%c5, %c0_22] : memref<9x256xf32, #tpu.memory_space<vmem>>, vector<1x256xf32>
    %26 = vector.broadcast %25 : vector<1x256xf32> to vector<8x256xf32>
    %27 = arith.mulf %24, %26 : vector<8x256xf32>
    %c0_23 = arith.constant 0 : index
    %c32 = arith.constant 32 : index
    %28 = vector.load %arg27[%c0_23, %c32] : memref<16x290xf32, #tpu.memory_space<vmem>>, vector<8x256xf32>
    %c6 = arith.constant 6 : index
    %c0_24 = arith.constant 0 : index
    %29 = vector.load %arg18[%c6, %c0_24] : memref<9x256xf32, #tpu.memory_space<vmem>>, vector<1x256xf32>
    %30 = vector.broadcast %29 : vector<1x256xf32> to vector<8x256xf32>
    %31 = arith.mulf %28, %30 : vector<8x256xf32>
    %c0_25 = arith.constant 0 : index
    %c33 = arith.constant 33 : index
    %32 = vector.load %arg27[%c0_25, %c33] : memref<16x290xf32, #tpu.memory_space<vmem>>, vector<8x256xf32>
    %c7 = arith.constant 7 : index
    %c0_26 = arith.constant 0 : index
    %33 = vector.load %arg18[%c7, %c0_26] : memref<9x256xf32, #tpu.memory_space<vmem>>, vector<1x256xf32>
    %34 = vector.broadcast %33 : vector<1x256xf32> to vector<8x256xf32>
    %35 = arith.mulf %32, %34 : vector<8x256xf32>
    %c0_27 = arith.constant 0 : index
    %c34 = arith.constant 34 : index
    %36 = vector.load %arg27[%c0_27, %c34] : memref<16x290xf32, #tpu.memory_space<vmem>>, vector<8x256xf32>
    %c8 = arith.constant 8 : index
    %c0_28 = arith.constant 0 : index
    %37 = vector.load %arg18[%c8, %c0_28] : memref<9x256xf32, #tpu.memory_space<vmem>>, vector<1x256xf32>
    %38 = vector.broadcast %37 : vector<1x256xf32> to vector<8x256xf32>
    %39 = arith.mulf %36, %38 : vector<8x256xf32>
    %40 = tpu.concatenate %10, %14, %18, %22, %23, %27, %31, %35, %39 in 0 : vector<8x256xf32>, vector<8x256xf32>, vector<8x256xf32>, vector<8x256xf32>, vector<8x256xf32>, vector<8x256xf32>, vector<8x256xf32>, vector<8x256xf32>, vector<8x256xf32> -> vector<72x256xf32>
    %c0_29 = arith.constant 0 : index
    %c0_30 = arith.constant 0 : index
    %41 = vector.load %arg2[%c0_29, %c0_30] : memref<8x72xf32, #tpu.memory_space<vmem>>, vector<8x72xf32>
    %cst_31 = arith.constant dense<0.000000e+00> : vector<8x256xf32>
    %42 = tpu.matmul %41, %40, %cst_31 {dimension_numbers = #tpu.dot_dimension_numbers<[1], [0], [0], [1], [0, 0, 1, 1], [], []>} : vector<8x72xf32>, vector<72x256xf32>, vector<8x256xf32> -> vector<8x256xf32>
    %c0_32 = arith.constant 0 : index
    %c0_33 = arith.constant 0 : index
    %43 = vector.load %arg3[%c0_32, %c0_33] : memref<8x1xf32, #tpu.memory_space<vmem>>, vector<8x1xf32>
    %44 = vector.broadcast %43 : vector<8x1xf32> to vector<8x256xf32>
    %45 = arith.addf %42, %44 : vector<8x256xf32>
    %cst_34 = arith.constant 0.000000e+00 : f32
    %46 = vector.broadcast %cst_34 : f32 to vector<8x256xf32>
    %47 = arith.maximumf %45, %46 : vector<8x256xf32>
    %c0_35 = arith.constant 0 : index
    %c0_36 = arith.constant 0 : index
    %c0_37 = arith.constant 0 : index
    %48 = vector.load %arg21[%c0_35, %c0_36, %c0_37] : memref<4x256x64xf32, #tpu.memory_space<vmem>>, vector<1x256x64xf32>
    %49 = vector.shape_cast %48 : vector<1x256x64xf32> to vector<256x64xf32>
    %cst_38 = arith.constant dense<0.000000e+00> : vector<8x64xf32>
    %50 = tpu.matmul %47, %49, %cst_38 {dimension_numbers = #tpu.dot_dimension_numbers<[1], [0], [0], [1], [0, 0, 1, 1], [], []>} : vector<8x256xf32>, vector<256x64xf32>, vector<8x64xf32> -> vector<8x64xf32>
    %c1_39 = arith.constant 1 : index
    %c0_40 = arith.constant 0 : index
    %c0_41 = arith.constant 0 : index
    %51 = vector.load %arg21[%c1_39, %c0_40, %c0_41] : memref<4x256x64xf32, #tpu.memory_space<vmem>>, vector<1x256x64xf32>
    %52 = vector.shape_cast %51 : vector<1x256x64xf32> to vector<256x64xf32>
    %cst_42 = arith.constant dense<0.000000e+00> : vector<8x64xf32>
    %53 = tpu.matmul %47, %52, %cst_42 {dimension_numbers = #tpu.dot_dimension_numbers<[1], [0], [0], [1], [0, 0, 1, 1], [], []>} : vector<8x256xf32>, vector<256x64xf32>, vector<8x64xf32> -> vector<8x64xf32>
    %54 = arith.maximumf %50, %53 : vector<8x64xf32>
    %c2_43 = arith.constant 2 : index
    %c0_44 = arith.constant 0 : index
    %c0_45 = arith.constant 0 : index
    %55 = vector.load %arg21[%c2_43, %c0_44, %c0_45] : memref<4x256x64xf32, #tpu.memory_space<vmem>>, vector<1x256x64xf32>
    %56 = vector.shape_cast %55 : vector<1x256x64xf32> to vector<256x64xf32>
    %cst_46 = arith.constant dense<0.000000e+00> : vector<8x64xf32>
    %57 = tpu.matmul %47, %56, %cst_46 {dimension_numbers = #tpu.dot_dimension_numbers<[1], [0], [0], [1], [0, 0, 1, 1], [], []>} : vector<8x256xf32>, vector<256x64xf32>, vector<8x64xf32> -> vector<8x64xf32>
    %58 = arith.maximumf %54, %57 : vector<8x64xf32>
    %c3_47 = arith.constant 3 : index
    %c0_48 = arith.constant 0 : index
    %c0_49 = arith.constant 0 : index
    %59 = vector.load %arg21[%c3_47, %c0_48, %c0_49] : memref<4x256x64xf32, #tpu.memory_space<vmem>>, vector<1x256x64xf32>
    %60 = vector.shape_cast %59 : vector<1x256x64xf32> to vector<256x64xf32>
    %cst_50 = arith.constant dense<0.000000e+00> : vector<8x64xf32>
    %61 = tpu.matmul %47, %60, %cst_50 {dimension_numbers = #tpu.dot_dimension_numbers<[1], [0], [0], [1], [0, 0, 1, 1], [], []>} : vector<8x256xf32>, vector<256x64xf32>, vector<8x64xf32> -> vector<8x64xf32>
    %62 = arith.maximumf %58, %61 : vector<8x64xf32>
    %cst_51 = arith.constant 0.000000e+00 : f32
    %63 = vector.broadcast %cst_51 : f32 to vector<8x9xf32>
    %c0_52 = arith.constant 0 : index
    %c0_53 = arith.constant 0 : index
    %64 = vector.load %arg28[%c0_52, %c0_53] : memref<32x82xf32, #tpu.memory_space<vmem>>, vector<8x9xf32>
    tpu.vector_store %arg28[%c0_52, %c0_53], %63 {strides = array<i32>} : memref<32x82xf32, #tpu.memory_space<vmem>>, vector<8x9xf32>,
    %cst_54 = arith.constant 0.000000e+00 : f32
    %65 = vector.broadcast %cst_54 : f32 to vector<8x9xf32>
    %c0_55 = arith.constant 0 : index
    %c73 = arith.constant 73 : index
    %66 = vector.load %arg28[%c0_55, %c73] : memref<32x82xf32, #tpu.memory_space<vmem>>, vector<8x9xf32>
    tpu.vector_store %arg28[%c0_55, %c73], %65 {strides = array<i32>} : memref<32x82xf32, #tpu.memory_space<vmem>>, vector<8x9xf32>,
    %c0_56 = arith.constant 0 : index
    %c9 = arith.constant 9 : index
    %67 = vector.load %arg28[%c0_56, %c9] : memref<32x82xf32, #tpu.memory_space<vmem>>, vector<8x64xf32>
    tpu.vector_store %arg28[%c0_56, %c9], %62 {strides = array<i32>} : memref<32x82xf32, #tpu.memory_space<vmem>>, vector<8x64xf32>,
    %c0_57 = arith.constant 0 : index
    %c0_58 = arith.constant 0 : index
    %68 = vector.load %arg28[%c0_57, %c0_58] : memref<32x82xf32, #tpu.memory_space<vmem>>, vector<8x64xf32>
    %c0_59 = arith.constant 0 : index
    %c0_60 = arith.constant 0 : index
    %69 = vector.load %arg19[%c0_59, %c0_60] : memref<9x64xf32, #tpu.memory_space<vmem>>, vector<1x64xf32>
    %70 = vector.broadcast %69 : vector<1x64xf32> to vector<8x64xf32>
    %71 = arith.mulf %68, %70 : vector<8x64xf32>
    %c0_61 = arith.constant 0 : index
    %c1_62 = arith.constant 1 : index
    %72 = vector.load %arg28[%c0_61, %c1_62] : memref<32x82xf32, #tpu.memory_space<vmem>>, vector<8x64xf32>
    %c1_63 = arith.constant 1 : index
    %c0_64 = arith.constant 0 : index
    %73 = vector.load %arg19[%c1_63, %c0_64] : memref<9x64xf32, #tpu.memory_space<vmem>>, vector<1x64xf32>
    %74 = vector.broadcast %73 : vector<1x64xf32> to vector<8x64xf32>
    %75 = arith.mulf %72, %74 : vector<8x64xf32>
    %c0_65 = arith.constant 0 : index
    %c2_66 = arith.constant 2 : index
    %76 = vector.load %arg28[%c0_65, %c2_66] : memref<32x82xf32, #tpu.memory_space<vmem>>, vector<8x64xf32>
    %c2_67 = arith.constant 2 : index
    %c0_68 = arith.constant 0 : index
    %77 = vector.load %arg19[%c2_67, %c0_68] : memref<9x64xf32, #tpu.memory_space<vmem>>, vector<1x64xf32>
    %78 = vector.broadcast %77 : vector<1x64xf32> to vector<8x64xf32>
    %79 = arith.mulf %76, %78 : vector<8x64xf32>
    %c0_69 = arith.constant 0 : index
    %c8_70 = arith.constant 8 : index
    %80 = vector.load %arg28[%c0_69, %c8_70] : memref<32x82xf32, #tpu.memory_space<vmem>>, vector<8x64xf32>
    %c3_71 = arith.constant 3 : index
    %c0_72 = arith.constant 0 : index
    %81 = vector.load %arg19[%c3_71, %c0_72] : memref<9x64xf32, #tpu.memory_space<vmem>>, vector<1x64xf32>
    %82 = vector.broadcast %81 : vector<1x64xf32> to vector<8x64xf32>
    %83 = arith.mulf %80, %82 : vector<8x64xf32>
    %c0_73 = arith.constant 0 : index
    %c9_74 = arith.constant 9 : index
    %84 = vector.load %arg28[%c0_73, %c9_74] : memref<32x82xf32, #tpu.memory_space<vmem>>, vector<8x64xf32>
    %c0_75 = arith.constant 0 : index
    %c10 = arith.constant 10 : index
    %85 = vector.load %arg28[%c0_75, %c10] : memref<32x82xf32, #tpu.memory_space<vmem>>, vector<8x64xf32>
    %c5_76 = arith.constant 5 : index
    %c0_77 = arith.constant 0 : index
    %86 = vector.load %arg19[%c5_76, %c0_77] : memref<9x64xf32, #tpu.memory_space<vmem>>, vector<1x64xf32>
    %87 = vector.broadcast %86 : vector<1x64xf32> to vector<8x64xf32>
    %88 = arith.mulf %85, %87 : vector<8x64xf32>
    %c0_78 = arith.constant 0 : index
    %c16_79 = arith.constant 16 : index
    %89 = vector.load %arg28[%c0_78, %c16_79] : memref<32x82xf32, #tpu.memory_space<vmem>>, vector<8x64xf32>
    %c6_80 = arith.constant 6 : index
    %c0_81 = arith.constant 0 : index
    %90 = vector.load %arg19[%c6_80, %c0_81] : memref<9x64xf32, #tpu.memory_space<vmem>>, vector<1x64xf32>
    %91 = vector.broadcast %90 : vector<1x64xf32> to vector<8x64xf32>
    %92 = arith.mulf %89, %91 : vector<8x64xf32>
    %c0_82 = arith.constant 0 : index
    %c17_83 = arith.constant 17 : index
    %93 = vector.load %arg28[%c0_82, %c17_83] : memref<32x82xf32, #tpu.memory_space<vmem>>, vector<8x64xf32>
    %c7_84 = arith.constant 7 : index
    %c0_85 = arith.constant 0 : index
    %94 = vector.load %arg19[%c7_84, %c0_85] : memref<9x64xf32, #tpu.memory_space<vmem>>, vector<1x64xf32>
    %95 = vector.broadcast %94 : vector<1x64xf32> to vector<8x64xf32>
    %96 = arith.mulf %93, %95 : vector<8x64xf32>
    %c0_86 = arith.constant 0 : index
    %c18_87 = arith.constant 18 : index
    %97 = vector.load %arg28[%c0_86, %c18_87] : memref<32x82xf32, #tpu.memory_space<vmem>>, vector<8x64xf32>
    %c8_88 = arith.constant 8 : index
    %c0_89 = arith.constant 0 : index
    %98 = vector.load %arg19[%c8_88, %c0_89] : memref<9x64xf32, #tpu.memory_space<vmem>>, vector<1x64xf32>
    %99 = vector.broadcast %98 : vector<1x64xf32> to vector<8x64xf32>
    %100 = arith.mulf %97, %99 : vector<8x64xf32>
    %101 = tpu.concatenate %71, %75, %79, %83, %84, %88, %92, %96, %100 in 0 : vector<8x64xf32>, vector<8x64xf32>, vector<8x64xf32>, vector<8x64xf32>, vector<8x64xf32>, vector<8x64xf32>, vector<8x64xf32>, vector<8x64xf32>, vector<8x64xf32> -> vector<72x64xf32>
    %c0_90 = arith.constant 0 : index
    %c0_91 = arith.constant 0 : index
    %102 = vector.load %arg4[%c0_90, %c0_91] : memref<16x72xf32, #tpu.memory_space<vmem>>, vector<16x72xf32>
    %cst_92 = arith.constant dense<0.000000e+00> : vector<16x64xf32>
    %103 = tpu.matmul %102, %101, %cst_92 {dimension_numbers = #tpu.dot_dimension_numbers<[1], [0], [0], [1], [0, 0, 1, 1], [], []>} : vector<16x72xf32>, vector<72x64xf32>, vector<16x64xf32> -> vector<16x64xf32>
    %c0_93 = arith.constant 0 : index
    %c0_94 = arith.constant 0 : index
    %104 = vector.load %arg5[%c0_93, %c0_94] : memref<16x1xf32, #tpu.memory_space<vmem>>, vector<16x1xf32>
    %105 = vector.broadcast %104 : vector<16x1xf32> to vector<16x64xf32>
    %106 = arith.addf %103, %105 : vector<16x64xf32>
    %cst_95 = arith.constant 0.000000e+00 : f32
    %107 = vector.broadcast %cst_95 : f32 to vector<16x64xf32>
    %108 = arith.maximumf %106, %107 : vector<16x64xf32>
    %c0_96 = arith.constant 0 : index
    %c0_97 = arith.constant 0 : index
    %c0_98 = arith.constant 0 : index
    %109 = vector.load %arg22[%c0_96, %c0_97, %c0_98] : memref<4x64x16xf32, #tpu.memory_space<vmem>>, vector<1x64x16xf32>
    %110 = vector.shape_cast %109 : vector<1x64x16xf32> to vector<64x16xf32>
    %cst_99 = arith.constant dense<0.000000e+00> : vector<16x16xf32>
    %111 = tpu.matmul %108, %110, %cst_99 {dimension_numbers = #tpu.dot_dimension_numbers<[1], [0], [0], [1], [0, 0, 1, 1], [], []>} : vector<16x64xf32>, vector<64x16xf32>, vector<16x16xf32> -> vector<16x16xf32>
    %c1_100 = arith.constant 1 : index
    %c0_101 = arith.constant 0 : index
    %c0_102 = arith.constant 0 : index
    %112 = vector.load %arg22[%c1_100, %c0_101, %c0_102] : memref<4x64x16xf32, #tpu.memory_space<vmem>>, vector<1x64x16xf32>
    %113 = vector.shape_cast %112 : vector<1x64x16xf32> to vector<64x16xf32>
    %cst_103 = arith.constant dense<0.000000e+00> : vector<16x16xf32>
    %114 = tpu.matmul %108, %113, %cst_103 {dimension_numbers = #tpu.dot_dimension_numbers<[1], [0], [0], [1], [0, 0, 1, 1], [], []>} : vector<16x64xf32>, vector<64x16xf32>, vector<16x16xf32> -> vector<16x16xf32>
    %115 = arith.maximumf %111, %114 : vector<16x16xf32>
    %c2_104 = arith.constant 2 : index
    %c0_105 = arith.constant 0 : index
    %c0_106 = arith.constant 0 : index
    %116 = vector.load %arg22[%c2_104, %c0_105, %c0_106] : memref<4x64x16xf32, #tpu.memory_space<vmem>>, vector<1x64x16xf32>
    %117 = vector.shape_cast %116 : vector<1x64x16xf32> to vector<64x16xf32>
    %cst_107 = arith.constant dense<0.000000e+00> : vector<16x16xf32>
    %118 = tpu.matmul %108, %117, %cst_107 {dimension_numbers = #tpu.dot_dimension_numbers<[1], [0], [0], [1], [0, 0, 1, 1], [], []>} : vector<16x64xf32>, vector<64x16xf32>, vector<16x16xf32> -> vector<16x16xf32>
    %119 = arith.maximumf %115, %118 : vector<16x16xf32>
    %c3_108 = arith.constant 3 : index
    %c0_109 = arith.constant 0 : index
    %c0_110 = arith.constant 0 : index
    %120 = vector.load %arg22[%c3_108, %c0_109, %c0_110] : memref<4x64x16xf32, #tpu.memory_space<vmem>>, vector<1x64x16xf32>
    %121 = vector.shape_cast %120 : vector<1x64x16xf32> to vector<64x16xf32>
    %cst_111 = arith.constant dense<0.000000e+00> : vector<16x16xf32>
    %122 = tpu.matmul %108, %121, %cst_111 {dimension_numbers = #tpu.dot_dimension_numbers<[1], [0], [0], [1], [0, 0, 1, 1], [], []>} : vector<16x64xf32>, vector<64x16xf32>, vector<16x16xf32> -> vector<16x16xf32>
    %123 = arith.maximumf %119, %122 : vector<16x16xf32>
    %cst_112 = arith.constant 0.000000e+00 : f32
    %124 = vector.broadcast %cst_112 : f32 to vector<16x5xf32>
    %c0_113 = arith.constant 0 : index
    %c0_114 = arith.constant 0 : index
    %125 = vector.load %arg29[%c0_113, %c0_114] : memref<16x26xf32, #tpu.memory_space<vmem>>, vector<16x5xf32>
    tpu.vector_store %arg29[%c0_113, %c0_114], %124 {strides = array<i32>} : memref<16x26xf32, #tpu.memory_space<vmem>>, vector<16x5xf32>,
    %cst_115 = arith.constant 0.000000e+00 : f32
    %126 = vector.broadcast %cst_115 : f32 to vector<16x5xf32>
    %c0_116 = arith.constant 0 : index
    %c21 = arith.constant 21 : index
    %127 = vector.load %arg29[%c0_116, %c21] : memref<16x26xf32, #tpu.memory_space<vmem>>, vector<16x5xf32>
    tpu.vector_store %arg29[%c0_116, %c21], %126 {strides = array<i32>} : memref<16x26xf32, #tpu.memory_space<vmem>>, vector<16x5xf32>,
    %c0_117 = arith.constant 0 : index
    %c5_118 = arith.constant 5 : index
    %128 = vector.load %arg29[%c0_117, %c5_118] : memref<16x26xf32, #tpu.memory_space<vmem>>, vector<16x16xf32>
    tpu.vector_store %arg29[%c0_117, %c5_118], %123 {strides = array<i32>} : memref<16x26xf32, #tpu.memory_space<vmem>>, vector<16x16xf32>,
    %c0_119 = arith.constant 0 : index
    %c0_120 = arith.constant 0 : index
    %129 = vector.load %arg29[%c0_119, %c0_120] : memref<16x26xf32, #tpu.memory_space<vmem>>, vector<16x16xf32>
    %c0_121 = arith.constant 0 : index
    %c0_122 = arith.constant 0 : index
    %130 = vector.load %arg20[%c0_121, %c0_122] : memref<9x16xf32, #tpu.memory_space<vmem>>, vector<1x16xf32>
    %131 = vector.broadcast %130 : vector<1x16xf32> to vector<16x16xf32>
    %132 = arith.mulf %129, %131 : vector<16x16xf32>
    %c0_123 = arith.constant 0 : index
    %c1_124 = arith.constant 1 : index
    %133 = vector.load %arg29[%c0_123, %c1_124] : memref<16x26xf32, #tpu.memory_space<vmem>>, vector<16x16xf32>
    %c1_125 = arith.constant 1 : index
    %c0_126 = arith.constant 0 : index
    %134 = vector.load %arg20[%c1_125, %c0_126] : memref<9x16xf32, #tpu.memory_space<vmem>>, vector<1x16xf32>
    %135 = vector.broadcast %134 : vector<1x16xf32> to vector<16x16xf32>
    %136 = arith.mulf %133, %135 : vector<16x16xf32>
    %c0_127 = arith.constant 0 : index
    %c2_128 = arith.constant 2 : index
    %137 = vector.load %arg29[%c0_127, %c2_128] : memref<16x26xf32, #tpu.memory_space<vmem>>, vector<16x16xf32>
    %c2_129 = arith.constant 2 : index
    %c0_130 = arith.constant 0 : index
    %138 = vector.load %arg20[%c2_129, %c0_130] : memref<9x16xf32, #tpu.memory_space<vmem>>, vector<1x16xf32>
    %139 = vector.broadcast %138 : vector<1x16xf32> to vector<16x16xf32>
    %140 = arith.mulf %137, %139 : vector<16x16xf32>
    %c0_131 = arith.constant 0 : index
    %c4 = arith.constant 4 : index
    %141 = vector.load %arg29[%c0_131, %c4] : memref<16x26xf32, #tpu.memory_space<vmem>>, vector<16x16xf32>
    %c3_132 = arith.constant 3 : index
    %c0_133 = arith.constant 0 : index
    %142 = vector.load %arg20[%c3_132, %c0_133] : memref<9x16xf32, #tpu.memory_space<vmem>>, vector<1x16xf32>
    %143 = vector.broadcast %142 : vector<1x16xf32> to vector<16x16xf32>
    %144 = arith.mulf %141, %143 : vector<16x16xf32>
    %c0_134 = arith.constant 0 : index
    %c5_135 = arith.constant 5 : index
    %145 = vector.load %arg29[%c0_134, %c5_135] : memref<16x26xf32, #tpu.memory_space<vmem>>, vector<16x16xf32>
    %c0_136 = arith.constant 0 : index
    %c6_137 = arith.constant 6 : index
    %146 = vector.load %arg29[%c0_136, %c6_137] : memref<16x26xf32, #tpu.memory_space<vmem>>, vector<16x16xf32>
    %c5_138 = arith.constant 5 : index
    %c0_139 = arith.constant 0 : index
    %147 = vector.load %arg20[%c5_138, %c0_139] : memref<9x16xf32, #tpu.memory_space<vmem>>, vector<1x16xf32>
    %148 = vector.broadcast %147 : vector<1x16xf32> to vector<16x16xf32>
    %149 = arith.mulf %146, %148 : vector<16x16xf32>
    %c0_140 = arith.constant 0 : index
    %c8_141 = arith.constant 8 : index
    %150 = vector.load %arg29[%c0_140, %c8_141] : memref<16x26xf32, #tpu.memory_space<vmem>>, vector<16x16xf32>
    %c6_142 = arith.constant 6 : index
    %c0_143 = arith.constant 0 : index
    %151 = vector.load %arg20[%c6_142, %c0_143] : memref<9x16xf32, #tpu.memory_space<vmem>>, vector<1x16xf32>
    %152 = vector.broadcast %151 : vector<1x16xf32> to vector<16x16xf32>
    %153 = arith.mulf %150, %152 : vector<16x16xf32>
    %c0_144 = arith.constant 0 : index
    %c9_145 = arith.constant 9 : index
    %154 = vector.load %arg29[%c0_144, %c9_145] : memref<16x26xf32, #tpu.memory_space<vmem>>, vector<16x16xf32>
    %c7_146 = arith.constant 7 : index
    %c0_147 = arith.constant 0 : index
    %155 = vector.load %arg20[%c7_146, %c0_147] : memref<9x16xf32, #tpu.memory_space<vmem>>, vector<1x16xf32>
    %156 = vector.broadcast %155 : vector<1x16xf32> to vector<16x16xf32>
    %157 = arith.mulf %154, %156 : vector<16x16xf32>
    %c0_148 = arith.constant 0 : index
    %c10_149 = arith.constant 10 : index
    %158 = vector.load %arg29[%c0_148, %c10_149] : memref<16x26xf32, #tpu.memory_space<vmem>>, vector<16x16xf32>
    %c8_150 = arith.constant 8 : index
    %c0_151 = arith.constant 0 : index
    %159 = vector.load %arg20[%c8_150, %c0_151] : memref<9x16xf32, #tpu.memory_space<vmem>>, vector<1x16xf32>
    %160 = vector.broadcast %159 : vector<1x16xf32> to vector<16x16xf32>
    %161 = arith.mulf %158, %160 : vector<16x16xf32>
    %162 = tpu.concatenate %132, %136, %140, %144, %145, %149, %153, %157, %161 in 0 : vector<16x16xf32>, vector<16x16xf32>, vector<16x16xf32>, vector<16x16xf32>, vector<16x16xf32>, vector<16x16xf32>, vector<16x16xf32>, vector<16x16xf32>, vector<16x16xf32> -> vector<144x16xf32>
    %c0_152 = arith.constant 0 : index
    %c0_153 = arith.constant 0 : index
    %163 = vector.load %arg6[%c0_152, %c0_153] : memref<32x144xf32, #tpu.memory_space<vmem>>, vector<32x144xf32>
    %cst_154 = arith.constant dense<0.000000e+00> : vector<32x16xf32>
    %164 = tpu.matmul %163, %162, %cst_154 {dimension_numbers = #tpu.dot_dimension_numbers<[1], [0], [0], [1], [0, 0, 1, 1], [], []>} : vector<32x144xf32>, vector<144x16xf32>, vector<32x16xf32> -> vector<32x16xf32>
    %c0_155 = arith.constant 0 : index
    %c0_156 = arith.constant 0 : index
    %165 = vector.load %arg7[%c0_155, %c0_156] : memref<32x1xf32, #tpu.memory_space<vmem>>, vector<32x1xf32>
    %166 = vector.broadcast %165 : vector<32x1xf32> to vector<32x16xf32>
    %167 = arith.addf %164, %166 : vector<32x16xf32>
    %cst_157 = arith.constant 0.000000e+00 : f32
    %168 = vector.broadcast %cst_157 : f32 to vector<32x16xf32>
    %169 = arith.maximumf %167, %168 : vector<32x16xf32>
    %c0_158 = arith.constant 0 : index
    %c0_159 = arith.constant 0 : index
    %170 = vector.load %arg8[%c0_158, %c0_159] : memref<64x32xf32, #tpu.memory_space<vmem>>, vector<64x32xf32>
    %cst_160 = arith.constant dense<0.000000e+00> : vector<64x16xf32>
    %171 = tpu.matmul %170, %169, %cst_160 {dimension_numbers = #tpu.dot_dimension_numbers<[1], [0], [0], [1], [0, 0, 1, 1], [], []>} : vector<64x32xf32>, vector<32x16xf32>, vector<64x16xf32> -> vector<64x16xf32>
    %172 = vector.extract_strided_slice %171 {offsets = [0, 0], sizes = [16, 16], strides = [1, 1]} : vector<64x16xf32> to vector<16x16xf32>
    %c0_161 = arith.constant 0 : index
    %c0_162 = arith.constant 0 : index
    %c0_163 = arith.constant 0 : index
    %173 = vector.load %arg23[%c0_161, %c0_162, %c0_163] : memref<4x16x64xf32, #tpu.memory_space<vmem>>, vector<1x16x64xf32>
    %174 = vector.shape_cast %173 : vector<1x16x64xf32> to vector<16x64xf32>
    %cst_164 = arith.constant dense<0.000000e+00> : vector<16x64xf32>
    %175 = tpu.matmul %172, %174, %cst_164 {dimension_numbers = #tpu.dot_dimension_numbers<[1], [0], [0], [1], [0, 0, 1, 1], [], []>} : vector<16x16xf32>, vector<16x64xf32>, vector<16x64xf32> -> vector<16x64xf32>
    %176 = vector.extract_strided_slice %171 {offsets = [16, 0], sizes = [16, 16], strides = [1, 1]} : vector<64x16xf32> to vector<16x16xf32>
    %c1_165 = arith.constant 1 : index
    %c0_166 = arith.constant 0 : index
    %c0_167 = arith.constant 0 : index
    %177 = vector.load %arg23[%c1_165, %c0_166, %c0_167] : memref<4x16x64xf32, #tpu.memory_space<vmem>>, vector<1x16x64xf32>
    %178 = vector.shape_cast %177 : vector<1x16x64xf32> to vector<16x64xf32>
    %cst_168 = arith.constant dense<0.000000e+00> : vector<16x64xf32>
    %179 = tpu.matmul %176, %178, %cst_168 {dimension_numbers = #tpu.dot_dimension_numbers<[1], [0], [0], [1], [0, 0, 1, 1], [], []>} : vector<16x16xf32>, vector<16x64xf32>, vector<16x64xf32> -> vector<16x64xf32>
    %180 = arith.addf %175, %179 : vector<16x64xf32>
    %181 = vector.extract_strided_slice %171 {offsets = [32, 0], sizes = [16, 16], strides = [1, 1]} : vector<64x16xf32> to vector<16x16xf32>
    %c2_169 = arith.constant 2 : index
    %c0_170 = arith.constant 0 : index
    %c0_171 = arith.constant 0 : index
    %182 = vector.load %arg23[%c2_169, %c0_170, %c0_171] : memref<4x16x64xf32, #tpu.memory_space<vmem>>, vector<1x16x64xf32>
    %183 = vector.shape_cast %182 : vector<1x16x64xf32> to vector<16x64xf32>
    %cst_172 = arith.constant dense<0.000000e+00> : vector<16x64xf32>
    %184 = tpu.matmul %181, %183, %cst_172 {dimension_numbers = #tpu.dot_dimension_numbers<[1], [0], [0], [1], [0, 0, 1, 1], [], []>} : vector<16x16xf32>, vector<16x64xf32>, vector<16x64xf32> -> vector<16x64xf32>
    %185 = arith.addf %180, %184 : vector<16x64xf32>
    %186 = vector.extract_strided_slice %171 {offsets = [48, 0], sizes = [16, 16], strides = [1, 1]} : vector<64x16xf32> to vector<16x16xf32>
    %c3_173 = arith.constant 3 : index
    %c0_174 = arith.constant 0 : index
    %c0_175 = arith.constant 0 : index
    %187 = vector.load %arg23[%c3_173, %c0_174, %c0_175] : memref<4x16x64xf32, #tpu.memory_space<vmem>>, vector<1x16x64xf32>
    %188 = vector.shape_cast %187 : vector<1x16x64xf32> to vector<16x64xf32>
    %cst_176 = arith.constant dense<0.000000e+00> : vector<16x64xf32>
    %189 = tpu.matmul %186, %188, %cst_176 {dimension_numbers = #tpu.dot_dimension_numbers<[1], [0], [0], [1], [0, 0, 1, 1], [], []>} : vector<16x16xf32>, vector<16x64xf32>, vector<16x64xf32> -> vector<16x64xf32>
    %190 = arith.addf %185, %189 : vector<16x64xf32>
    %c0_177 = arith.constant 0 : index
    %c0_178 = arith.constant 0 : index
    %191 = vector.load %arg9[%c0_177, %c0_178] : memref<16x1xf32, #tpu.memory_space<vmem>>, vector<16x1xf32>
    %192 = vector.broadcast %191 : vector<16x1xf32> to vector<16x64xf32>
    %193 = arith.addf %190, %192 : vector<16x64xf32>
    %cst_179 = arith.constant 0.000000e+00 : f32
    %194 = vector.broadcast %cst_179 : f32 to vector<32x9xf32>
    %c0_180 = arith.constant 0 : index
    %c0_181 = arith.constant 0 : index
    %195 = vector.load %arg28[%c0_180, %c0_181] : memref<32x82xf32, #tpu.memory_space<vmem>>, vector<32x9xf32>
    tpu.vector_store %arg28[%c0_180, %c0_181], %194 {strides = array<i32>} : memref<32x82xf32, #tpu.memory_space<vmem>>, vector<32x9xf32>,
    %cst_182 = arith.constant 0.000000e+00 : f32
    %196 = vector.broadcast %cst_182 : f32 to vector<32x9xf32>
    %c0_183 = arith.constant 0 : index
    %c73_184 = arith.constant 73 : index
    %197 = vector.load %arg28[%c0_183, %c73_184] : memref<32x82xf32, #tpu.memory_space<vmem>>, vector<32x9xf32>
    tpu.vector_store %arg28[%c0_183, %c73_184], %196 {strides = array<i32>} : memref<32x82xf32, #tpu.memory_space<vmem>>, vector<32x9xf32>,
    %c0_185 = arith.constant 0 : index
    %c9_186 = arith.constant 9 : index
    %198 = vector.load %arg28[%c0_185, %c9_186] : memref<32x82xf32, #tpu.memory_space<vmem>>, vector<16x64xf32>
    tpu.vector_store %arg28[%c0_185, %c9_186], %193 {strides = array<i32>} : memref<32x82xf32, #tpu.memory_space<vmem>>, vector<16x64xf32>,
    %c16_187 = arith.constant 16 : index
    %c9_188 = arith.constant 9 : index
    %199 = vector.load %arg28[%c16_187, %c9_188] : memref<32x82xf32, #tpu.memory_space<vmem>>, vector<16x64xf32>
    tpu.vector_store %arg28[%c16_187, %c9_188], %108 {strides = array<i32>} : memref<32x82xf32, #tpu.memory_space<vmem>>, vector<16x64xf32>,
    %c0_189 = arith.constant 0 : index
    %c0_190 = arith.constant 0 : index
    %200 = vector.load %arg28[%c0_189, %c0_190] : memref<32x82xf32, #tpu.memory_space<vmem>>, vector<32x64xf32>
    %c0_191 = arith.constant 0 : index
    %c0_192 = arith.constant 0 : index
    %201 = vector.load %arg19[%c0_191, %c0_192] : memref<9x64xf32, #tpu.memory_space<vmem>>, vector<1x64xf32>
    %202 = vector.broadcast %201 : vector<1x64xf32> to vector<32x64xf32>
    %203 = arith.mulf %200, %202 : vector<32x64xf32>
    %c0_193 = arith.constant 0 : index
    %c1_194 = arith.constant 1 : index
    %204 = vector.load %arg28[%c0_193, %c1_194] : memref<32x82xf32, #tpu.memory_space<vmem>>, vector<32x64xf32>
    %c1_195 = arith.constant 1 : index
    %c0_196 = arith.constant 0 : index
    %205 = vector.load %arg19[%c1_195, %c0_196] : memref<9x64xf32, #tpu.memory_space<vmem>>, vector<1x64xf32>
    %206 = vector.broadcast %205 : vector<1x64xf32> to vector<32x64xf32>
    %207 = arith.mulf %204, %206 : vector<32x64xf32>
    %c0_197 = arith.constant 0 : index
    %c2_198 = arith.constant 2 : index
    %208 = vector.load %arg28[%c0_197, %c2_198] : memref<32x82xf32, #tpu.memory_space<vmem>>, vector<32x64xf32>
    %c2_199 = arith.constant 2 : index
    %c0_200 = arith.constant 0 : index
    %209 = vector.load %arg19[%c2_199, %c0_200] : memref<9x64xf32, #tpu.memory_space<vmem>>, vector<1x64xf32>
    %210 = vector.broadcast %209 : vector<1x64xf32> to vector<32x64xf32>
    %211 = arith.mulf %208, %210 : vector<32x64xf32>
    %c0_201 = arith.constant 0 : index
    %c8_202 = arith.constant 8 : index
    %212 = vector.load %arg28[%c0_201, %c8_202] : memref<32x82xf32, #tpu.memory_space<vmem>>, vector<32x64xf32>
    %c3_203 = arith.constant 3 : index
    %c0_204 = arith.constant 0 : index
    %213 = vector.load %arg19[%c3_203, %c0_204] : memref<9x64xf32, #tpu.memory_space<vmem>>, vector<1x64xf32>
    %214 = vector.broadcast %213 : vector<1x64xf32> to vector<32x64xf32>
    %215 = arith.mulf %212, %214 : vector<32x64xf32>
    %c0_205 = arith.constant 0 : index
    %c9_206 = arith.constant 9 : index
    %216 = vector.load %arg28[%c0_205, %c9_206] : memref<32x82xf32, #tpu.memory_space<vmem>>, vector<32x64xf32>
    %c0_207 = arith.constant 0 : index
    %c10_208 = arith.constant 10 : index
    %217 = vector.load %arg28[%c0_207, %c10_208] : memref<32x82xf32, #tpu.memory_space<vmem>>, vector<32x64xf32>
    %c5_209 = arith.constant 5 : index
    %c0_210 = arith.constant 0 : index
    %218 = vector.load %arg19[%c5_209, %c0_210] : memref<9x64xf32, #tpu.memory_space<vmem>>, vector<1x64xf32>
    %219 = vector.broadcast %218 : vector<1x64xf32> to vector<32x64xf32>
    %220 = arith.mulf %217, %219 : vector<32x64xf32>
    %c0_211 = arith.constant 0 : index
    %c16_212 = arith.constant 16 : index
    %221 = vector.load %arg28[%c0_211, %c16_212] : memref<32x82xf32, #tpu.memory_space<vmem>>, vector<32x64xf32>
    %c6_213 = arith.constant 6 : index
    %c0_214 = arith.constant 0 : index
    %222 = vector.load %arg19[%c6_213, %c0_214] : memref<9x64xf32, #tpu.memory_space<vmem>>, vector<1x64xf32>
    %223 = vector.broadcast %222 : vector<1x64xf32> to vector<32x64xf32>
    %224 = arith.mulf %221, %223 : vector<32x64xf32>
    %c0_215 = arith.constant 0 : index
    %c17_216 = arith.constant 17 : index
    %225 = vector.load %arg28[%c0_215, %c17_216] : memref<32x82xf32, #tpu.memory_space<vmem>>, vector<32x64xf32>
    %c7_217 = arith.constant 7 : index
    %c0_218 = arith.constant 0 : index
    %226 = vector.load %arg19[%c7_217, %c0_218] : memref<9x64xf32, #tpu.memory_space<vmem>>, vector<1x64xf32>
    %227 = vector.broadcast %226 : vector<1x64xf32> to vector<32x64xf32>
    %228 = arith.mulf %225, %227 : vector<32x64xf32>
    %c0_219 = arith.constant 0 : index
    %c18_220 = arith.constant 18 : index
    %229 = vector.load %arg28[%c0_219, %c18_220] : memref<32x82xf32, #tpu.memory_space<vmem>>, vector<32x64xf32>
    %c8_221 = arith.constant 8 : index
    %c0_222 = arith.constant 0 : index
    %230 = vector.load %arg19[%c8_221, %c0_222] : memref<9x64xf32, #tpu.memory_space<vmem>>, vector<1x64xf32>
    %231 = vector.broadcast %230 : vector<1x64xf32> to vector<32x64xf32>
    %232 = arith.mulf %229, %231 : vector<32x64xf32>
    %233 = tpu.concatenate %203, %207, %211, %215, %216, %220, %224, %228, %232 in 0 : vector<32x64xf32>, vector<32x64xf32>, vector<32x64xf32>, vector<32x64xf32>, vector<32x64xf32>, vector<32x64xf32>, vector<32x64xf32>, vector<32x64xf32>, vector<32x64xf32> -> vector<288x64xf32>
    %c0_223 = arith.constant 0 : index
    %c0_224 = arith.constant 0 : index
    %234 = vector.load %arg10[%c0_223, %c0_224] : memref<16x288xf32, #tpu.memory_space<vmem>>, vector<16x288xf32>
    %cst_225 = arith.constant dense<0.000000e+00> : vector<16x64xf32>
    %235 = tpu.matmul %234, %233, %cst_225 {dimension_numbers = #tpu.dot_dimension_numbers<[1], [0], [0], [1], [0, 0, 1, 1], [], []>} : vector<16x288xf32>, vector<288x64xf32>, vector<16x64xf32> -> vector<16x64xf32>
    %c0_226 = arith.constant 0 : index
    %c0_227 = arith.constant 0 : index
    %236 = vector.load %arg11[%c0_226, %c0_227] : memref<16x1xf32, #tpu.memory_space<vmem>>, vector<16x1xf32>
    %237 = vector.broadcast %236 : vector<16x1xf32> to vector<16x64xf32>
    %238 = arith.addf %235, %237 : vector<16x64xf32>
    %cst_228 = arith.constant 0.000000e+00 : f32
    %239 = vector.broadcast %cst_228 : f32 to vector<16x64xf32>
    %240 = arith.maximumf %238, %239 : vector<16x64xf32>
    %c0_229 = arith.constant 0 : index
    %c0_230 = arith.constant 0 : index
    %241 = vector.load %arg12[%c0_229, %c0_230] : memref<32x16xf32, #tpu.memory_space<vmem>>, vector<32x16xf32>
    %cst_231 = arith.constant dense<0.000000e+00> : vector<32x64xf32>
    %242 = tpu.matmul %241, %240, %cst_231 {dimension_numbers = #tpu.dot_dimension_numbers<[1], [0], [0], [1], [0, 0, 1, 1], [], []>} : vector<32x16xf32>, vector<16x64xf32>, vector<32x64xf32> -> vector<32x64xf32>
    %243 = vector.extract_strided_slice %242 {offsets = [0, 0], sizes = [8, 64], strides = [1, 1]} : vector<32x64xf32> to vector<8x64xf32>
    %c0_232 = arith.constant 0 : index
    %c0_233 = arith.constant 0 : index
    %c0_234 = arith.constant 0 : index
    %244 = vector.load %arg24[%c0_232, %c0_233, %c0_234] : memref<4x64x256xf32, #tpu.memory_space<vmem>>, vector<1x64x256xf32>
    %245 = vector.shape_cast %244 : vector<1x64x256xf32> to vector<64x256xf32>
    %cst_235 = arith.constant dense<0.000000e+00> : vector<8x256xf32>
    %246 = tpu.matmul %243, %245, %cst_235 {dimension_numbers = #tpu.dot_dimension_numbers<[1], [0], [0], [1], [0, 0, 1, 1], [], []>} : vector<8x64xf32>, vector<64x256xf32>, vector<8x256xf32> -> vector<8x256xf32>
    %247 = vector.extract_strided_slice %242 {offsets = [8, 0], sizes = [8, 64], strides = [1, 1]} : vector<32x64xf32> to vector<8x64xf32>
    %c1_236 = arith.constant 1 : index
    %c0_237 = arith.constant 0 : index
    %c0_238 = arith.constant 0 : index
    %248 = vector.load %arg24[%c1_236, %c0_237, %c0_238] : memref<4x64x256xf32, #tpu.memory_space<vmem>>, vector<1x64x256xf32>
    %249 = vector.shape_cast %248 : vector<1x64x256xf32> to vector<64x256xf32>
    %cst_239 = arith.constant dense<0.000000e+00> : vector<8x256xf32>
    %250 = tpu.matmul %247, %249, %cst_239 {dimension_numbers = #tpu.dot_dimension_numbers<[1], [0], [0], [1], [0, 0, 1, 1], [], []>} : vector<8x64xf32>, vector<64x256xf32>, vector<8x256xf32> -> vector<8x256xf32>
    %251 = arith.addf %246, %250 : vector<8x256xf32>
    %252 = vector.extract_strided_slice %242 {offsets = [16, 0], sizes = [8, 64], strides = [1, 1]} : vector<32x64xf32> to vector<8x64xf32>
    %c2_240 = arith.constant 2 : index
    %c0_241 = arith.constant 0 : index
    %c0_242 = arith.constant 0 : index
    %253 = vector.load %arg24[%c2_240, %c0_241, %c0_242] : memref<4x64x256xf32, #tpu.memory_space<vmem>>, vector<1x64x256xf32>
    %254 = vector.shape_cast %253 : vector<1x64x256xf32> to vector<64x256xf32>
    %cst_243 = arith.constant dense<0.000000e+00> : vector<8x256xf32>
    %255 = tpu.matmul %252, %254, %cst_243 {dimension_numbers = #tpu.dot_dimension_numbers<[1], [0], [0], [1], [0, 0, 1, 1], [], []>} : vector<8x64xf32>, vector<64x256xf32>, vector<8x256xf32> -> vector<8x256xf32>
    %256 = arith.addf %251, %255 : vector<8x256xf32>
    %257 = vector.extract_strided_slice %242 {offsets = [24, 0], sizes = [8, 64], strides = [1, 1]} : vector<32x64xf32> to vector<8x64xf32>
    %c3_244 = arith.constant 3 : index
    %c0_245 = arith.constant 0 : index
    %c0_246 = arith.constant 0 : index
    %258 = vector.load %arg24[%c3_244, %c0_245, %c0_246] : memref<4x64x256xf32, #tpu.memory_space<vmem>>, vector<1x64x256xf32>
    %259 = vector.shape_cast %258 : vector<1x64x256xf32> to vector<64x256xf32>
    %cst_247 = arith.constant dense<0.000000e+00> : vector<8x256xf32>
    %260 = tpu.matmul %257, %259, %cst_247 {dimension_numbers = #tpu.dot_dimension_numbers<[1], [0], [0], [1], [0, 0, 1, 1], [], []>} : vector<8x64xf32>, vector<64x256xf32>, vector<8x256xf32> -> vector<8x256xf32>
    %261 = arith.addf %256, %260 : vector<8x256xf32>
    %c0_248 = arith.constant 0 : index
    %c0_249 = arith.constant 0 : index
    %262 = vector.load %arg13[%c0_248, %c0_249] : memref<8x1xf32, #tpu.memory_space<vmem>>, vector<8x1xf32>
    %263 = vector.broadcast %262 : vector<8x1xf32> to vector<8x256xf32>
    %264 = arith.addf %261, %263 : vector<8x256xf32>
    %c0_250 = arith.constant 0 : index
    %c0_251 = arith.constant 0 : index
    %c0_252 = arith.constant 0 : index
    %265 = vector.load %arg25[%c0_250, %c0_251, %c0_252] : memref<1x16x256xf32, #tpu.memory_space<vmem>>, vector<1x8x256xf32>
    %266 = vector.shape_cast %265 : vector<1x8x256xf32> to vector<8x256xf32>
    %267 = vector.shape_cast %264 : vector<8x256xf32> to vector<1x8x256xf32>
    tpu.vector_store %arg25[%c0_250, %c0_251, %c0_252], %267 {strides = array<i32>} : memref<1x16x256xf32, #tpu.memory_space<vmem>>, vector<1x8x256xf32>,
    %c0_253 = arith.constant 0 : index
    %c8_254 = arith.constant 8 : index
    %c0_255 = arith.constant 0 : index
    %268 = vector.load %arg25[%c0_253, %c8_254, %c0_255] : memref<1x16x256xf32, #tpu.memory_space<vmem>>, vector<1x8x256xf32>
    %269 = vector.shape_cast %268 : vector<1x8x256xf32> to vector<8x256xf32>
    %270 = vector.shape_cast %47 : vector<8x256xf32> to vector<1x8x256xf32>
    tpu.vector_store %arg25[%c0_253, %c8_254, %c0_255], %270 {strides = array<i32>} : memref<1x16x256xf32, #tpu.memory_space<vmem>>, vector<1x8x256xf32>,
    %cst_256 = arith.constant 0.000000e+00 : f32
    %271 = vector.broadcast %cst_256 : f32 to vector<16x17xf32>
    %c0_257 = arith.constant 0 : index
    %c0_258 = arith.constant 0 : index
    %272 = vector.load %arg27[%c0_257, %c0_258] : memref<16x290xf32, #tpu.memory_space<vmem>>, vector<16x17xf32>
    tpu.vector_store %arg27[%c0_257, %c0_258], %271 {strides = array<i32>} : memref<16x290xf32, #tpu.memory_space<vmem>>, vector<16x17xf32>,
    %cst_259 = arith.constant 0.000000e+00 : f32
    %273 = vector.broadcast %cst_259 : f32 to vector<16x17xf32>
    %c0_260 = arith.constant 0 : index
    %c273_261 = arith.constant 273 : index
    %274 = vector.load %arg27[%c0_260, %c273_261] : memref<16x290xf32, #tpu.memory_space<vmem>>, vector<16x17xf32>
    tpu.vector_store %arg27[%c0_260, %c273_261], %273 {strides = array<i32>} : memref<16x290xf32, #tpu.memory_space<vmem>>, vector<16x17xf32>,
    %c0_262 = arith.constant 0 : index
    %c17_263 = arith.constant 17 : index
    %275 = vector.load %arg27[%c0_262, %c17_263] : memref<16x290xf32, #tpu.memory_space<vmem>>, vector<8x256xf32>
    tpu.vector_store %arg27[%c0_262, %c17_263], %264 {strides = array<i32>} : memref<16x290xf32, #tpu.memory_space<vmem>>, vector<8x256xf32>,
    %c8_264 = arith.constant 8 : index
    %c17_265 = arith.constant 17 : index
    %276 = vector.load %arg27[%c8_264, %c17_265] : memref<16x290xf32, #tpu.memory_space<vmem>>, vector<8x256xf32>
    tpu.vector_store %arg27[%c8_264, %c17_265], %47 {strides = array<i32>} : memref<16x290xf32, #tpu.memory_space<vmem>>, vector<8x256xf32>,
    %c0_266 = arith.constant 0 : index
    %c0_267 = arith.constant 0 : index
    %277 = vector.load %arg27[%c0_266, %c0_267] : memref<16x290xf32, #tpu.memory_space<vmem>>, vector<16x256xf32>
    %c0_268 = arith.constant 0 : index
    %c0_269 = arith.constant 0 : index
    %278 = vector.load %arg18[%c0_268, %c0_269] : memref<9x256xf32, #tpu.memory_space<vmem>>, vector<1x256xf32>
    %279 = vector.broadcast %278 : vector<1x256xf32> to vector<16x256xf32>
    %280 = arith.mulf %277, %279 : vector<16x256xf32>
    %c0_270 = arith.constant 0 : index
    %c1_271 = arith.constant 1 : index
    %281 = vector.load %arg27[%c0_270, %c1_271] : memref<16x290xf32, #tpu.memory_space<vmem>>, vector<16x256xf32>
    %c1_272 = arith.constant 1 : index
    %c0_273 = arith.constant 0 : index
    %282 = vector.load %arg18[%c1_272, %c0_273] : memref<9x256xf32, #tpu.memory_space<vmem>>, vector<1x256xf32>
    %283 = vector.broadcast %282 : vector<1x256xf32> to vector<16x256xf32>
    %284 = arith.mulf %281, %283 : vector<16x256xf32>
    %c0_274 = arith.constant 0 : index
    %c2_275 = arith.constant 2 : index
    %285 = vector.load %arg27[%c0_274, %c2_275] : memref<16x290xf32, #tpu.memory_space<vmem>>, vector<16x256xf32>
    %c2_276 = arith.constant 2 : index
    %c0_277 = arith.constant 0 : index
    %286 = vector.load %arg18[%c2_276, %c0_277] : memref<9x256xf32, #tpu.memory_space<vmem>>, vector<1x256xf32>
    %287 = vector.broadcast %286 : vector<1x256xf32> to vector<16x256xf32>
    %288 = arith.mulf %285, %287 : vector<16x256xf32>
    %c0_278 = arith.constant 0 : index
    %c16_279 = arith.constant 16 : index
    %289 = vector.load %arg27[%c0_278, %c16_279] : memref<16x290xf32, #tpu.memory_space<vmem>>, vector<16x256xf32>
    %c3_280 = arith.constant 3 : index
    %c0_281 = arith.constant 0 : index
    %290 = vector.load %arg18[%c3_280, %c0_281] : memref<9x256xf32, #tpu.memory_space<vmem>>, vector<1x256xf32>
    %291 = vector.broadcast %290 : vector<1x256xf32> to vector<16x256xf32>
    %292 = arith.mulf %289, %291 : vector<16x256xf32>
    %c0_282 = arith.constant 0 : index
    %c17_283 = arith.constant 17 : index
    %293 = vector.load %arg27[%c0_282, %c17_283] : memref<16x290xf32, #tpu.memory_space<vmem>>, vector<16x256xf32>
    %c0_284 = arith.constant 0 : index
    %c18_285 = arith.constant 18 : index
    %294 = vector.load %arg27[%c0_284, %c18_285] : memref<16x290xf32, #tpu.memory_space<vmem>>, vector<16x256xf32>
    %c5_286 = arith.constant 5 : index
    %c0_287 = arith.constant 0 : index
    %295 = vector.load %arg18[%c5_286, %c0_287] : memref<9x256xf32, #tpu.memory_space<vmem>>, vector<1x256xf32>
    %296 = vector.broadcast %295 : vector<1x256xf32> to vector<16x256xf32>
    %297 = arith.mulf %294, %296 : vector<16x256xf32>
    %c0_288 = arith.constant 0 : index
    %c32_289 = arith.constant 32 : index
    %298 = vector.load %arg27[%c0_288, %c32_289] : memref<16x290xf32, #tpu.memory_space<vmem>>, vector<16x256xf32>
    %c6_290 = arith.constant 6 : index
    %c0_291 = arith.constant 0 : index
    %299 = vector.load %arg18[%c6_290, %c0_291] : memref<9x256xf32, #tpu.memory_space<vmem>>, vector<1x256xf32>
    %300 = vector.broadcast %299 : vector<1x256xf32> to vector<16x256xf32>
    %301 = arith.mulf %298, %300 : vector<16x256xf32>
    %c0_292 = arith.constant 0 : index
    %c33_293 = arith.constant 33 : index
    %302 = vector.load %arg27[%c0_292, %c33_293] : memref<16x290xf32, #tpu.memory_space<vmem>>, vector<16x256xf32>
    %c7_294 = arith.constant 7 : index
    %c0_295 = arith.constant 0 : index
    %303 = vector.load %arg18[%c7_294, %c0_295] : memref<9x256xf32, #tpu.memory_space<vmem>>, vector<1x256xf32>
    %304 = vector.broadcast %303 : vector<1x256xf32> to vector<16x256xf32>
    %305 = arith.mulf %302, %304 : vector<16x256xf32>
    %c0_296 = arith.constant 0 : index
    %c34_297 = arith.constant 34 : index
    %306 = vector.load %arg27[%c0_296, %c34_297] : memref<16x290xf32, #tpu.memory_space<vmem>>, vector<16x256xf32>
    %c8_298 = arith.constant 8 : index
    %c0_299 = arith.constant 0 : index
    %307 = vector.load %arg18[%c8_298, %c0_299] : memref<9x256xf32, #tpu.memory_space<vmem>>, vector<1x256xf32>
    %308 = vector.broadcast %307 : vector<1x256xf32> to vector<16x256xf32>
    %309 = arith.mulf %306, %308 : vector<16x256xf32>
    %310 = tpu.concatenate %280, %284, %288, %292, %293, %297, %301, %305, %309 in 0 : vector<16x256xf32>, vector<16x256xf32>, vector<16x256xf32>, vector<16x256xf32>, vector<16x256xf32>, vector<16x256xf32>, vector<16x256xf32>, vector<16x256xf32>, vector<16x256xf32> -> vector<144x256xf32>
    %c0_300 = arith.constant 0 : index
    %c0_301 = arith.constant 0 : index
    %311 = vector.load %arg14[%c0_300, %c0_301] : memref<8x144xf32, #tpu.memory_space<vmem>>, vector<8x144xf32>
    %cst_302 = arith.constant dense<0.000000e+00> : vector<8x256xf32>
    %312 = tpu.matmul %311, %310, %cst_302 {dimension_numbers = #tpu.dot_dimension_numbers<[1], [0], [0], [1], [0, 0, 1, 1], [], []>} : vector<8x144xf32>, vector<144x256xf32>, vector<8x256xf32> -> vector<8x256xf32>
    %c0_303 = arith.constant 0 : index
    %c0_304 = arith.constant 0 : index
    %313 = vector.load %arg15[%c0_303, %c0_304] : memref<8x1xf32, #tpu.memory_space<vmem>>, vector<8x1xf32>
    %314 = vector.broadcast %313 : vector<8x1xf32> to vector<8x256xf32>
    %315 = arith.addf %312, %314 : vector<8x256xf32>
    %cst_305 = arith.constant 0.000000e+00 : f32
    %316 = vector.broadcast %cst_305 : f32 to vector<8x256xf32>
    %317 = arith.maximumf %315, %316 : vector<8x256xf32>
    %c0_306 = arith.constant 0 : index
    %c0_307 = arith.constant 0 : index
    %318 = vector.load %arg16[%c0_306, %c0_307] : memref<3x8xf32, #tpu.memory_space<vmem>>, vector<3x8xf32>
    %cst_308 = arith.constant dense<0.000000e+00> : vector<3x256xf32>
    %319 = tpu.matmul %318, %317, %cst_308 {dimension_numbers = #tpu.dot_dimension_numbers<[1], [0], [0], [1], [0, 0, 1, 1], [], []>} : vector<3x8xf32>, vector<8x256xf32>, vector<3x256xf32> -> vector<3x256xf32>
    %c0_309 = arith.constant 0 : index
    %c0_310 = arith.constant 0 : index
    %320 = vector.load %arg17[%c0_309, %c0_310] : memref<3x1xf32, #tpu.memory_space<vmem>>, vector<3x1xf32>
    %321 = vector.broadcast %320 : vector<3x1xf32> to vector<3x256xf32>
    %322 = arith.addf %319, %321 : vector<3x256xf32>
    %323 = arith.negf %322 : vector<3x256xf32>
    %324 = math.exp %323 : vector<3x256xf32>
    %cst_311 = arith.constant 1.000000e+00 : f32
    %325 = vector.broadcast %cst_311 : f32 to vector<3x256xf32>
    %326 = arith.addf %325, %324 : vector<3x256xf32>
    %327 = arith.divf %325, %326 : vector<3x256xf32>
    %c0_312 = arith.constant 0 : index
    %c0_313 = arith.constant 0 : index
    %c0_314 = arith.constant 0 : index
    %328 = vector.load %arg26[%c0_312, %c0_313, %c0_314] : memref<1x3x256xf32, #tpu.memory_space<vmem>>, vector<1x3x256xf32>
    %329 = vector.shape_cast %328 : vector<1x3x256xf32> to vector<3x256xf32>
    %330 = vector.shape_cast %327 : vector<3x256xf32> to vector<1x3x256xf32>
    tpu.vector_store %arg26[%c0_312, %c0_313, %c0_314], %330 {strides = array<i32>} : memref<1x3x256xf32, #tpu.memory_space<vmem>>, vector<1x3x256xf32>,
    return
  }
  func.func @transform_0(%arg0: i32) -> (i32, i32, i32) {
    %c0_i32 = arith.constant 0 : i32
    %c0_i32_0 = arith.constant 0 : i32
    %c0_i32_1 = arith.constant 0 : i32
    return %arg0, %c0_i32, %c0_i32_0 : i32, i32, i32
  }
  func.func @transform_1(%arg0: i32) -> (i32, i32) {
    %c0_i32 = arith.constant 0 : i32
    %c0_i32_0 = arith.constant 0 : i32
    %c0_i32_1 = arith.constant 0 : i32
    return %c0_i32, %c0_i32_0 : i32, i32
  }
  func.func @transform_2(%arg0: i32) -> (i32, i32) {
    %c0_i32 = arith.constant 0 : i32
    %c0_i32_0 = arith.constant 0 : i32
    %c0_i32_1 = arith.constant 0 : i32
    return %c0_i32, %c0_i32_0 : i32, i32
  }
  func.func @transform_3(%arg0: i32) -> (i32, i32) {
    %c0_i32 = arith.constant 0 : i32
    %c0_i32_0 = arith.constant 0 : i32
    %c0_i32_1 = arith.constant 0 : i32
    return %c0_i32, %c0_i32_0 : i32, i32
  }
  func.func @transform_4(%arg0: i32) -> (i32, i32) {
    %c0_i32 = arith.constant 0 : i32
    %c0_i32_0 = arith.constant 0 : i32
    %c0_i32_1 = arith.constant 0 : i32
    return %c0_i32, %c0_i32_0 : i32, i32
  }
  func.func @transform_5(%arg0: i32) -> (i32, i32) {
    %c0_i32 = arith.constant 0 : i32
    %c0_i32_0 = arith.constant 0 : i32
    %c0_i32_1 = arith.constant 0 : i32
    return %c0_i32, %c0_i32_0 : i32, i32
  }
  func.func @transform_6(%arg0: i32) -> (i32, i32) {
    %c0_i32 = arith.constant 0 : i32
    %c0_i32_0 = arith.constant 0 : i32
    %c0_i32_1 = arith.constant 0 : i32
    return %c0_i32, %c0_i32_0 : i32, i32
  }
  func.func @transform_7(%arg0: i32) -> (i32, i32) {
    %c0_i32 = arith.constant 0 : i32
    %c0_i32_0 = arith.constant 0 : i32
    %c0_i32_1 = arith.constant 0 : i32
    return %c0_i32, %c0_i32_0 : i32, i32
  }
  func.func @transform_8(%arg0: i32) -> (i32, i32) {
    %c0_i32 = arith.constant 0 : i32
    %c0_i32_0 = arith.constant 0 : i32
    %c0_i32_1 = arith.constant 0 : i32
    return %c0_i32, %c0_i32_0 : i32, i32
  }
  func.func @transform_9(%arg0: i32) -> (i32, i32) {
    %c0_i32 = arith.constant 0 : i32
    %c0_i32_0 = arith.constant 0 : i32
    %c0_i32_1 = arith.constant 0 : i32
    return %c0_i32, %c0_i32_0 : i32, i32
  }
  func.func @transform_10(%arg0: i32) -> (i32, i32) {
    %c0_i32 = arith.constant 0 : i32
    %c0_i32_0 = arith.constant 0 : i32
    %c0_i32_1 = arith.constant 0 : i32
    return %c0_i32, %c0_i32_0 : i32, i32
  }
  func.func @transform_11(%arg0: i32) -> (i32, i32) {
    %c0_i32 = arith.constant 0 : i32
    %c0_i32_0 = arith.constant 0 : i32
    %c0_i32_1 = arith.constant 0 : i32
    return %c0_i32, %c0_i32_0 : i32, i32
  }
  func.func @transform_12(%arg0: i32) -> (i32, i32) {
    %c0_i32 = arith.constant 0 : i32
    %c0_i32_0 = arith.constant 0 : i32
    %c0_i32_1 = arith.constant 0 : i32
    return %c0_i32, %c0_i32_0 : i32, i32
  }
  func.func @transform_13(%arg0: i32) -> (i32, i32) {
    %c0_i32 = arith.constant 0 : i32
    %c0_i32_0 = arith.constant 0 : i32
    %c0_i32_1 = arith.constant 0 : i32
    return %c0_i32, %c0_i32_0 : i32, i32
  }
  func.func @transform_14(%arg0: i32) -> (i32, i32) {
    %c0_i32 = arith.constant 0 : i32
    %c0_i32_0 = arith.constant 0 : i32
    %c0_i32_1 = arith.constant 0 : i32
    return %c0_i32, %c0_i32_0 : i32, i32
  }
  func.func @transform_15(%arg0: i32) -> (i32, i32) {
    %c0_i32 = arith.constant 0 : i32
    %c0_i32_0 = arith.constant 0 : i32
    %c0_i32_1 = arith.constant 0 : i32
    return %c0_i32, %c0_i32_0 : i32, i32
  }
  func.func @transform_16(%arg0: i32) -> (i32, i32) {
    %c0_i32 = arith.constant 0 : i32
    %c0_i32_0 = arith.constant 0 : i32
    %c0_i32_1 = arith.constant 0 : i32
    return %c0_i32, %c0_i32_0 : i32, i32
  }
  func.func @transform_17(%arg0: i32) -> (i32, i32) {
    %c0_i32 = arith.constant 0 : i32
    %c0_i32_0 = arith.constant 0 : i32
    %c0_i32_1 = arith.constant 0 : i32
    return %c0_i32, %c0_i32_0 : i32, i32
  }
  func.func @transform_18(%arg0: i32) -> (i32, i32) {
    %c0_i32 = arith.constant 0 : i32
    %c0_i32_0 = arith.constant 0 : i32
    %c0_i32_1 = arith.constant 0 : i32
    return %c0_i32, %c0_i32_0 : i32, i32
  }
  func.func @transform_19(%arg0: i32) -> (i32, i32) {
    %c0_i32 = arith.constant 0 : i32
    %c0_i32_0 = arith.constant 0 : i32
    %c0_i32_1 = arith.constant 0 : i32
    return %c0_i32, %c0_i32_0 : i32, i32
  }
  func.func @transform_20(%arg0: i32) -> (i32, i32, i32) {
    %c0_i32 = arith.constant 0 : i32
    %c0_i32_0 = arith.constant 0 : i32
    %c0_i32_1 = arith.constant 0 : i32
    %c0_i32_2 = arith.constant 0 : i32
    return %c0_i32, %c0_i32_0, %c0_i32_1 : i32, i32, i32
  }
  func.func @transform_21(%arg0: i32) -> (i32, i32, i32) {
    %c0_i32 = arith.constant 0 : i32
    %c0_i32_0 = arith.constant 0 : i32
    %c0_i32_1 = arith.constant 0 : i32
    %c0_i32_2 = arith.constant 0 : i32
    return %c0_i32, %c0_i32_0, %c0_i32_1 : i32, i32, i32
  }
  func.func @transform_22(%arg0: i32) -> (i32, i32, i32) {
    %c0_i32 = arith.constant 0 : i32
    %c0_i32_0 = arith.constant 0 : i32
    %c0_i32_1 = arith.constant 0 : i32
    %c0_i32_2 = arith.constant 0 : i32
    return %c0_i32, %c0_i32_0, %c0_i32_1 : i32, i32, i32
  }
  func.func @transform_23(%arg0: i32) -> (i32, i32, i32) {
    %c0_i32 = arith.constant 0 : i32
    %c0_i32_0 = arith.constant 0 : i32
    %c0_i32_1 = arith.constant 0 : i32
    %c0_i32_2 = arith.constant 0 : i32
    return %c0_i32, %c0_i32_0, %c0_i32_1 : i32, i32, i32
  }
  func.func @transform_24(%arg0: i32) -> (i32, i32, i32) {
    %c0_i32 = arith.constant 0 : i32
    %c0_i32_0 = arith.constant 0 : i32
    %c0_i32_1 = arith.constant 0 : i32
    return %arg0, %c0_i32, %c0_i32_0 : i32, i32, i32
  }
  func.func @transform_25(%arg0: i32) -> (i32, i32, i32) {
    %c0_i32 = arith.constant 0 : i32
    %c0_i32_0 = arith.constant 0 : i32
    %c0_i32_1 = arith.constant 0 : i32
    return %arg0, %c0_i32, %c0_i32_0 : i32, i32, i32
  }
}

</mosaic_0001>

<bundles_post_ra>
// kernel: unet_confidnet_encoder_forward.1
= control target key start
LH: loop header
LB: loop body
LE: loop exit
PB: predicated region body
PF: predicated region fallthrough
CT: control target
= control target key end

     0   :  { %s7851_s0 = inlined_call_operand.vmem [shape: f32[2,8,256], index: 0, kind: input, shape index: {}]   ;;  %s7852_s1 = inlined_call_operand.vmem [shape: f32[8,72], index: 1, kind: input, shape index: {}]   ;;  %s7853_s2 = inlined_call_operand.vmem [shape: f32[8,1], index: 2, kind: input, shape index: {}]   ;;  %s7854_s3 = inlined_call_operand.vmem [shape: f32[16,72], index: 3, kind: input, shape index: {}]   ;;  %s7855_s4 = inlined_call_operand.vmem [shape: f32[16,1], index: 4, kind: input, shape index: {}]   ;;  %s7856_s5 = inlined_call_operand.vmem [shape: f32[32,144], index: 5, kind: input, shape index: {}]   ;;  %s7857_s6 = inlined_call_operand.vmem [shape: f32[32,1], index: 6, kind: input, shape index: {}]   ;;  %s7858_s7 = inlined_call_operand.vmem [shape: f32[64,32], index: 7, kind: input, shape index: {}]   ;;  %s7859_s8 = inlined_call_operand.vmem [shape: f32[16,1], index: 8, kind: input, shape index: {}]   ;;  %s7860_s9 = inlined_call_operand.vmem [shape: f32[16,288], index: 9, kind: input, shape index: {}]   ;;  %s7861_s10 = inlined_call_operand.vmem [shape: f32[16,1], index: 10, kind: input, shape index: {}]   ;;  %s7862_s11 = inlined_call_operand.vmem [shape: f32[32,16], index: 11, kind: input, shape index: {}]   ;;  %s7863_s12 = inlined_call_operand.vmem [shape: f32[8,1], index: 12, kind: input, shape index: {}]   ;;  %s7864_s13 = inlined_call_operand.vmem [shape: f32[8,144], index: 13, kind: input, shape index: {}]   ;;  %s7865_s14 = inlined_call_operand.vmem [shape: f32[8,1], index: 14, kind: input, shape index: {}]   ;;  %s7866_s15 = inlined_call_operand.vmem [shape: f32[3,8], index: 15, kind: input, shape index: {}]   ;;  %s7867_s16 = inlined_call_operand.vmem [shape: f32[3,1], index: 16, kind: input, shape index: {}]   ;;  %s7868_s17 = inlined_call_operand.vmem [shape: f32[9,256], index: 17, kind: input, shape index: {}]   ;;  %s7869_s18 = inlined_call_operand.hbm [shape: f32[9,64], index: 18, kind: input, shape index: {}]   ;;  %s7870_s19 = inlined_call_operand.vmem [shape: f32[9,16], index: 19, kind: input, shape index: {}]   ;;  %s7871_s20 = inlined_call_operand.vmem [shape: f32[4,256,64], index: 20, kind: input, shape index: {}]   ;;  %s7872_s21 = inlined_call_operand.vmem [shape: f32[4,64,16], index: 21, kind: input, shape index: {}]   ;;  %s7873_s22 = inlined_call_operand.hbm [shape: f32[4,16,64], index: 22, kind: input, shape index: {}]   ;;  %s7874_s23 = inlined_call_operand.vmem [shape: f32[4,64,256], index: 23, kind: input, shape index: {}]   ;;  %s7875_s24 = inlined_call_operand.vmem [shape: f32[2,16,256], index: 24, kind: output, shape index: {0}]   ;;  %s7876_s25 = inlined_call_operand.vmem [shape: f32[2,3,256], index: 25, kind: output, shape index: {1}]  }
   0x1   :  { %7944 = sst [smem:[#allocation14_spill]] %s7851_s0 }
   0x2   :  { %7945 = sst [smem:[#allocation15_spill]] %s7852_s1 }
   0x3   :  { %7946 = sst [smem:[#allocation16_spill]] %s7853_s2 }
   0x4   :  { %7947 = sst [smem:[#allocation17_spill]] %s7854_s3 }
   0x5   :  { %7948 = sst [smem:[#allocation18_spill]] %s7855_s4 }
   0x6   :  { %7949 = sst [smem:[#allocation19_spill]] %s7856_s5 }
   0x7   :  { %7950 = sst [smem:[#allocation20_spill]] %s7857_s6 }
   0x8   :  { %7951 = sst [smem:[#allocation21_spill]] %s7858_s7 }
   0x9   :  { %7952 = sst [smem:[#allocation22_spill]] %s7859_s8 }
   0xa   :  { %7953 = sst [smem:[#allocation23_spill]] %s7860_s9 }
   0xb   :  { %7954 = sst [smem:[#allocation24_spill]] %s7864_s13 }
   0xc   :  { %7955 = sst [smem:[#allocation25_spill]] %s7865_s14 }
   0xd   :  { %7956 = sst [smem:[#allocation26_spill]] %s7866_s15 }
   0xe   :  { %7957 = sst [smem:[#allocation27_spill]] %s7867_s16 }
   0xf   :  { %7958 = sst [smem:[#allocation28_spill]] %s7868_s17 }
  0x10   :  { %7959 = sst [smem:[#allocation29_spill]] %s7869_s18 }
  0x11   :  { %7960 = sst [smem:[#allocation30_spill]] %s7870_s19 }
  0x12   :  { %7961 = sst [smem:[#allocation31_spill]] %s7871_s20 }
  0x13   :  { %7962 = sst [smem:[#allocation32_spill]] %s7872_s21 }
  0x14   :  { %7963 = sst [smem:[#allocation33_spill]] %s7873_s22 }
  0x15   :  { %7964 = sst [smem:[#allocation34_spill]] %s7874_s23 }
  0x16   :  { %7965 = sst [smem:[#allocation35_spill]] %s7875_s24 }
  0x17   :  { %7966 = sst [smem:[#allocation36_spill]] %s7876_s25 }
  0x18   :  { %31 = vsyncpa [#allocation6], 0 }
  0x19   :  { %32 = vsyncpa [#allocation8], 0  ;;  %s6328_s29 = smov 0  }
  0x1a LB: > { %7967 = sst [smem:[#allocation11_spill]] %s6161_s29  ;;  %s6334_s2 = sadd.s32 4294967295, %s6161_s29   ;;  %s6161_s29 = sphi %s6328_s29, %s38_s29  }
  0x1b   : > { %p4607_p0 = scmp.ge.s32.totalorder %s6161_s29, 1  ;;  %p604_p1 = scmp.lt.s32.totalorder %s6161_s29, 3 }
  0x1c   : > { %s6163_s6 = smov [#allocation5]   ;;  %p7884_p3 = scmp.eq.s32.totalorder %s6334_s2, 0 }
  0x1d   : > { %s667_s30 = sshll.u32 %s6163_s6, 4  ;;  %p6338_p2 = pnand %p4607_p0, %p604_p1  ;;  %s668_s30 = int_to_ptr.vmem [resolvable:$true] %s667_s30 }
  0x1e   : > { %s6164_s3 = smov [#allocation7]   ;;  %s7970_s18 = sld [smem:[#allocation29_spill]] }
  0x1f   : > { %s7968_s7 = scalar_select %p6338_p2, 1, 0 }
  0x20   : > { %p5750_p4 = pneg %p6338_p2  ;;  %s689_s26 = sshll.u32 %s6164_s3, 4  ;;  %s6351_s26 = int_to_ptr.vmem [resolvable:$true] %s689_s26 }
  0x22   : > { %p6347_p5 = pnand %p7884_p3, %p5750_p4 }
  0x24   : > { %s6091_s4 = scalar_lea.hbm %s7970_s18, 256  ;;  %p6093_p7 = pneg %p6347_p5 }
  0x25   : > { %p6092_p6 = scmp.ne.s32.totalorder %s7970_s18, %s6091_s4  ;;  %p6098_p10 = scmp.lt.u32.totalorder %s6091_s4, %s7970_s18 }
  0x27   : > { %p6094_p8 = pnand %p6093_p7, %p6092_p6 }
  0x29   : > { %p6095_p9 = pneg %p6094_p8 }
  0x2b   : > { %p6100_p11 = pnand %p6098_p10, %p6095_p9 }
  0x2d   : > { %6103 = shalt.err (!%p6100_p11)
}
  0x2e   : > { %s6104_s6 = scalar_lea.vmem %s668_s30, 256  ;;  %p6112_p1 = scmp.lt.s32.totalorder %s668_s30, %s668_s30 }
  0x2f   : > { %p6105_p12 = scmp.ne.s32.totalorder %s668_s30, %s6104_s6  ;;  %p6113_p4 = scmp.lt.s32.totalorder %s6104_s6, %s6104_s6 }
  0x31   : > { %p6107_p13 = pnand %p6105_p12, %p6093_p7  ;;  %p6114_p3 = por %p6113_p4, %p6112_p1 }
  0x33   : > { %p6108_p0 = pneg %p6107_p13 }
  0x35   : > { %p6115_p2 = pnand %p6114_p3, %p6108_p0 }
  0x37   : > { %6118 = shalt.err (!%p6115_p2)
}
  0x38   : > { %s6165_s3 = smov 128   ;;  %s6166_s8 = smov 8  }
  0x39   : > { %5753 = dma.hbm_to_vmem [thread:$0]  (!%p6347_p5), %s7970_s18, 256, %s668_s30, [#allocation6], %s6165_s3, %s6165_s3, %s6166_s8  }
  0x3a   : > { %s7971_s22 = sld [smem:[#allocation33_spill]] }
  0x40   : > { %s6119_s5 = scalar_lea.hbm %s7971_s22, 1024 }
  0x41   : > { %p6120_p6 = scmp.ne.s32.totalorder %s7971_s22, %s6119_s5  ;;  %p6126_p8 = scmp.lt.u32.totalorder %s6119_s5, %s7971_s22 }
  0x43   : > { %p6122_p2 = pnand %p6120_p6, %p6093_p7 }
  0x45   : > { %p6123_p3 = pneg %p6122_p2 }
  0x47   : > { %p6128_p9 = pnand %p6126_p8, %p6123_p3 }
  0x49   : > { %6131 = shalt.err (!%p6128_p9)
}
  0x4a   : > { %s6132_s30 = scalar_lea.vmem %s6351_s26, 1024  ;;  %p6140_p13 = scmp.lt.s32.totalorder %s6351_s26, %s6351_s26 }
  0x4b   : > { %p6133_p10 = scmp.ne.s32.totalorder %s6351_s26, %s6132_s30  ;;  %p6141_p0 = scmp.lt.s32.totalorder %s6132_s30, %s6132_s30 }
  0x4d   : > { %p6135_p11 = pnand %p6133_p10, %p6093_p7  ;;  %p6142_p1 = por %p6141_p0, %p6140_p13 }
  0x4f   : > { %p6136_p12 = pneg %p6135_p11 }
  0x51   : > { %p6143_p4 = pnand %p6142_p1, %p6136_p12 }
  0x53   : > { %6146 = shalt.err (!%p6143_p4)
}
  0x54   : > { %5756 = dma.hbm_to_vmem [thread:$0]  (!%p6347_p5), %s7971_s22, 1024, %s6351_s26, [#allocation8], %s6165_s3, %s6165_s3, %s6166_s8  }
  0x55   : > { %p7972_p6 = scmp.ne.s32.totalorder %s7968_s7, 0 }
  0x57   : > { %716 = sbr.rel (%p7972_p6) target bundleno = 4276 (0x10b4), region = 116 }
  0x5e   : > { %p7973_p2 = scmp.eq.s32.totalorder %s6334_s2, 0 }
  0x60   : > { %6152 = dma.done.wait (%p7973_p2), [#allocation6], 256   ;;  %p7974_p7 = pmov %p7973_p2 }
  0x61   : > { %p7975_p3 = pmov %p7973_p2 }
  0x62   : > { %6154 = vsyncadd (%p7974_p7), [#allocation6], 4294967040 }
  0x63   : > { %6156 = dma.done.wait (%p7975_p3), [#allocation8], 1024   ;;  %p7976_p8 = pmov %p7973_p2 }
  0x64   : > { %p793_p9 = scmp.lt.s32.totalorder %s6334_s2, 1  ;;  %v832_v0 = vlaneseq  ;;  %vm810_vm0 = vcmask 138240   ;;  %v6167_v1 = vmov 0.0   ;;  %vm812_vm1 = vcmask 277640   ;;  %s7978_s3 = sld [smem:[#allocation14_spill]] }
  0x65   : > { %6158 = vsyncadd (%p7976_p8), [#allocation8], 4294966272  ;;  %811 = vst.msk [vmem:[#allocation2] sm:$0xff] %vm810_vm0, %v6167_v1  ;;  %1193 = vmatprep.mubr.f32.mxu0 %v6167_v1  ;;  %s7979_s17 = sld [smem:[#allocation28_spill]]  ;;  %s7907_s28 = smov 17   ;;  %vm824_vm2 = vcmask 1047688  }
  0x66   : > { %3885 = vst.msk [vmem:[#allocation2 + $0x18] sm:$0xff] %vm810_vm0, %v6167_v1  ;;  %s8047_s2 = smov (!%p793_p9, %s6334_s2), 1  ;;  %v833_v2 = vshrl.u32 %v832_v0, 7  ;;  %s7932_s0 = smov 1   ;;  %vm906_vm3 = vcmask 130048   ;;  %vm860_vm4 = vcmask 7168  }
  0x67   : > { %7977 = sst [smem:[#allocation12_spill]] %s8047_s2  ;;  %813 = vst.msk [vmem:[#allocation2 + $0x10] sm:$0xff] %vm812_vm1, %v6167_v1  ;;  %3887 = vst.msk [vmem:[#allocation2 + $0x28] sm:$0xff] %vm812_vm1, %v6167_v1  ;;  %s4873_s7 = sshll.u32 %s8047_s2, 4  ;;  %vm883_vm5 = vcmask 15360   ;;  %vm929_vm6 = vcmask 146432  }
  0x68   : > { %v6424_v3 = vsub.s32 0, %v833_v2  ;;  %v6429_v4 = vsub.s32 1, %v833_v2  ;;  %s7909_s25 = smov 2   ;;  %s7920_s26 = smov 16   ;;  %vm952_vm7 = vcmask 261120   ;;  %vm975_vm8 = vcmask 269312  }
  0x69   : > { %s7891_s9 = smov 32   ;;  %s7889_s30 = smov 33   ;;  %vm998_vm9 = vcmask 277504   ;;  %vm1015_vm10 = vcmask 1039360   ;;  %vm1043_vm11 = vcmask 916480   ;;  %vm1029_vm12 = vcmask 1031168  }
  0x6a   : > { %s797_s8 = scalar_lea.vmem %s7978_s3, %s4873_s7  ;;  %s7887_s29 = smov 34   ;;  %vm7911_vm13 = vcmask 900096   ;;  %vm7919_vm14 = vcmask 908288   ;;  %vm7912_vm15 = vcmask 777216  }
  0x6b   : > { %v808_v5 = vld [vmem:[%s797_s8] sm:$0xff]  ;;  %v809_v8 = vld [vmem:[%s797_s8 + $0x8] sm:$0xff]  ;;  %s7915_s8 = smov 18   ;;  %v4626_v24 = vld [vmem:[%s7979_s17 + $0x10] ss:$8 sm:$0x3] }
  0x6c   : > { %v4620_v6 = vld [vmem:[%s7979_s17 + $0x1] ss:$8 sm:$0x3]  ;;  %816 = vrot.lane.b32.xlu0 %v808_v5, %s7907_s28  ;;  %v4621_v9 = vld [vmem:[%s7979_s17 + $0x2] ss:$8 sm:$0x3]  ;;  %v989_v26 = vrot.slane %v4626_v24, %v6424_v3  ;;  %v993_v27 = vrot.slane %v4626_v24, %v6429_v4 }
  0x6d   : > { %v851_v7 = vrot.slane %v4620_v6, %v6424_v3  ;;  %v855_v10 = vrot.slane %v4620_v6, %v6429_v4  ;;  %v874_v11 = vrot.slane %v4621_v9, %v6424_v3  ;;  %v4622_v12 = vld [vmem:[%s7979_s17 + $0x3] ss:$8 sm:$0x3]  ;;  %v878_v13 = vrot.slane %v4621_v9, %v6429_v4  ;;  %v4623_v15 = vld [vmem:[%s7979_s17 + $0x5] ss:$8 sm:$0x3] }
  0x6e   : > { %v897_v14 = vrot.slane %v4622_v12, %v6424_v3  ;;  %v901_v16 = vrot.slane %v4622_v12, %v6429_v4  ;;  %v920_v17 = vrot.slane %v4623_v15, %v6424_v3  ;;  %v4624_v18 = vld [vmem:[%s7979_s17 + $0x6] ss:$8 sm:$0x3]  ;;  %v924_v19 = vrot.slane %v4623_v15, %v6429_v4  ;;  %v4625_v21 = vld [vmem:[%s7979_s17 + $0x7] ss:$8 sm:$0x3] }
  0x6f   : > { %856 = vrot.lane.b32.xlu1 %v851_v7, %s7932_s0  ;;  %v943_v20 = vrot.slane %v4624_v18, %v6424_v3  ;;  %v947_v22 = vrot.slane %v4624_v18, %v6429_v4  ;;  %v966_v23 = vrot.slane %v4625_v21, %v6424_v3  ;;  %v970_v25 = vrot.slane %v4625_v21, %v6429_v4  ;;  %s7893_s7 = smov 111   ;;  %s7899_s1 = smov 127  }
  0x70   : > { %818 = vrot.lane.b32.xlu0 %v809_v8, %s7907_s28  ;;  %s7897_s3 = smov 112   ;;  %s7895_s27 = smov 110  }
  0x71   : > { %s7901_s4 = smov 126   ;;  %s7905_s5 = smov 96  }
  0x72   : > { %s7903_s6 = smov 95   ;;  %s7980_s20 = sld [smem:[#allocation31_spill]] }
  0x73   : > { %858 = vrot.lane.b32.xlu1 %v855_v10, %s7932_s0  ;;  %s7983_s24 = sld [smem:[#allocation35_spill]]  ;;  %s7988_s28 = smov 126  }
  0x74   : > { %879 = vrot.lane.b32.xlu0 %v874_v11, %s7909_s25  ;;  %s7995_s21 = sld [smem:[#allocation32_spill]]  ;;  %s7996_s19 = sld [smem:[#allocation30_spill]] }
  0x75   : > { %s7999_s15 = smov 8   ;;  %s8001_s18 = smov 120  }
  0x76   : > { %s8003_s22 = smov 118   ;;  %s8008_s16 = smov 16  }
  0x77   : > { %881 = vrot.lane.b32.xlu1 %v878_v13, %s7909_s25  ;;  %s7989_s25 = smov 127   ;;  %s8014_s13 = smov 33  }
  0x78   : > { %902 = vrot.lane.b32.xlu0 %v897_v14, %s7920_s26 }
  0x7b   : > { %904 = vrot.lane.b32.xlu1 %v901_v16, %s7920_s26  ;;  %v1218_v16 = vld [vmem:[%s7980_s20 + $0x80] sm:$0xff] }
  0x7c   : > { %925 = vrot.lane.b32.xlu0 %v920_v17, %s7915_s8  ;;  %v1219_v17 = vld [vmem:[%s7980_s20 + $0x88] sm:$0xff] }
  0x7d   : > { %v5327_v21 = vpack.c.bf16 %v1219_v17, %v1218_v16 }
  0x7f   : > { %927 = vrot.lane.b32.xlu1 %v924_v19, %s7915_s8  ;;  %5328 = vmatprep.subr.bf16.mxu1 %v5327_v21  ;;  %s7994_s8 = sld [smem:[#allocation18_spill]] }
  0x80   : > { %948 = vrot.lane.b32.xlu0 %v943_v20, %s7891_s9  ;;  %v6183_v20 = vmov 0  }
  0x81   : > { %5839 = vset.pattern.permute.xlu1 %v6183_v20  ;;  %5840 = vset.pattern.permute.xlu0 %v6183_v20 }
  0x83   : > { %950 = vrot.lane.b32.xlu1 %v947_v22, %s7891_s9  ;;  %v1202_v22 = vld [vmem:[%s7980_s20] sm:$0xff]  ;;  %s7987_s9 = smov 17  }
  0x84   : > { %971 = vrot.lane.b32.xlu0 %v966_v23, %s7889_s30  ;;  %v1203_v23 = vld [vmem:[%s7980_s20 + $0x8] sm:$0xff] }
  0x85   : > { %v5329_v24 = vpack.c.bf16 %v1203_v23, %v1202_v22 }
  0x87   : > { %973 = vrot.lane.b32.xlu1 %v970_v25, %s7889_s30  ;;  %v1220_v25 = vld [vmem:[%s7980_s20 + $0x90] sm:$0xff]  ;;  %5330 = vmatpush3.bf16.msra.mxu1 %v5329_v24  ;;  %s7986_s30 = smov 2  }
  0x88   : > { %994 = vrot.lane.b32.xlu0 %v989_v26, %s7887_s29  ;;  %v1221_v26 = vld [vmem:[%s7980_s20 + $0x98] sm:$0xff] }
  0x8b   : > { %996 = vrot.lane.b32.xlu1 %v993_v27, %s7887_s29  ;;  %s7922_s29 = smov 10  }
  0xde   : > { %v817_v28 = vpop.permute.xlu0 %816 }
  0xdf   : > { %825 = vst.msk [vmem:[#allocation2] sm:$0xff] %vm824_vm2, %v817_v28 }
  0xe1   : > { %v857_v29 = vpop.permute.xlu1 %856 }
  0xe2   : > { %v819_v30 = vpop.permute.xlu0 %818 }
  0xe3   : > { %827 = vst.msk [vmem:[#allocation2 + $0x10] sm:$0xff] %vm810_vm0, %v819_v30  ;;  %v6493_v36 = vsel %vm810_vm0, %v817_v28, %v819_v30  ;;  %v5331_v28 = vpack.c.bf16 %v1221_v26, %v1220_v25  ;;  %v1205_v30 = vld [vmem:[%s7980_s20 + $0x18] sm:$0xff] }
  0xe5   : > { %v859_v31 = vpop.permute.xlu1 %858  ;;  %5332 = vmatprep.subr.bf16.mxu1 %v5331_v28 }
  0xe6   : > { %v6484_v32 = vld [vmem:[#allocation2] sm:$0xff]  ;;  %v880_v33 = vpop.permute.xlu0 %879  ;;  %v861_v43 = vsel %vm860_vm4, %v857_v29, %v859_v31 }
  0xe7   : > { %v865_v34 = vmul.f32 %v857_v29, %v6484_v32  ;;  %3884 = vst.msk [vmem:[#allocation2] sm:$0xff] %vm810_vm0, %v6167_v1  ;;  %1051 = vrot.lane.b32.xlu0 %v6484_v32, %s7893_s7  ;;  %v888_v44 = vmul.f32 %v880_v33, %v6484_v32  ;;  %v866_v52 = vmul.f32 %v861_v43, %v6493_v36  ;;  %v1204_v29 = vld [vmem:[%s7980_s20 + $0x10] sm:$0xff] }
  0xe8   : > { %v1224_v43 = vld [vmem:[%s7980_s20 + $0xb0] sm:$0xff] }
  0xe9   : > { %v882_v35 = vpop.permute.xlu1 %881  ;;  %1009 = vrot.lane.b32.xlu1 %v865_v34, %s7899_s1  ;;  %v1222_v34 = vld [vmem:[%s7980_s20 + $0xa0] sm:$0xff] }
  0xea   : > { %v6495_v37 = vld [vmem:[#allocation2 + $0x10] sm:$0xff]  ;;  %v903_v38 = vpop.permute.xlu0 %902  ;;  %v884_v45 = vsel %vm883_vm5, %v880_v33, %v882_v35  ;;  %v5333_v33 = vpack.c.bf16 %v1205_v30, %v1204_v29 }
  0xeb   : > { %3886 = vst.msk [vmem:[#allocation2 + $0x10] sm:$0xff] %vm812_vm1, %v6167_v1  ;;  %v911_v39 = vmul.f32 %v903_v38, %v6484_v32  ;;  %v5804_v40 = vpack.i.bf16 %v6495_v37, %v6493_v36  ;;  %v867_v47 = vmul.f32 %v859_v31, %v6495_v37  ;;  %v889_v54 = vmul.f32 %v884_v45, %v6493_v36 }
  0xec   : > { %v890_v55 = vmul.f32 %v882_v35, %v6495_v37  ;;  %v1223_v35 = vld [vmem:[%s7980_s20 + $0xa8] sm:$0xff]  ;;  %5334 = vmatpush3.bf16.msra.mxu1 %v5333_v33  ;;  %vm7918_vm1 = vcmask 785408  }
  0xed   : > { %v905_v41 = vpop.permute.xlu1 %904  ;;  %1037 = vrot.lane.b32.xlu1 %v911_v39, %s7897_s3  ;;  %5805 = vrot.lane.b32.xlu0 %v5804_v40, %s7893_s7  ;;  %v5809_v60 = vpack.i.bf16 %v867_v47, %v866_v52  ;;  %v1207_v39 = vld [vmem:[%s7980_s20 + $0x28] sm:$0xff]  ;;  %v1209_v47 = vld [vmem:[%s7980_s20 + $0x38] sm:$0xff]  ;;  %s7926_s7 = smov 119  }
  0xee   : > { %v907_v42 = vsel %vm906_vm3, %v903_v38, %v905_v41  ;;  %v926_v46 = vpop.permute.xlu0 %925  ;;  %v913_v49 = vmul.f32 %v905_v41, %v6495_v37  ;;  %v5814_v63 = vpack.i.bf16 %v890_v55, %v889_v54  ;;  %v5335_v38 = vpack.c.bf16 %v1223_v35, %v1222_v34  ;;  %v1210_v52 = vld [vmem:[%s7980_s20 + $0x40] sm:$0xff]  ;;  %v1228_v55 = vld [vmem:[%s7980_s20 + $0xd0] sm:$0xff] }
  0xef   : > { %v912_v48 = vmul.f32 %v907_v42, %v6493_v36  ;;  %v934_v50 = vmul.f32 %v926_v46, %v6484_v32 }
  0xf0   : > { %5336 = vmatprep.subr.bf16.mxu1 %v5335_v38 }
  0xf1   : > { %v928_v51 = vpop.permute.xlu1 %927  ;;  %1065 = vrot.lane.b32.xlu1 %v934_v50, %s7895_s27  ;;  %1023 = vrot.lane.b32.xlu0 %v888_v44, %s7901_s4  ;;  %v5819_v59 = vpack.i.bf16 %v913_v49, %v912_v48  ;;  %v1225_v44 = vld [vmem:[%s7980_s20 + $0xb8] sm:$0xff]  ;;  %v1226_v49 = vld [vmem:[%s7980_s20 + $0xc0] sm:$0xff] }
  0xf2   : > { %v930_v53 = vsel %vm929_vm6, %v926_v46, %v928_v51  ;;  %v949_v56 = vpop.permute.xlu0 %948  ;;  %v936_v58 = vmul.f32 %v928_v51, %v6495_v37  ;;  %v5339_v45 = vpack.c.bf16 %v1225_v44, %v1224_v43  ;;  %v1208_v46 = vld [vmem:[%s7980_s20 + $0x30] sm:$0xff]  ;;  %v1227_v50 = vld [vmem:[%s7980_s20 + $0xc8] sm:$0xff] }
  0xf3   : > { %v935_v57 = vmul.f32 %v930_v53, %v6493_v36  ;;  %v957_v9 = vmul.f32 %v949_v56, %v6484_v32  ;;  %v5341_v48 = vpack.c.bf16 %v1209_v47, %v1208_v46  ;;  %v5343_v51 = vpack.c.bf16 %v1227_v50, %v1226_v49  ;;  %v1211_v53 = vld [vmem:[%s7980_s20 + $0x48] sm:$0xff] }
  0xf4   : > { %v5345_v54 = vpack.c.bf16 %v1211_v53, %v1210_v52 }
  0xf5   : > { %v951_v61 = vpop.permute.xlu1 %950  ;;  %5820 = vrot.lane.b32.xlu1 %v5819_v59, %s7897_s3  ;;  %5810 = vrot.lane.b32.xlu0 %v5809_v60, %s7899_s1  ;;  %v5824_v62 = vpack.i.bf16 %v936_v58, %v935_v57  ;;  %s7913_s1 = smov 94   ;;  %v1212_v58 = vld [vmem:[%s7980_s20 + $0x50] sm:$0xff]  ;;  %v1213_v59 = vld [vmem:[%s7980_s20 + $0x58] sm:$0xff]  ;;  %s7982_s3 = sld [smem:[#allocation15_spill]] }
  0xf6   : > { %v953_v0 = vsel %vm952_vm7, %v949_v56, %v951_v61  ;;  %v972_v2 = vpop.permute.xlu0 %971  ;;  %v959_v11 = vmul.f32 %v951_v61, %v6495_v37  ;;  %v1229_v56 = vld [vmem:[%s7980_s20 + $0xd8] sm:$0xff]  ;;  %v5349_v60 = vpack.c.bf16 %v1213_v59, %v1212_v58  ;;  %v1230_v61 = vld [vmem:[%s7980_s20 + $0xe0] sm:$0xff] }
  0xf7   : > { %v958_v10 = vmul.f32 %v953_v0, %v6493_v36  ;;  %v980_v18 = vmul.f32 %v972_v2, %v6484_v32  ;;  %v5347_v57 = vpack.c.bf16 %v1229_v56, %v1228_v55  ;;  %v1214_v0 = vld [vmem:[%s7980_s20 + $0x60] sm:$0xff] }
  0xf9   : > { %v974_v5 = vpop.permute.xlu1 %973  ;;  %5825 = vrot.lane.b32.xlu1 %v5824_v62, %s7895_s27  ;;  %5815 = vrot.lane.b32.xlu0 %v5814_v63, %s7901_s4  ;;  %v5829_v15 = vpack.i.bf16 %v959_v11, %v958_v10  ;;  %v1231_v62 = vld [vmem:[%s7980_s20 + $0xe8] sm:$0xff]  ;;  %s7930_s27 = smov 9   ;;  %s8004_s4 = sld [smem:[#allocation20_spill]] }
  0xfa   : > { %v976_v6 = vsel %vm975_vm8, %v972_v2, %v974_v5  ;;  %v982_v7 = vmul.f32 %v974_v5, %v6495_v37  ;;  %v995_v14 = vpop.permute.xlu0 %994  ;;  %v5351_v63 = vpack.c.bf16 %v1231_v62, %v1230_v61  ;;  %v1215_v2 = vld [vmem:[%s7980_s20 + $0x68] sm:$0xff] }
  0xfb   : > { %v981_v8 = vmul.f32 %v976_v6, %v6493_v36  ;;  %v1003_v40 = vmul.f32 %v995_v14, %v6484_v32  ;;  %v5353_v5 = vpack.c.bf16 %v1215_v2, %v1214_v0  ;;  %v830_v10 = vld [vmem:[%s7979_s17] ss:$8 sm:$0x3]  ;;  %s8020_s17 = sld [smem:[#allocation25_spill]] }
  0xfc   : > { %v4645_v0 = vld [vmem:[%s7980_s20 + $0x188] sm:$0xff] }
  0xfd   : > { %v5834_v12 = vpack.i.bf16 %v982_v7, %v981_v8  ;;  %v997_v13 = vpop.permute.xlu1 %996  ;;  %1079 = vrot.lane.b32.xlu0 %v957_v9, %s7905_s5 }
  0xfe   : > { %v999_v19 = vsel %vm998_vm9, %v995_v14, %v997_v13  ;;  %v1005_v31 = vmul.f32 %v997_v13, %v6495_v37  ;;  %v1206_v37 = vld [vmem:[%s7980_s20 + $0x20] sm:$0xff]  ;;  %v839_v13 = vrot.slane %v830_v10, %v6429_v4  ;;  %v835_v14 = vrot.slane %v830_v10, %v6424_v3 }
  0xff   : > { %5835 = vrot.lane.b32.xlu1 %v5834_v12, %s7903_s6  ;;  %v1004_v27 = vmul.f32 %v999_v19, %v6493_v36  ;;  %v5337_v42 = vpack.c.bf16 %v1207_v39, %v1206_v37 }
 0x100   : > { %v843_v19 = vmul.f32 %v839_v13, %v6493_v36  ;;  %v842_v22 = vmul.f32 %v835_v14, %v6484_v32 }
 0x101   : > { %5830 = vrot.lane.b32.xlu0 %v5829_v15, %s7905_s5  ;;  %s7981_s5 = sld [smem:[#allocation16_spill]]  ;;  %5338 = vmatpush3.bf16.msra.mxu1 %v5337_v42 }
 0x102   : > { %5340 = vmatprep.subr.bf16.mxu1 %v5339_v45 }
 0x103   : > { %1093 = vrot.lane.b32.xlu1 %v980_v18, %s7903_s6  ;;  %s7928_s6 = smov 120  }
 0x105   : > { %1109 = vrot.lane.b32.xlu0 %v1004_v27, %s7913_s1  ;;  %5342 = vmatpush3.bf16.msra.mxu1 %v5341_v48 }
 0x106   : > { %5344 = vmatprep.subr.bf16.mxu1 %v5343_v51 }
 0x107   : > { %1111 = vrot.lane.b32.xlu1 %v1005_v31, %s7913_s1  ;;  %v1119_v41 = vld [vmem:[%s7981_s5] sm:$0xff]  ;;  %s4874_s5 = sshll.u32 %s8047_s2, 5 }
 0x109   : > { %1107 = vrot.lane.b32.xlu0 %v1003_v40, %s7913_s1  ;;  %5346 = vmatpush3.bf16.msra.mxu1 %v5345_v54  ;;  %s6796_s1 = scalar_lea.vmem %s7983_s24, %s4874_s5  ;;  %s7985_s5 = smov 18  }
 0x10a   : > { %5348 = vmatprep.subr.bf16.mxu1 %v5347_v57  ;;  %7984 = sst [smem:[#allocation13_spill]] %s6796_s1  ;;  %s7997_s24 = smov 1  }
 0x10b   : > { %1122 = vperm.xlu1 %5839, %v1119_v41  }
 0x10d   : > { %5350 = vmatpush3.bf16.msra.mxu1 %v5349_v60 }
 0x10e   : > { %5352 = vmatprep.subr.bf16.mxu1 %v5351_v63  ;;  %v4644_v63 = vld [vmem:[%s7980_s20 + $0x180] sm:$0xff] }
 0x10f   : > { %v5359_v10 = vpack.c.bf16 %v4645_v0, %v4644_v63  ;;  %v4709_v0 = vld [vmem:[%s7980_s20 + $0x388] sm:$0xff] }
 0x111   : > { %5354 = vmatpush3.bf16.msra.mxu1 %v5353_v5  ;;  %v4628_v5 = vld [vmem:[%s7980_s20 + $0x100] sm:$0xff] }
 0x159   : > { %v1052_v6 = vpop.permute.xlu0 %1051 }
 0x15b   : > { %v1010_v7 = vpop.permute.xlu1 %1009 }
 0x15f   : > { %v1038_v8 = vpop.permute.xlu1 %1037  ;;  %v5806_v9 = vpop.permute.xlu0 %5805 }
 0x160   : > { %v5808_v25 = vunpack.i.h.bf16 %v5806_v9  ;;  %v5807_v26 = vunpack.i.l.bf16 %v5806_v9 }
 0x162   : > { %v1059_v44 = vsel %vm7919_vm14, %v5807_v26, %v5808_v25  ;;  %v1058_v50 = vsel %vm7919_vm14, %v1052_v6, %v5807_v26  ;;  %v4629_v6 = vld [vmem:[%s7980_s20 + $0x108] sm:$0xff]  ;;  %vm1624_vm14 = vcmask 597064  }
 0x163   : > { %v1066_v11 = vpop.permute.xlu1 %1065  ;;  %v1024_v12 = vpop.permute.xlu0 %1023  ;;  %v5361_v13 = vpack.c.bf16 %v4629_v6, %v4628_v5 }
 0x167   : > { %v5821_v15 = vpop.permute.xlu1 %5820  ;;  %v5811_v16 = vpop.permute.xlu0 %5810 }
 0x168   : > { %v5813_v17 = vunpack.i.h.bf16 %v5811_v16  ;;  %v5812_v18 = vunpack.i.l.bf16 %v5811_v16  ;;  %v5823_v20 = vunpack.i.h.bf16 %v5821_v15  ;;  %v5822_v21 = vunpack.i.l.bf16 %v5821_v15  ;;  %v4630_v15 = vld [vmem:[%s7980_s20 + $0x110] sm:$0xff]  ;;  %v4631_v16 = vld [vmem:[%s7980_s20 + $0x118] sm:$0xff] }
 0x16a   : > { %v1017_v23 = vsel %vm1015_vm10, %v5812_v18, %v5813_v17  ;;  %v1016_v24 = vsel %vm1015_vm10, %v1010_v7, %v5812_v18  ;;  %v1045_v32 = vsel %vm1043_vm11, %v5822_v21, %v5823_v20  ;;  %v1044_v37 = vsel %vm1043_vm11, %v1038_v8, %v5822_v21  ;;  %v4646_v7 = vld [vmem:[%s7980_s20 + $0x190] sm:$0xff]  ;;  %v4647_v8 = vld [vmem:[%s7980_s20 + $0x198] sm:$0xff]  ;;  %v4648_v17 = vld [vmem:[%s7980_s20 + $0x1a0] sm:$0xff] }
 0x16b   : > { %v5826_v27 = vpop.permute.xlu1 %5825  ;;  %v5816_v28 = vpop.permute.xlu0 %5815  ;;  %v5311_v29 = vpack.c.bf16 %v1017_v23, %v843_v19  ;;  %v5313_v30 = vpack.c.bf16 %v1016_v24, %v842_v22  ;;  %v5363_v14 = vpack.c.bf16 %v4647_v8, %v4646_v7  ;;  %v4649_v18 = vld [vmem:[%s7980_s20 + $0x1a8] sm:$0xff]  ;;  %v5365_v19 = vpack.c.bf16 %v4631_v16, %v4630_v15  ;;  %v4632_v21 = vld [vmem:[%s7980_s20 + $0x120] sm:$0xff]  ;;  %v4650_v23 = vld [vmem:[%s7980_s20 + $0x1b0] sm:$0xff] }
 0x16c   : > { %v5828_v31 = vunpack.i.h.bf16 %v5826_v27  ;;  %v5827_v33 = vunpack.i.l.bf16 %v5826_v27  ;;  %v5818_v36 = vunpack.i.h.bf16 %v5816_v28  ;;  %v5817_v34 = vunpack.i.l.bf16 %v5816_v28  ;;  %v4633_v22 = vld [vmem:[%s7980_s20 + $0x128] sm:$0xff]  ;;  %v4651_v24 = vld [vmem:[%s7980_s20 + $0x1b8] sm:$0xff]  ;;  %v4634_v27 = vld [vmem:[%s7980_s20 + $0x130] sm:$0xff] }
 0x16d   : > { %5312 = vmatprep.subr.bf16.mxu0 %v5311_v29  ;;  %v5367_v20 = vpack.c.bf16 %v4649_v18, %v4648_v17  ;;  %v5369_v25 = vpack.c.bf16 %v4633_v22, %v4632_v21  ;;  %v5371_v26 = vpack.c.bf16 %v4651_v24, %v4650_v23  ;;  %v4635_v28 = vld [vmem:[%s7980_s20 + $0x138] sm:$0xff]  ;;  %v4652_v29 = vld [vmem:[%s7980_s20 + $0x1c0] sm:$0xff]  ;;  %v4710_v17 = vld [vmem:[%s7980_s20 + $0x390] sm:$0xff] }
 0x16e   : > { %5314 = vmatpush1.bf16.msra.mxu0 %v5313_v30  ;;  %v1031_v35 = vsel %vm1029_vm12, %v5817_v34, %v5818_v36  ;;  %v1030_v38 = vsel %vm1029_vm12, %v1024_v12, %v5817_v34  ;;  %v1073_v39 = vsel %vm7911_vm13, %v5827_v33, %v5828_v31  ;;  %v1072_v46 = vsel %vm7911_vm13, %v1066_v11, %v5827_v33  ;;  %v1118_v12 = vld [vmem:[%s7982_s3] sm:$0xff]  ;;  %v4653_v30 = vld [vmem:[%s7980_s20 + $0x1c8] sm:$0xff]  ;;  %v4679_v16 = vld [vmem:[%s7980_s20 + $0x298] sm:$0xff]  ;;  %s7924_s3 = smov 8  }
 0x16f   : > { %v1080_v40 = vpop.permute.xlu0 %1079  ;;  %v5315_v41 = vpack.c.bf16 %v1045_v32, %v1031_v35  ;;  %v5317_v42 = vpack.c.bf16 %v1044_v37, %v1030_v38  ;;  %v5319_v45 = vpack.c.bf16 %v1073_v39, %v1059_v44  ;;  %v5321_v54 = vpack.c.bf16 %v1072_v46, %v1058_v50  ;;  %v4636_v36 = vld [vmem:[%s7980_s20 + $0x140] sm:$0xff]  ;;  %v4637_v34 = vld [vmem:[%s7980_s20 + $0x148] sm:$0xff]  ;;  %v4654_v32 = vld [vmem:[%s7980_s20 + $0x1d0] sm:$0xff] }
 0x170   : > { %vm7917_vm13 = vcmask 769024   ;;  %v5373_v31 = vpack.c.bf16 %v4635_v28, %v4634_v27  ;;  %v5375_v33 = vpack.c.bf16 %v4653_v30, %v4652_v29  ;;  %v4655_v35 = vld [vmem:[%s7980_s20 + $0x1d8] sm:$0xff]  ;;  %v5377_v38 = vpack.c.bf16 %v4637_v34, %v4636_v36  ;;  %v4638_v39 = vld [vmem:[%s7980_s20 + $0x150] sm:$0xff]  ;;  %v4641_v46 = vld [vmem:[%s7980_s20 + $0x168] sm:$0xff] }
 0x171   : > { %v5836_v43 = vpop.permute.xlu1 %5835  ;;  %5316 = vmatprep.subr.bf16.mxu0 %v5315_v41  ;;  %v5379_v37 = vpack.c.bf16 %v4655_v35, %v4654_v32  ;;  %v4656_v41 = vld [vmem:[%s7980_s20 + $0x1e0] sm:$0xff]  ;;  %v4658_v50 = vld [vmem:[%s7980_s20 + $0x1f0] sm:$0xff]  ;;  %v4711_v18 = vld [vmem:[%s7980_s20 + $0x398] sm:$0xff] }
 0x172   : > { %v5838_v47 = vunpack.i.h.bf16 %v5836_v43  ;;  %v5837_v48 = vunpack.i.l.bf16 %v5836_v43  ;;  %5318 = vmatpush1.bf16.msra.mxu0 %v5317_v42  ;;  %v4657_v42 = vld [vmem:[%s7980_s20 + $0x1e8] sm:$0xff]  ;;  %v4660_v7 = vld [vmem:[%s7980_s20 + $0x200] sm:$0xff]  ;;  %v4662_v22 = vld [vmem:[%s7980_s20 + $0x210] sm:$0xff]  ;;  %v5427_v28 = vpack.c.bf16 %v4711_v18, %v4710_v17 }
 0x173   : > { %v5831_v49 = vpop.permute.xlu0 %5830  ;;  %5320 = vmatprep.subr.bf16.mxu0 %v5319_v45  ;;  %v5383_v44 = vpack.c.bf16 %v4657_v42, %v4656_v41  ;;  %v4640_v45 = vld [vmem:[%s7980_s20 + $0x160] sm:$0xff]  ;;  %v4663_v23 = vld [vmem:[%s7980_s20 + $0x218] sm:$0xff]  ;;  %v4694_v24 = vld [vmem:[%s7980_s20 + $0x310] sm:$0xff] }
 0x174   : > { %v5833_v52 = vunpack.i.h.bf16 %v5831_v49  ;;  %v5832_v53 = vunpack.i.l.bf16 %v5831_v49  ;;  %v1101_v57 = vsel %vm7912_vm15, %v5837_v48, %v5838_v47  ;;  %v5385_v47 = vpack.c.bf16 %v4641_v46, %v4640_v45  ;;  %v1233_v49 = vld [vmem:[%s7980_s20 + $0xf8] sm:$0xff]  ;;  %v4681_v29 = vld [vmem:[%s7980_s20 + $0x2a8] sm:$0xff]  ;;  %v4712_v30 = vld [vmem:[%s7980_s20 + $0x3a0] sm:$0xff] }
 0x175   : > { %v1094_v51 = vpop.permute.xlu1 %1093  ;;  %v4664_v34 = vld [vmem:[%s7980_s20 + $0x220] sm:$0xff]  ;;  %v4665_v32 = vld [vmem:[%s7980_s20 + $0x228] sm:$0xff]  ;;  %v4683_v41 = vld [vmem:[%s7980_s20 + $0x2b8] sm:$0xff] }
 0x176   : > { %v1100_v55 = vsel %vm7912_vm15, %v1094_v51, %v5837_v48  ;;  %5322 = vmatpush1.bf16.msra.mxu0 %v5321_v54  ;;  %v1087_v56 = vsel %vm7918_vm1, %v5832_v53, %v5833_v52  ;;  %v1086_v58 = vsel %vm7918_vm1, %v1080_v40, %v5832_v53  ;;  %vm1125_vm15 = vcmask 588800   ;;  %v4639_v40 = vld [vmem:[%s7980_s20 + $0x158] sm:$0xff]  ;;  %v1232_v48 = vld [vmem:[%s7980_s20 + $0xf0] sm:$0xff]  ;;  %v4689_v17 = vld [vmem:[%s7980_s20 + $0x2e8] sm:$0xff] }
 0x177   : > { %v1110_v59 = vpop.permute.xlu0 %1109  ;;  %v5323_v60 = vpack.c.bf16 %v1101_v57, %v1087_v56  ;;  %v5325_v61 = vpack.c.bf16 %v1100_v55, %v1086_v58  ;;  %v5381_v43 = vpack.c.bf16 %v4639_v40, %v4638_v39  ;;  %v5355_v51 = vpack.c.bf16 %v1233_v49, %v1232_v48  ;;  %v4659_v52 = vld [vmem:[%s7980_s20 + $0x1f8] sm:$0xff]  ;;  %v1216_v53 = vld [vmem:[%s7980_s20 + $0x70] sm:$0xff]  ;;  %v4697_v39 = vld [vmem:[%s7980_s20 + $0x328] sm:$0xff] }
 0x178   : > { %v1217_v54 = vld [vmem:[%s7980_s20 + $0x78] sm:$0xff]  ;;  %v5387_v55 = vpack.c.bf16 %v4659_v52, %v4658_v50  ;;  %v4642_v57 = vld [vmem:[%s7980_s20 + $0x170] sm:$0xff]  ;;  %v4684_v52 = vld [vmem:[%s7980_s20 + $0x2c0] sm:$0xff]  ;;  %vm1618_vm1 = vcmask 671304  }
 0x179   : > { %v1112_v62 = vpop.permute.xlu1 %1111  ;;  %5324 = vmatprep.subr.bf16.mxu0 %v5323_v60  ;;  %v5357_v56 = vpack.c.bf16 %v1217_v54, %v1216_v53  ;;  %v4643_v58 = vld [vmem:[%s7980_s20 + $0x178] sm:$0xff]  ;;  %5356 = vmatprep.subr.bf16.mxu1 %v5355_v51  ;;  %v4676_v60 = vld [vmem:[%s7980_s20 + $0x280] sm:$0xff]  ;;  %v4682_v40 = vld [vmem:[%s7980_s20 + $0x2b0] sm:$0xff] }
 0x17a   : > { %v1115_v2 = vsel %vm7917_vm13, %v1110_v59, %v1112_v62  ;;  %5326 = vmatpush1.bf16.msra.mxu0 %v5325_v61  ;;  %v4677_v61 = vld [vmem:[%s7980_s20 + $0x288] sm:$0xff]  ;;  %v4708_v62 = vld [vmem:[%s7980_s20 + $0x380] sm:$0xff]  ;;  %v4714_v42 = vld [vmem:[%s7980_s20 + $0x3b0] sm:$0xff]  ;;  %v5403_v48 = vpack.c.bf16 %v4683_v41, %v4682_v40 }
 0x17b   : > { %v1108_v9 = vpop.permute.xlu0 %1107  ;;  %1145 = vmatprep.subr.mxu0 %v1115_v2  ;;  %5358 = vmatpush3.bf16.msra.mxu1 %v5357_v56  ;;  %v5391_v63 = vpack.c.bf16 %v4677_v61, %v4676_v60  ;;  %v5423_v2 = vpack.c.bf16 %v4709_v0, %v4708_v62  ;;  %v4666_v46 = vld [vmem:[%s7980_s20 + $0x230] sm:$0xff]  ;;  %v4699_v51 = vld [vmem:[%s7980_s20 + $0x338] sm:$0xff]  ;;  %v4685_v53 = vld [vmem:[%s7980_s20 + $0x2c8] sm:$0xff] }
 0x17c   : > { %v1114_v11 = vsel %vm7917_vm13, %v1108_v9, %v1110_v59  ;;  %v5389_v59 = vpack.c.bf16 %v4643_v58, %v4642_v57  ;;  %v4698_v50 = vld [vmem:[%s7980_s20 + $0x330] sm:$0xff]  ;;  %v4716_v54 = vld [vmem:[%s7980_s20 + $0x3c0] sm:$0xff]  ;;  %v5407_v60 = vpack.c.bf16 %v4685_v53, %v4684_v52  ;;  %vm1616_vm13 = vcmask 72704  }
 0x17d   : > { %5392 = vmatprep.subr.bf16.mxu1 %v5391_v63  ;;  %v5437_v57 = vpack.c.bf16 %v4699_v51, %v4698_v50  ;;  %v4668_v58 = vld [vmem:[%s7980_s20 + $0x240] sm:$0xff]  ;;  %v4701_v63 = vld [vmem:[%s7980_s20 + $0x348] sm:$0xff]  ;;  %v4686_v0 = vld [vmem:[%s7980_s20 + $0x2d0] sm:$0xff]  ;;  %1617 = vst.msk [vmem:[#allocation3] sm:$0xff] %vm1616_vm13, %v6167_v1 }
 0x17e   : > { %1146 = vmatpush1.msra.mxu0 %v1114_v11  ;;  %v4692_v11 = vld [vmem:[%s7980_s20 + $0x300] sm:$0xff]  ;;  %2971 = vst.msk [vmem:[#allocation3 + $0x8] sm:$0xff] %vm1616_vm13, %v6167_v1  ;;  %2972 = vst.msk [vmem:[#allocation3 + $0x10] sm:$0xff] %vm1616_vm13, %v6167_v1 }
 0x17f   : > { %4627 = vmatmul.mubr.msk.f32.vlgmr.msra.gmra.mrb[0].mxu0 %vm1125_vm15, %v1118_v12  ;;  %5360 = vmatprep.subr.bf16.mxu0 %v5359_v10  ;;  %v4661_v10 = vld [vmem:[%s7980_s20 + $0x208] sm:$0xff]  ;;  %v4700_v62 = vld [vmem:[%s7980_s20 + $0x340] sm:$0xff]  ;;  %2973 = vst.msk [vmem:[#allocation3 + $0x18] sm:$0xff] %vm1616_vm13, %v6167_v1 }
 0x180   : > { %5362 = vmatpush3.bf16.msra.mxu0 %v5361_v13  ;;  %v4693_v12 = vld [vmem:[%s7980_s20 + $0x308] sm:$0xff]  ;;  %v4720_v18 = vld [vmem:[%s7980_s20 + $0x3e0] sm:$0xff]  ;;  %1619 = vst.msk [vmem:[#allocation3] sm:$0xff] %vm1618_vm1, %v6167_v1  ;;  %2975 = vst.msk [vmem:[#allocation3 + $0x8] sm:$0xff] %vm1618_vm1, %v6167_v1 }
 0x181   : > { %5364 = vmatprep.subr.bf16.mxu0 %v5363_v14  ;;  %v4678_v14 = vld [vmem:[%s7980_s20 + $0x290] sm:$0xff]  ;;  %v5425_v21 = vpack.c.bf16 %v4693_v12, %v4692_v11  ;;  %2976 = vst.msk [vmem:[#allocation3 + $0x10] sm:$0xff] %vm1618_vm1, %v6167_v1  ;;  %2977 = vst.msk [vmem:[#allocation3 + $0x18] sm:$0xff] %vm1618_vm1, %v6167_v1 }
 0x182   : > { %v5395_v27 = vpack.c.bf16 %v4679_v16, %v4678_v14  ;;  %v4703_v14 = vld [vmem:[%s7980_s20 + $0x358] sm:$0xff]  ;;  %v4688_v16 = vld [vmem:[%s7980_s20 + $0x2e0] sm:$0xff] }
 0x184   : > { %5366 = vmatpush3.bf16.msra.mxu0 %v5365_v19 }
 0x185   : > { %5368 = vmatprep.subr.bf16.mxu0 %v5367_v20  ;;  %v5393_v20 = vpack.c.bf16 %v4661_v10, %v4660_v7  ;;  %v4671_v10 = vld [vmem:[%s7980_s20 + $0x258] sm:$0xff] }
 0x188   : > { %5370 = vmatpush3.bf16.msra.mxu0 %v5369_v25  ;;  %v4695_v25 = vld [vmem:[%s7980_s20 + $0x318] sm:$0xff] }
 0x189   : > { %5372 = vmatprep.subr.bf16.mxu0 %v5371_v26  ;;  %v4680_v26 = vld [vmem:[%s7980_s20 + $0x2a0] sm:$0xff]  ;;  %v5429_v36 = vpack.c.bf16 %v4695_v25, %v4694_v24  ;;  %v5415_v24 = vpack.c.bf16 %v4689_v17, %v4688_v16 }
 0x18a   : > { %v1123_v5 = vpop.permute.xlu1 %1122  ;;  %v5399_v35 = vpack.c.bf16 %v4681_v29, %v4680_v26  ;;  %v4704_v26 = vld [vmem:[%s7980_s20 + $0x360] sm:$0xff]  ;;  %v4691_v29 = vld [vmem:[%s7980_s20 + $0x2f8] sm:$0xff] }
 0x18c   : > { %5374 = vmatpush3.bf16.msra.mxu0 %v5373_v31  ;;  %v4713_v31 = vld [vmem:[%s7980_s20 + $0x3a8] sm:$0xff] }
 0x18d   : > { %5376 = vmatprep.subr.bf16.mxu0 %v5375_v33  ;;  %v5397_v33 = vpack.c.bf16 %v4663_v23, %v4662_v22  ;;  %v4672_v22 = vld [vmem:[%s7980_s20 + $0x260] sm:$0xff]  ;;  %v4673_v23 = vld [vmem:[%s7980_s20 + $0x268] sm:$0xff] }
 0x190   : > { %5378 = vmatpush3.bf16.msra.mxu0 %v5377_v38  ;;  %v5431_v38 = vpack.c.bf16 %v4713_v31, %v4712_v30  ;;  %v4722_v30 = vld [vmem:[%s7980_s20 + $0x3f0] sm:$0xff]  ;;  %v4723_v31 = vld [vmem:[%s7980_s20 + $0x3f8] sm:$0xff] }
 0x191   : > { %5380 = vmatprep.subr.bf16.mxu0 %v5379_v37  ;;  %v4696_v37 = vld [vmem:[%s7980_s20 + $0x320] sm:$0xff] }
 0x192   : > { %v5433_v45 = vpack.c.bf16 %v4697_v39, %v4696_v37  ;;  %v4706_v37 = vld [vmem:[%s7980_s20 + $0x370] sm:$0xff]  ;;  %v4707_v39 = vld [vmem:[%s7980_s20 + $0x378] sm:$0xff] }
 0x193   : > { %v5453_v41 = vpack.c.bf16 %v4707_v39, %v4706_v37 }
 0x194   : > { %5382 = vmatpush3.bf16.msra.mxu0 %v5381_v43  ;;  %v4715_v43 = vld [vmem:[%s7980_s20 + $0x3b8] sm:$0xff] }
 0x195   : > { %5384 = vmatprep.subr.bf16.mxu0 %v5383_v44  ;;  %v5401_v44 = vpack.c.bf16 %v4665_v32, %v4664_v34  ;;  %v5435_v49 = vpack.c.bf16 %v4715_v43, %v4714_v42  ;;  %v4674_v34 = vld [vmem:[%s7980_s20 + $0x270] sm:$0xff]  ;;  %v6972_v42 = vld [vmem:[#allocation5 + $0x1] ss:$0 sm:$0xff]  ;;  %v6976_v43 = vld [vmem:[#allocation5 + $0x3] ss:$0 sm:$0xff] }
 0x196   : > { %1639 = vrot.lane.b32.xlu1 %v6972_v42, %s7932_s0  ;;  %s6191_s0 = smov 5  }
 0x198   : > { %5386 = vmatpush3.bf16.msra.mxu0 %v5385_v47  ;;  %v4667_v47 = vld [vmem:[%s7980_s20 + $0x238] sm:$0xff] }
 0x199   : > { %5388 = vmatprep.subr.bf16.mxu0 %v5387_v55  ;;  %v4717_v55 = vld [vmem:[%s7980_s20 + $0x3c8] sm:$0xff]  ;;  %v5405_v56 = vpack.c.bf16 %v4667_v47, %v4666_v46 }
 0x19a   : > { %v5439_v61 = vpack.c.bf16 %v4717_v55, %v4716_v54  ;;  %1659 = vrot.lane.b32.xlu1 %v6976_v43, %s7924_s3  ;;  %s7934_s3 = smov 118  }
 0x19c   : > { %5390 = vmatpush3.bf16.msra.mxu0 %v5389_v59  ;;  %v4669_v59 = vld [vmem:[%s7980_s20 + $0x248] sm:$0xff] }
 0x19d   : > { %5424 = vmatprep.subr.bf16.mxu0 %v5423_v2  ;;  %v4687_v2 = vld [vmem:[%s7980_s20 + $0x2d8] sm:$0xff]  ;;  %v5409_v7 = vpack.c.bf16 %v4669_v59, %v4668_v58 }
 0x19e   : > { %v5411_v11 = vpack.c.bf16 %v4687_v2, %v4686_v0 }
 0x252   : > { %v1195_v6 = vpop.f32.mrb[0].mxu0 }
 0x253   : > { %v1196_v8 = vadd.f32 %v1195_v6, %v1123_v5  ;;  %v1197_v9 = vpop.f32.mrb[1].mxu0  ;;  %v4719_v6 = vld [vmem:[%s7980_s20 + $0x3d8] sm:$0xff] }
 0x254   : > { %v1198_v13 = vadd.f32 %v1197_v9, %v1123_v5  ;;  %v4718_v5 = vld [vmem:[%s7980_s20 + $0x3d0] sm:$0xff] }
 0x255   : > { %v6798_v15 = vmax.f32 %v1196_v8, 0.0  ;;  %v5441_v8 = vpack.c.bf16 %v4701_v63, %v4700_v62  ;;  %v4670_v9 = vld [vmem:[%s7980_s20 + $0x250] sm:$0xff]  ;;  %v5443_v12 = vpack.c.bf16 %v4719_v6, %v4718_v5  ;;  %v7013_v62 = vld [vmem:[#allocation5 + $0x7] ss:$0 sm:$0xff]  ;;  %v1640_v63 = vpop.permute.xlu1 %1639 }
 0x256   : > { %v1201_v19 = vmax.f32 %v1198_v13, 0.0  ;;  %v4702_v13 = vld [vmem:[%s7980_s20 + $0x350] sm:$0xff] }
 0x257   : > { %3882 = vst [vmem:[%s6796_s1 + $0x10] sm:$0xff] %v6798_v15 }
 0x258   : > { %1298 = vmatprep.mubr.f32.mxu1 %v1201_v19  ;;  %1401 = vmatprep.mubr.f32.mxu0 %v1201_v19  ;;  %3883 = vst [vmem:[%s6796_s1 + $0x18] sm:$0xff] %v1201_v19  ;;  %s8005_s1 = sld [smem:[#allocation19_spill]] }
 0x259   : > { %1299 = vmatmul.mubr.f32.vlgmr.msra.gmra.mrb[0].mxu1 %v6798_v15  ;;  %1402 = vmatmul.mubr.f32.vlgmr.msra.gmra.mrb[2].mxu0 %v6798_v15  ;;  %v1660_v2 = vpop.permute.xlu1 %1659 }
 0x25a   : > { %5394 = vmatpush3.bf16.msra.mxu1 %v5393_v20  ;;  %5426 = vmatpush3.bf16.msra.mxu0 %v5425_v21  ;;  %v5413_v20 = vpack.c.bf16 %v4671_v10, %v4670_v9  ;;  %v5445_v21 = vpack.c.bf16 %v4703_v14, %v4702_v13 }
 0x25b   : > { %1505 = vmatprep.mubr.f32.mxu1 %v1201_v19  ;;  %1609 = vmatprep.mubr.f32.mxu0 %v1201_v19  ;;  %v4721_v19 = vld [vmem:[%s7980_s20 + $0x3e8] sm:$0xff] }
 0x25c   : > { %5396 = vmatprep.subr.bf16.mxu1 %v5395_v27  ;;  %5428 = vmatprep.subr.bf16.mxu0 %v5427_v28  ;;  %v5447_v25 = vpack.c.bf16 %v4721_v19, %v4720_v18  ;;  %v4705_v27 = vld [vmem:[%s7980_s20 + $0x368] sm:$0xff]  ;;  %v4690_v28 = vld [vmem:[%s7980_s20 + $0x2f0] sm:$0xff] }
 0x25d   : > { %v5419_v32 = vpack.c.bf16 %v4691_v29, %v4690_v28  ;;  %v1836_v28 = vld [vmem:[%s7995_s21 + $0x20] sm:$0xff]  ;;  %v1837_v29 = vld [vmem:[%s7995_s21 + $0x28] sm:$0xff] }
 0x25e   : > { %5398 = vmatpush3.bf16.msra.mxu1 %v5397_v33  ;;  %5430 = vmatpush3.bf16.msra.mxu0 %v5429_v36  ;;  %v5417_v33 = vpack.c.bf16 %v4673_v23, %v4672_v22  ;;  %v5449_v36 = vpack.c.bf16 %v4705_v27, %v4704_v26  ;;  %v1832_v22 = vld [vmem:[%s7995_s21] sm:$0xff]  ;;  %v1833_v23 = vld [vmem:[%s7995_s21 + $0x8] sm:$0xff]  ;;  %v1835_v26 = vld [vmem:[%s7995_s21 + $0x18] sm:$0xff] }
 0x25f   : > { %5400 = vmatprep.subr.bf16.mxu1 %v5399_v35  ;;  %5432 = vmatprep.subr.bf16.mxu0 %v5431_v38  ;;  %v5451_v35 = vpack.c.bf16 %v4723_v31, %v4722_v30  ;;  %v4675_v38 = vld [vmem:[%s7980_s20 + $0x278] sm:$0xff]  ;;  %v5479_v30 = vpack.c.bf16 %v1837_v29, %v1836_v28  ;;  %v7058_v31 = vld [vmem:[#allocation5] ss:$0 sm:$0xff]  ;;  %v4751_v28 = vld [vmem:[%s7995_s21 + $0xa8] sm:$0xff]  ;;  %s8002_s20 = smov 119  }
 0x260   : > { %v5421_v40 = vpack.c.bf16 %v4675_v38, %v4674_v34  ;;  %v4760_v29 = vld [vmem:[%s7995_s21 + $0xe0] sm:$0xff] }
 0x262   : > { %5402 = vmatpush3.bf16.msra.mxu1 %v5401_v44  ;;  %5434 = vmatpush3.bf16.msra.mxu0 %v5433_v45  ;;  %v6980_v44 = vld [vmem:[#allocation5 + $0x6] ss:$0 sm:$0xff]  ;;  %v6984_v45 = vld [vmem:[#allocation5 + $0x8] ss:$0 sm:$0xff] }
 0x263   : > { %5404 = vmatprep.subr.bf16.mxu1 %v5403_v48  ;;  %5436 = vmatprep.subr.bf16.mxu0 %v5435_v49 }
 0x264   : > { %1679 = vrot.lane.b32.xlu1 %v6980_v44, %s7920_s26  ;;  %s7990_s26 = sld [smem:[#allocation17_spill]] }
 0x266   : > { %5406 = vmatpush3.bf16.msra.mxu1 %v5405_v56  ;;  %5438 = vmatpush3.bf16.msra.mxu0 %v5437_v57 }
 0x267   : > { %5408 = vmatprep.subr.bf16.mxu1 %v5407_v60  ;;  %5440 = vmatprep.subr.bf16.mxu0 %v5439_v61  ;;  %v7005_v60 = vld [vmem:[#allocation5 + $0x2] ss:$0 sm:$0xff]  ;;  %v7009_v61 = vld [vmem:[#allocation5 + $0x5] ss:$0 sm:$0xff] }
 0x268   : > { %1699 = vrot.lane.b32.xlu1 %v6984_v45, %s7985_s5 }
 0x26a   : > { %5410 = vmatpush3.bf16.msra.mxu1 %v5409_v7  ;;  %5442 = vmatpush3.bf16.msra.mxu0 %v5441_v8  ;;  %v1735_v13 = vld [vmem:[%s7990_s26] sm:$0xff] }
 0x26b   : > { %5412 = vmatprep.subr.bf16.mxu1 %v5411_v11  ;;  %5444 = vmatprep.subr.bf16.mxu0 %v5443_v12 }
 0x26e   : > { %5414 = vmatpush3.bf16.msra.mxu1 %v5413_v20  ;;  %5446 = vmatpush3.bf16.msra.mxu0 %v5445_v21  ;;  %v1738_v20 = vld [vmem:[%s7994_s8 + $0x8] sm:$0xff]  ;;  %v1737_v21 = vld [vmem:[%s7994_s8] sm:$0xff]  ;;  %s8013_s8 = smov 32  }
 0x26f   : > { %5416 = vmatprep.subr.bf16.mxu1 %v5415_v24  ;;  %5448 = vmatprep.subr.bf16.mxu0 %v5447_v25  ;;  %v5471_v24 = vpack.c.bf16 %v1833_v23, %v1832_v22  ;;  %v1834_v25 = vld [vmem:[%s7995_s21 + $0x10] sm:$0xff]  ;;  %v4759_v22 = vld [vmem:[%s7995_s21 + $0xd8] sm:$0xff] }
 0x270   : > { %v5475_v27 = vpack.c.bf16 %v1835_v26, %v1834_v25  ;;  %v4750_v25 = vld [vmem:[%s7995_s21 + $0xa0] sm:$0xff] }
 0x272   : > { %5418 = vmatpush3.bf16.msra.mxu1 %v5417_v33  ;;  %5450 = vmatpush3.bf16.msra.mxu0 %v5449_v36 }
 0x273   : > { %5420 = vmatprep.subr.bf16.mxu1 %v5419_v32  ;;  %5452 = vmatprep.subr.bf16.mxu0 %v5451_v35 }
 0x276   : > { %5422 = vmatpush3.bf16.msra.mxu1 %v5421_v40  ;;  %5454 = vmatpush3.bf16.msra.mxu0 %v5453_v41 }
 0x277   : > { %5472 = vmatprep.subr.bf16.mxu0 %v5471_v24 }
 0x279   : > { %1506 = vmatmul.mubr.f32.vlgmr.msra.gmra.mrb[2].mxu1 %v6798_v15  ;;  %1610 = vmatmul.mubr.f32.vlgmr.msra.gmra.mrb[4].mxu0 %v6798_v15 }
 0x27a   : > { %5163 = vmatprep.mubr.msk.f32.mxu1 %vm1125_vm15, %v1735_v13  ;;  %5474 = vmatpush3.bf16.msra.mxu0 %v5471_v24 }
 0x27b   : > { %5476 = vmatprep.subr.bf16.mxu0 %v5475_v27 }
 0x27e   : > { %5478 = vmatpush3.bf16.msra.mxu0 %v5475_v27 }
 0x27f   : > { %5480 = vmatprep.subr.bf16.mxu0 %v5479_v30 }
 0x282   : > { %5482 = vmatpush3.bf16.msra.mxu0 %v5479_v30  ;;  %v4761_v30 = vld [vmem:[%s7995_s21 + $0xe8] sm:$0xff] }
 0x2d6   : > { %v1680_v9 = vpop.permute.xlu1 %1679 }
 0x2da   : > { %v1700_v14 = vpop.permute.xlu1 %1699 }
 0x32c   : > { %v4908_v15 = vpop.f32.mrb[0].mxu1  ;;  %v4943_v46 = vpop.f32.mrb[2].mxu0 }
 0x32d   : > { %v4909_v47 = vpop.f32.mrb[1].mxu1  ;;  %v4944_v48 = vpop.f32.mrb[3].mxu0 }
 0x32e   : > { %v4910_v49 = vadd.f32 %v4909_v47, %v4908_v15  ;;  %v4945_v50 = vadd.f32 %v4944_v48, %v4943_v46  ;;  %v4736_v47 = vld [vmem:[%s7995_s21 + $0x40] sm:$0xff]  ;;  %v4737_v48 = vld [vmem:[%s7995_s21 + $0x48] sm:$0xff] }
 0x330   : > { %v1407_v51 = vmax.f32 %v4910_v49, %v4945_v50  ;;  %v4738_v50 = vld [vmem:[%s7995_s21 + $0x50] sm:$0xff] }
 0x34c   : > { %v4978_v52 = vpop.f32.mrb[2].mxu1  ;;  %v5013_v53 = vpop.f32.mrb[4].mxu0 }
 0x34d   : > { %v4979_v54 = vpop.f32.mrb[3].mxu1  ;;  %v5014_v55 = vpop.f32.mrb[5].mxu0 }
 0x34e   : > { %v4980_v56 = vadd.f32 %v4979_v54, %v4978_v52  ;;  %v5015_v57 = vadd.f32 %v5014_v55, %v5013_v53  ;;  %v5487_v52 = vpack.c.bf16 %v4737_v48, %v4736_v47  ;;  %v1736_v53 = vld [vmem:[%s7990_s26 + $0x8] sm:$0xff]  ;;  %v4740_v55 = vld [vmem:[%s7995_s21 + $0x60] sm:$0xff]  ;;  %s6195_s26 = smov 123  }
 0x350   : > { %v1511_v58 = vmax.f32 %v1407_v51, %v4980_v56  ;;  %v4739_v51 = vld [vmem:[%s7995_s21 + $0x58] sm:$0xff]  ;;  %v4741_v56 = vld [vmem:[%s7995_s21 + $0x68] sm:$0xff] }
 0x351   : > { %v5491_v54 = vpack.c.bf16 %v4739_v51, %v4738_v50 }
 0x352   : > { %v1615_v59 = vmax.f32 %v1511_v58, %v5015_v57  ;;  %v5495_v57 = vpack.c.bf16 %v4741_v56, %v4740_v55  ;;  %v1838_v58 = vld [vmem:[%s7995_s21 + $0x30] sm:$0xff] }
 0x354   : > { %1621 = vrot.lane.b32.xlu0 %v1615_v59, %s7930_s27  ;;  %v1839_v59 = vld [vmem:[%s7995_s21 + $0x38] sm:$0xff]  ;;  %s6194_s27 = smov 4  }
 0x358   : > { %1649 = vrot.lane.b32.xlu0 %v7005_v60, %s7986_s30 }
 0x35c   : > { %1669 = vrot.lane.b32.xlu0 %v7009_v61, %s7922_s29  ;;  %s7991_s29 = smov 112  }
 0x360   : > { %1689 = vrot.lane.b32.xlu0 %v7013_v62, %s7987_s9 }
 0x3c6   : > { %v1622_v0 = vpop.permute.xlu0 %1621 }
 0x3c7   : > { %1625 = vst.msk [vmem:[#allocation3] sm:$0xff] %vm1624_vm14, %v1622_v0  ;;  %v5483_v0 = vpack.c.bf16 %v1839_v59, %v1838_v58  ;;  %v4768_v58 = vld [vmem:[%s7996_s19 + $0x2] ss:$0 sm:$0xff]  ;;  %v4767_v59 = vld [vmem:[%s7996_s19 + $0x1] ss:$0 sm:$0xff] }
 0x3c9   : > { %5484 = vmatprep.subr.bf16.mxu0 %v5483_v0 }
 0x3ca   : > { %v1650_v5 = vpop.permute.xlu0 %1649  ;;  %5486 = vmatpush3.bf16.msra.mxu0 %v5483_v0  ;;  %v4769_v0 = vld [vmem:[%s7996_s19 + $0x3] ss:$0 sm:$0xff] }
 0x3ce   : > { %v1626_v6 = vld [vmem:[#allocation3] sm:$0xff]  ;;  %v1670_v10 = vpop.permute.xlu0 %1669 }
 0x3cf   : > { %2970 = vst.msk [vmem:[#allocation3] sm:$0xff] %vm1616_vm13, %v6167_v1  ;;  %v1652_v7 = vmul.f32 %v1650_v5, %v1626_v6  ;;  %v1642_v8 = vmul.f32 %v1640_v63, %v1626_v6  ;;  %v1662_v11 = vmul.f32 %v1660_v2, %v1626_v6  ;;  %v1682_v12 = vmul.f32 %v1680_v9, %v1626_v6  ;;  %v4742_v63 = vld [vmem:[%s7995_s21 + $0x70] sm:$0xff]  ;;  %v4743_v2 = vld [vmem:[%s7995_s21 + $0x78] sm:$0xff] }
 0x3d0   : > { %2974 = vst.msk [vmem:[#allocation3] sm:$0xff] %vm1618_vm1, %v6167_v1  ;;  %v1672_v16 = vmul.f32 %v1670_v10, %v1626_v6  ;;  %v1702_v18 = vmul.f32 %v1700_v14, %v1626_v6  ;;  %v1632_v36 = vmul.f32 %v7058_v31, %v1626_v6  ;;  %v5499_v5 = vpack.c.bf16 %v4743_v2, %v4742_v63  ;;  %v4757_v10 = vld [vmem:[%s7995_s21 + $0xc8] sm:$0xff]  ;;  %v4770_v63 = vld [vmem:[%s7996_s19 + $0x5] ss:$0 sm:$0xff]  ;;  %v4772_v2 = vld [vmem:[%s7996_s19 + $0x7] ss:$0 sm:$0xff] }
 0x3d1   : > { %1708 = vrot.lane.b32.xlu1 %v1652_v7, %s7988_s28  ;;  %1704 = vrot.lane.b32.xlu0 %v1642_v8, %s7989_s25  ;;  %v4747_v7 = vld [vmem:[%s7995_s21 + $0x88] sm:$0xff]  ;;  %v4756_v8 = vld [vmem:[%s7995_s21 + $0xc0] sm:$0xff]  ;;  %vm1840_vm13 = vcmask 523264   ;;  %vm2183_vm1 = vcmask 212136  }
 0x3d2   : > { %v1690_v17 = vpop.permute.xlu0 %1689 }
 0x3d3   : > { %v1692_v19 = vmul.f32 %v1690_v17, %v1626_v6 }
 0x3d5   : > { %1716 = vrot.lane.b32.xlu1 %v1626_v6, %s7926_s7  ;;  %1712 = vrot.lane.b32.xlu0 %v1662_v11, %s7928_s6  ;;  %s7992_s7 = smov 110   ;;  %s7993_s6 = smov 111   ;;  %v4746_v6 = vld [vmem:[%s7995_s21 + $0x80] sm:$0xff]  ;;  %v5519_v11 = vpack.c.bf16 %v4757_v10, %v4756_v8 }
 0x3d6   : > { %v5503_v9 = vpack.c.bf16 %v4747_v7, %v4746_v6  ;;  %v4773_v6 = vld [vmem:[%s7996_s19 + $0x8] ss:$0 sm:$0xff] }
 0x3d8   : > { %5504 = vmatprep.subr.bf16.mxu0 %v5503_v9 }
 0x3d9   : > { %1724 = vrot.lane.b32.xlu1 %v1682_v12, %s7991_s29  ;;  %1720 = vrot.lane.b32.xlu0 %v1672_v16, %s7934_s3  ;;  %s8000_s3 = smov 10  }
 0x3dd   : > { %1732 = vrot.lane.b32.xlu1 %v1702_v18, %s7992_s7  ;;  %1728 = vrot.lane.b32.xlu0 %v1692_v19, %s7993_s6  ;;  %v4748_v19 = vld [vmem:[%s7995_s21 + $0x90] sm:$0xff] }
 0x3e1   : > { %1746 = vperm.xlu1 %5839, %v1738_v20   ;;  %1741 = vperm.xlu0 %5840, %v1737_v21   ;;  %v4749_v20 = vld [vmem:[%s7995_s21 + $0x98] sm:$0xff]  ;;  %v4758_v21 = vld [vmem:[%s7995_s21 + $0xd0] sm:$0xff] }
 0x3e2   : > { %v5507_v26 = vpack.c.bf16 %v4749_v20, %v4748_v19  ;;  %v5523_v27 = vpack.c.bf16 %v4759_v22, %v4758_v21 }
 0x443   : > { %v1709_v33 = vpop.permute.xlu1 %1708  ;;  %v1705_v34 = vpop.permute.xlu0 %1704 }
 0x444   : > { %v5455_v32 = vpack.c.bf16 %v1705_v34, %v1632_v36  ;;  %v5527_v36 = vpack.c.bf16 %v4761_v30, %v4760_v29  ;;  %v4752_v34 = vld [vmem:[%s7995_s21 + $0xb0] sm:$0xff] }
 0x446   : > { %5456 = vmatprep.subr.bf16.mxu1 %v5455_v32 }
 0x447   : > { %v1717_v35 = vpop.permute.xlu1 %1716  ;;  %5458 = vmatpush3.bf16.msra.mxu1 %v5455_v32  ;;  %v1713_v38 = vpop.permute.xlu0 %1712  ;;  %v4753_v32 = vld [vmem:[%s7995_s21 + $0xb8] sm:$0xff] }
 0x448   : > { %v5459_v37 = vpack.c.bf16 %v1713_v38, %v1709_v33  ;;  %v5511_v33 = vpack.c.bf16 %v4751_v28, %v4750_v25  ;;  %v4763_v38 = vld [vmem:[%s7995_s21 + $0xf8] sm:$0xff] }
 0x44a   : > { %5460 = vmatprep.subr.bf16.mxu1 %v5459_v37 }
 0x44b   : > { %5462 = vmatpush3.bf16.msra.mxu1 %v5459_v37  ;;  %v1721_v39 = vpop.permute.xlu0 %1720  ;;  %v1725_v41 = vpop.permute.xlu1 %1724  ;;  %v5515_v37 = vpack.c.bf16 %v4753_v32, %v4752_v34 }
 0x44c   : > { %v5463_v40 = vpack.c.bf16 %v1721_v39, %v1717_v35  ;;  %v4762_v35 = vld [vmem:[%s7995_s21 + $0xf0] sm:$0xff]  ;;  %s7998_s21 = smov 9  }
 0x44d   : > { %v5531_v39 = vpack.c.bf16 %v4763_v38, %v4762_v35 }
 0x44e   : > { %5464 = vmatprep.subr.bf16.mxu1 %v5463_v40 }
 0x44f   : > { %5466 = vmatpush3.bf16.msra.mxu1 %v5463_v40  ;;  %v1729_v15 = vpop.permute.xlu0 %1728  ;;  %v1733_v49 = vpop.permute.xlu1 %1732 }
 0x450   : > { %v5467_v46 = vpack.c.bf16 %v1729_v15, %v1725_v41 }
 0x452   : > { %5468 = vmatprep.subr.bf16.mxu1 %v5467_v46 }
 0x453   : > { %5470 = vmatpush3.bf16.msra.mxu1 %v5467_v46 }
 0x454   : > { %5161 = vmatprep.subr.mxu1 %v1733_v49 }
 0x457   : > { %5162 = vmatpush3.msra.mxu1 %v1733_v49 }
 0x458   : > { %5164 = vmatmul.mubr.msk.f32.vlgmr.msra.gmra.mrb[4].mxu1 %vm1125_vm15, %v1736_v53  ;;  %5488 = vmatprep.subr.bf16.mxu1 %v5487_v52  ;;  %vm2180_vm15 = vcmask 39936  }
 0x459   : > { %5490 = vmatpush3.bf16.msra.mxu1 %v5487_v52  ;;  %2182 = vst.msk [vmem:[#allocation4 + $0x8] sm:$0xff] %vm2180_vm15, %v6167_v1  ;;  %2181 = vst.msk [vmem:[#allocation4] sm:$0xff] %vm2180_vm15, %v6167_v1  ;;  %vm2194_vm15 = vcmask 171048  }
 0x45a   : > { %5492 = vmatprep.subr.bf16.mxu1 %v5491_v54  ;;  %2185 = vst.msk [vmem:[#allocation4 + $0x8] sm:$0xff] %vm2183_vm1, %v6167_v1  ;;  %2184 = vst.msk [vmem:[#allocation4] sm:$0xff] %vm2183_vm1, %v6167_v1 }
 0x45d   : > { %5494 = vmatpush3.bf16.msra.mxu1 %v5491_v54 }
 0x45e   : > { %5496 = vmatprep.subr.bf16.mxu1 %v5495_v57 }
 0x460   : > { %v1742_v12 = vpop.permute.xlu0 %1741  ;;  %v1747_v13 = vpop.permute.xlu1 %1746 }
 0x461   : > { %5498 = vmatpush3.bf16.msra.mxu1 %v5495_v57  ;;  %v6192_v57 = vmov 0.0|0.0  }
 0x462   : > { %5500 = vmatprep.subr.bf16.mxu1 %v5499_v5 }
 0x465   : > { %5502 = vmatpush3.bf16.msra.mxu1 %v5499_v5  ;;  %v4771_v5 = vld [vmem:[%s7996_s19 + $0x6] ss:$0 sm:$0xff] }
 0x466   : > { %5520 = vmatprep.subr.bf16.mxu1 %v5519_v11 }
 0x52b   : > { %v5165_v14 = vpop.f32.mrb[4].mxu1 }
 0x52c   : > { %v1827_v16 = vadd.f32 %v5165_v14, %v1747_v13  ;;  %v1821_v17 = vpop.f32.mrb[5].mxu1 }
 0x52d   : > { %v1822_v18 = vadd.f32 %v1821_v17, %v1742_v12 }
 0x52e   : > { %v7121_v24 = vmax.f32 %v1827_v16, 0.0 }
 0x52f   : > { %v7119_v23 = vmax.f32 %v1822_v18, 0.0 }
 0x531   : > { %5182 = vmatprep.mubr.msk.f32.mxu0 %vm1840_vm13, %v7119_v23  ;;  %5201 = vmatprep.mubr.msk.f32.mxu1 %vm1840_vm13, %v7119_v23 }
 0x532   : > { %5183 = vmatmul.mubr.msk.f32.vlgmr.msra.gmra.mrb[6].mxu0 %vm1840_vm13, %v7121_v24  ;;  %5202 = vmatmul.mubr.msk.f32.vlgmr.msra.gmra.mrb[6].mxu1 %vm1840_vm13, %v7121_v24 }
 0x533   : > { %5506 = vmatpush3.bf16.msra.mxu0 %v5503_v9  ;;  %5522 = vmatpush3.bf16.msra.mxu1 %v5519_v11  ;;  %v4766_v11 = vld [vmem:[%s7996_s19] ss:$0 sm:$0xff]  ;;  %s8011_s19 = sld [smem:[#allocation13_spill]] }
 0x534   : > { %5220 = vmatprep.mubr.msk.f32.mxu0 %vm1840_vm13, %v7119_v23  ;;  %5239 = vmatprep.mubr.msk.f32.mxu1 %vm1840_vm13, %v7119_v23 }
 0x535   : > { %5508 = vmatprep.subr.bf16.mxu0 %v5507_v26  ;;  %5524 = vmatprep.subr.bf16.mxu1 %v5523_v27 }
 0x537   : > { %5510 = vmatpush3.bf16.msra.mxu0 %v5507_v26  ;;  %5526 = vmatpush3.bf16.msra.mxu1 %v5523_v27 }
 0x538   : > { %5512 = vmatprep.subr.bf16.mxu0 %v5511_v33  ;;  %5528 = vmatprep.subr.bf16.mxu1 %v5527_v36 }
 0x53b   : > { %5514 = vmatpush3.bf16.msra.mxu0 %v5511_v33  ;;  %5530 = vmatpush3.bf16.msra.mxu1 %v5527_v36 }
 0x53c   : > { %5516 = vmatprep.subr.bf16.mxu0 %v5515_v37  ;;  %5532 = vmatprep.subr.bf16.mxu1 %v5531_v39 }
 0x53f   : > { %5518 = vmatpush3.bf16.msra.mxu0 %v5515_v37  ;;  %5534 = vmatpush3.bf16.msra.mxu1 %v5531_v39 }
 0x540   : > { %5535 = vmatprep.subr.bf16.mxu0 %v6192_v57 }
 0x542   : > { %5221 = vmatmul.mubr.msk.f32.vlgmr.msra.gmra.mrb[8].mxu0 %vm1840_vm13, %v7121_v24  ;;  %5240 = vmatmul.mubr.msk.f32.vlgmr.msra.gmra.mrb[8].mxu1 %vm1840_vm13, %v7121_v24 }
 0x605   : > { %v5184_v40 = vpop.f32.mrb[6].mxu0  ;;  %v5203_v41 = vpop.f32.mrb[6].mxu1 }
 0x606   : > { %v2007_v15 = vmax.f32 %v5184_v40, %v5203_v41  ;;  %v1913_v46 = vpop.f32.mrb[7].mxu0  ;;  %v1997_v47 = vpop.f32.mrb[7].mxu1 }
 0x607   : > { %v2006_v48 = vmax.f32 %v1913_v46, %v1997_v47 }
 0x615   : > { %v5222_v49 = vpop.f32.mrb[8].mxu0  ;;  %v5241_v50 = vpop.f32.mrb[8].mxu1 }
 0x616   : > { %v2093_v51 = vmax.f32 %v2007_v15, %v5222_v49  ;;  %v2083_v52 = vpop.f32.mrb[9].mxu0  ;;  %v2169_v53 = vpop.f32.mrb[9].mxu1 }
 0x617   : > { %v2092_v54 = vmax.f32 %v2006_v48, %v2083_v52  ;;  %v2356_v52 = vld [vmem:[%s8004_s4 + $0x8] sm:$0xff] }
 0x618   : > { %v2179_v55 = vmax.f32 %v2093_v51, %v5241_v50  ;;  %v2355_v51 = vld [vmem:[%s8004_s4] sm:$0xff] }
 0x619   : > { %v2178_v56 = vmax.f32 %v2092_v54, %v2169_v53  ;;  %v2357_v53 = vld [vmem:[%s8004_s4 + $0x10] sm:$0xff]  ;;  %v2358_v54 = vld [vmem:[%s8004_s4 + $0x18] sm:$0xff] }
 0x61a   : > { %2190 = vrot.lane.b32.xlu0 %v2179_v55, %s6191_s0  ;;  %v2348_v55 = vld [vmem:[%s8005_s1 + $0x8] sm:$0xff] }
 0x61b   : > { %2188 = vrot.lane.b32.xlu1 %v2178_v56, %s6191_s0  ;;  %s6193_s0 = smov 6   ;;  %4774 = vmatprep.mubr.msk.f32.mxu0 %vm906_vm3, %v2348_v55 }
 0x61e   : > { %2223 = vrot.lane.b32.xlu0 %v4768_v58, %s7986_s30 }
 0x61f   : > { %2212 = vrot.lane.b32.xlu1 %v4767_v59, %s7997_s24 }
 0x622   : > { %2245 = vrot.lane.b32.xlu0 %v4770_v63, %s6193_s0  ;;  %s6196_s0 = smov 124  }
 0x623   : > { %2234 = vrot.lane.b32.xlu1 %v4769_v0, %s6194_s27  ;;  %s6197_s27 = smov 122  }
 0x626   : > { %2267 = vrot.lane.b32.xlu0 %v4772_v2, %s7998_s21 }
 0x627   : > { %2256 = vrot.lane.b32.xlu1 %v4771_v5, %s7999_s15 }
 0x62b   : > { %2278 = vrot.lane.b32.xlu1 %v4773_v6, %s8000_s3 }
 0x68c   : > { %v2191_v7 = vpop.permute.xlu0 %2190 }
 0x68d   : > { %2196 = vst.msk [vmem:[#allocation4 + $0x8] sm:$0xff] %vm2194_vm15, %v2191_v7  ;;  %v2189_v8 = vpop.permute.xlu1 %2188 }
 0x68e   : > { %2195 = vst.msk [vmem:[#allocation4] sm:$0xff] %vm2194_vm15, %v2189_v8 }
 0x690   : > { %v2224_v9 = vpop.permute.xlu0 %2223 }
 0x691   : > { %v2213_v10 = vpop.permute.xlu1 %2212 }
 0x694   : > { %v2198_v12 = vld [vmem:[#allocation4 + $0x8] sm:$0xff]  ;;  %v2246_v21 = vpop.permute.xlu0 %2245 }
 0x695   : > { %v2197_v13 = vld [vmem:[#allocation4] sm:$0xff]  ;;  %v2227_v14 = vmul.f32 %v2224_v9, %v2198_v12  ;;  %v2216_v16 = vmul.f32 %v2213_v10, %v2198_v12  ;;  %v2235_v17 = vpop.permute.xlu1 %2234  ;;  %v2205_v18 = vmul.f32 %v4766_v11, %v2198_v12  ;;  %v2249_v36 = vmul.f32 %v2246_v21, %v2198_v12 }
 0x696   : > { %v2226_v19 = vmul.f32 %v2224_v9, %v2197_v13  ;;  %v2215_v20 = vmul.f32 %v2213_v10, %v2197_v13  ;;  %v2204_v22 = vmul.f32 %v4766_v11, %v2197_v13  ;;  %v2237_v27 = vmul.f32 %v2235_v17, %v2197_v13 }
 0x697   : > { %v2238_v28 = vmul.f32 %v2235_v17, %v2198_v12  ;;  %v2248_v33 = vmul.f32 %v2246_v21, %v2197_v13  ;;  %v5856_v37 = vpack.i.bf16 %v2198_v12, %v2197_v13 }
 0x698   : > { %v5846_v25 = vpack.i.bf16 %v2227_v14, %v2226_v19  ;;  %v5841_v26 = vpack.i.bf16 %v2216_v16, %v2215_v20  ;;  %v5536_v30 = vpack.c.bf16 %v2205_v18, %v2204_v22  ;;  %v2268_v32 = vpop.permute.xlu0 %2267 }
 0x699   : > { %v2257_v29 = vpop.permute.xlu1 %2256  ;;  %v5851_v34 = vpack.i.bf16 %v2238_v28, %v2237_v27  ;;  %v5861_v40 = vpack.i.bf16 %v2249_v36, %v2248_v33  ;;  %v2270_v41 = vmul.f32 %v2268_v32, %v2197_v13  ;;  %v2271_v15 = vmul.f32 %v2268_v32, %v2198_v12 }
 0x69a   : > { %5847 = vrot.lane.b32.xlu1 %v5846_v25, %s7988_s28  ;;  %5842 = vrot.lane.b32.xlu0 %v5841_v26, %s7989_s25  ;;  %v2259_v35 = vmul.f32 %v2257_v29, %v2197_v13  ;;  %v2260_v38 = vmul.f32 %v2257_v29, %v2198_v12 }
 0x69b   : > { %5537 = vmatpush1.bf16.msra.mxu0 %v5536_v30  ;;  %v5871_v49 = vpack.i.bf16 %v2271_v15, %v2270_v41  ;;  %v2354_v41 = vld [vmem:[%s8005_s1 + $0x38] sm:$0xff]  ;;  %v2353_v15 = vld [vmem:[%s8005_s1 + $0x30] sm:$0xff] }
 0x69c   : > { %5538 = vmatprep.subr.bf16.mxu0 %v6192_v57  ;;  %v5866_v46 = vpack.i.bf16 %v2260_v38, %v2259_v35  ;;  %v2347_v38 = vld [vmem:[%s8005_s1] sm:$0xff] }
 0x69d   : > { %v2279_v39 = vpop.permute.xlu1 %2278 }
 0x69e   : > { %5857 = vrot.lane.b32.xlu1 %v5856_v37, %s6195_s26  ;;  %5852 = vrot.lane.b32.xlu0 %v5851_v34, %s6196_s0  ;;  %v2281_v47 = vmul.f32 %v2279_v39, %v2197_v13  ;;  %v2282_v48 = vmul.f32 %v2279_v39, %v2198_v12  ;;  %s8006_s26 = sld [smem:[#allocation22_spill]]  ;;  %v2350_v37 = vld [vmem:[%s8005_s1 + $0x18] sm:$0xff]  ;;  %v2349_v39 = vld [vmem:[%s8005_s1 + $0x10] sm:$0xff]  ;;  %s8010_s0 = sld [smem:[#allocation34_spill]] }
 0x6a0   : > { %v5876_v50 = vpack.i.bf16 %v2282_v48, %v2281_v47 }
 0x6a2   : > { %5862 = vrot.lane.b32.xlu0 %v5861_v40, %s6197_s27  ;;  %5867 = vrot.lane.b32.xlu1 %v5866_v46, %s8001_s18  ;;  %v2351_v40 = vld [vmem:[%s8005_s1 + $0x20] sm:$0xff]  ;;  %s8007_s27 = sld [smem:[#allocation21_spill]] }
 0x6a4   : > { %v2956_v56 = vld [vmem:[%s8006_s26] sm:$0xff]  ;;  %v2957_v58 = vld [vmem:[%s8006_s26 + $0x8] sm:$0xff] }
 0x6a6   : > { %5872 = vrot.lane.b32.xlu0 %v5871_v49, %s8002_s20  ;;  %5877 = vrot.lane.b32.xlu1 %v5876_v50, %s8003_s22 }
 0x6a8   : > { %v2480_v46 = vld [vmem:[%s8007_s27] sm:$0xff] }
 0x6a9   : > { %5250 = vmatprep.mubr.msk.f32.mxu1 %vm952_vm7, %v2480_v46 }
 0x6aa   : > { %2361 = vperm.xlu0 %5840, %v2355_v51   ;;  %2366 = vperm.xlu1 %5839, %v2356_v52  }
 0x6ae   : > { %2371 = vperm.xlu0 %5840, %v2357_v53   ;;  %2376 = vperm.xlu1 %5839, %v2358_v54  }
 0x6b2   : > { %2960 = vperm.xlu0 %5840, %v2956_v56   ;;  %2965 = vperm.xlu1 %5839, %v2957_v58  }
 0x70c   : > { %v5843_v59 = vpop.permute.xlu0 %5842  ;;  %v5848_v63 = vpop.permute.xlu1 %5847 }
 0x70d   : > { %v5845_v0 = vunpack.i.h.bf16 %v5843_v59  ;;  %v5844_v2 = vunpack.i.l.bf16 %v5843_v59  ;;  %v5850_v6 = vunpack.i.h.bf16 %v5848_v63  ;;  %v5849_v7 = vunpack.i.l.bf16 %v5848_v63 }
 0x70f   : > { %v5539_v5 = vpack.c.bf16 %v5845_v0, %v5844_v2  ;;  %v5542_v9 = vpack.c.bf16 %v5850_v6, %v5849_v7 }
 0x710   : > { %v5853_v8 = vpop.permute.xlu0 %5852  ;;  %v5858_v12 = vpop.permute.xlu1 %5857 }
 0x711   : > { %5540 = vmatpush1.bf16.msra.mxu0 %v5539_v5  ;;  %v5855_v10 = vunpack.i.h.bf16 %v5853_v8  ;;  %v5854_v11 = vunpack.i.l.bf16 %v5853_v8  ;;  %v5860_v14 = vunpack.i.h.bf16 %v5858_v12  ;;  %v5859_v16 = vunpack.i.l.bf16 %v5858_v12 }
 0x712   : > { %5541 = vmatprep.subr.bf16.mxu0 %v6192_v57 }
 0x713   : > { %v5545_v13 = vpack.c.bf16 %v5855_v10, %v5854_v11  ;;  %v5548_v18 = vpack.c.bf16 %v5860_v14, %v5859_v16  ;;  %v2621_v10 = vld [vmem:[#allocation7 + $0x18] sm:$0xff] }
 0x714   : > { %v5863_v17 = vpop.permute.xlu0 %5862  ;;  %v5868_v21 = vpop.permute.xlu1 %5867  ;;  %v2481_v16 = vld [vmem:[%s8007_s27 + $0x8] sm:$0xff] }
 0x715   : > { %5543 = vmatpush1.bf16.msra.mxu0 %v5542_v9  ;;  %v5865_v19 = vunpack.i.h.bf16 %v5863_v17  ;;  %v5864_v20 = vunpack.i.l.bf16 %v5863_v17  ;;  %v5870_v25 = vunpack.i.h.bf16 %v5868_v21  ;;  %v5869_v26 = vunpack.i.l.bf16 %v5868_v21  ;;  %v2620_v9 = vld [vmem:[#allocation7 + $0x10] sm:$0xff]  ;;  %v2482_v17 = vld [vmem:[%s8007_s27 + $0x10] sm:$0xff] }
 0x716   : > { %5544 = vmatprep.subr.bf16.mxu0 %v6192_v57  ;;  %v5570_v14 = vpack.c.bf16 %v2621_v10, %v2620_v9  ;;  %v2486_v21 = vld [vmem:[%s8007_s27 + $0x30] sm:$0xff] }
 0x717   : > { %v5551_v22 = vpack.c.bf16 %v5865_v19, %v5864_v20  ;;  %v5554_v28 = vpack.c.bf16 %v5870_v25, %v5869_v26  ;;  %v2484_v19 = vld [vmem:[%s8007_s27 + $0x20] sm:$0xff]  ;;  %v2485_v20 = vld [vmem:[%s8007_s27 + $0x28] sm:$0xff]  ;;  %v2617_v25 = vld [vmem:[#allocation7] sm:$0xff] }
 0x718   : > { %v5873_v27 = vpop.permute.xlu0 %5872  ;;  %v5878_v33 = vpop.permute.xlu1 %5877  ;;  %v2618_v26 = vld [vmem:[#allocation7 + $0x8] sm:$0xff] }
 0x719   : > { %5546 = vmatpush1.bf16.msra.mxu0 %v5545_v13  ;;  %v5875_v29 = vunpack.i.h.bf16 %v5873_v27  ;;  %v5874_v30 = vunpack.i.l.bf16 %v5873_v27  ;;  %v5880_v34 = vunpack.i.h.bf16 %v5878_v33  ;;  %v5879_v32 = vunpack.i.l.bf16 %v5878_v33  ;;  %v2786_v33 = vld [vmem:[#allocation7 + $0x28] sm:$0xff] }
 0x71a   : > { %5547 = vmatprep.subr.bf16.mxu0 %v6192_v57  ;;  %v5574_v27 = vpack.c.bf16 %v2618_v26, %v2617_v25 }
 0x71b   : > { %v5557_v36 = vpack.c.bf16 %v5875_v29, %v5874_v30  ;;  %v5560_v35 = vpack.c.bf16 %v5880_v34, %v5879_v32  ;;  %v2785_v30 = vld [vmem:[#allocation7 + $0x20] sm:$0xff] }
 0x71c   : > { %v5578_v32 = vpack.c.bf16 %v2786_v33, %v2785_v30 }
 0x71d   : > { %5549 = vmatpush1.bf16.msra.mxu0 %v5548_v18  ;;  %v2483_v18 = vld [vmem:[%s8007_s27 + $0x18] sm:$0xff] }
 0x71e   : > { %5550 = vmatprep.subr.bf16.mxu0 %v6192_v57 }
 0x721   : > { %5552 = vmatpush1.bf16.msra.mxu0 %v5551_v22  ;;  %v2487_v22 = vld [vmem:[%s8007_s27 + $0x38] sm:$0xff] }
 0x722   : > { %5553 = vmatprep.subr.bf16.mxu0 %v6192_v57 }
 0x725   : > { %5555 = vmatpush1.bf16.msra.mxu0 %v5554_v28 }
 0x726   : > { %5556 = vmatprep.subr.bf16.mxu0 %v6192_v57 }
 0x729   : > { %5558 = vmatpush1.bf16.msra.mxu0 %v5557_v36  ;;  %v2362_v49 = vpop.permute.xlu0 %2361  ;;  %v2367_v51 = vpop.permute.xlu1 %2366 }
 0x72a   : > { %5559 = vmatprep.subr.bf16.mxu0 %v6192_v57  ;;  %v2352_v57 = vld [vmem:[%s8005_s1 + $0x28] sm:$0xff] }
 0x72d   : > { %5561 = vmatpush1.bf16.msra.mxu0 %v5560_v35  ;;  %v2372_v0 = vpop.permute.xlu0 %2371  ;;  %v2377_v5 = vpop.permute.xlu1 %2376 }
 0x730   : > { %2456 = vmatmul.mubr.f32.vlgmr.msra.gmra.mrb[10].mxu0 %v2347_v38 }
 0x731   : > { %4775 = vmatprep.mubr.msk.f32.mxu0 %vm906_vm3, %v2350_v37  ;;  %v2871_v37 = vld [vmem:[#allocation7 + $0x30] sm:$0xff] }
 0x734   : > { %2461 = vmatmul.mubr.f32.gmra.mrb[12].mxu0 %v2349_v39  ;;  %v2872_v39 = vld [vmem:[#allocation7 + $0x38] sm:$0xff] }
 0x735   : > { %4776 = vmatprep.mubr.msk.f32.mxu0 %vm906_vm3, %v2352_v57 }
 0x738   : > { %2466 = vmatmul.mubr.f32.gmra.mrb[14].mxu0 %v2351_v40  ;;  %v5582_v40 = vpack.c.bf16 %v2872_v39, %v2871_v37 }
 0x739   : > { %4777 = vmatprep.mubr.msk.f32.mxu0 %vm906_vm3, %v2354_v41 }
 0x73c   : > { %2471 = vmatmul.mubr.f32.gmra.mrb[16].mxu0 %v2353_v15  ;;  %v2966_v15 = vpop.permute.xlu1 %2965 }
 0x803   : > { %v2457_v47 = vpop.f32.mrb[10].mxu0 }
 0x804   : > { %v2459_v48 = vpop.f32.mrb[11].mxu0  ;;  %v2458_v50 = vadd.f32 %v2457_v47, %v2362_v49  ;;  %v2961_v47 = vpop.permute.xlu0 %2960 }
 0x806   : > { %v2476_v55 = vmax.f32 %v2458_v50, 0.0 }
 0x807   : > { %v2462_v52 = vpop.f32.mrb[12].mxu0 }
 0x808   : > { %v2463_v53 = vadd.f32 %v2462_v52, %v2367_v51  ;;  %v2464_v54 = vpop.f32.mrb[13].mxu0 }
 0x80a   : > { %v2477_v56 = vmax.f32 %v2463_v53, 0.0 }
 0x80b   : > { %v2467_v58 = vpop.f32.mrb[14].mxu0 }
 0x80c   : > { %v5562_v59 = vpack.c.bf16 %v2477_v56, %v2476_v55  ;;  %v2469_v63 = vpop.f32.mrb[15].mxu0  ;;  %v2468_v2 = vadd.f32 %v2467_v58, %v2372_v0 }
 0x80e   : > { %5563 = vmatprep.subr.bf16.mxu1 %v5562_v59  ;;  %v2478_v11 = vmax.f32 %v2468_v2, 0.0 }
 0x80f   : > { %v2472_v6 = vpop.f32.mrb[16].mxu0  ;;  %5565 = vmatpush3.bf16.msra.mxu1 %v5562_v59 }
 0x810   : > { %v2473_v7 = vadd.f32 %v2472_v6, %v2377_v5  ;;  %v2474_v8 = vpop.f32.mrb[17].mxu0 }
 0x812   : > { %v2479_v12 = vmax.f32 %v2473_v7, 0.0 }
 0x814   : > { %v5566_v13 = vpack.c.bf16 %v2479_v12, %v2478_v11 }
 0x816   : > { %5567 = vmatprep.subr.bf16.mxu1 %v5566_v13 }
 0x817   : > { %5569 = vmatpush3.bf16.msra.mxu1 %v5566_v13 }
 0x818   : > { %5571 = vmatprep.subr.bf16.mxu1 %v5570_v14 }
 0x81a   : > { %5251 = vmatmul.mubr.msk.f32.vlgmr.msra.gmra.mrb[10].mxu1 %vm952_vm7, %v2481_v16 }
 0x81b   : > { %5253 = vmatprep.mubr.msk.f32.mxu1 %vm952_vm7, %v2482_v17  ;;  %5573 = vmatpush3.bf16.msra.mxu1 %v5570_v14 }
 0x81c   : > { %5575 = vmatprep.subr.bf16.mxu1 %v5574_v27 }
 0x81e   : > { %5254 = vmatmul.mubr.msk.f32.gmra.mrb[12].mxu1 %vm952_vm7, %v2483_v18 }
 0x81f   : > { %5256 = vmatprep.mubr.msk.f32.mxu1 %vm952_vm7, %v2484_v19 }
 0x822   : > { %5257 = vmatmul.mubr.msk.f32.gmra.mrb[14].mxu1 %vm952_vm7, %v2485_v20 }
 0x823   : > { %5259 = vmatprep.mubr.msk.f32.mxu1 %vm952_vm7, %v2486_v21 }
 0x826   : > { %5260 = vmatmul.mubr.msk.f32.gmra.mrb[16].mxu1 %vm952_vm7, %v2487_v22 }
 0x8ed   : > { %v5252_v28 = vpop.f32.mrb[10].mxu1 }
 0x8ee   : > { %v2578_v29 = vpop.f32.mrb[11].mxu1 }
 0x8f1   : > { %v5255_v36 = vpop.f32.mrb[12].mxu1 }
 0x8f2   : > { %v2588_v34 = vpop.f32.mrb[13].mxu1 }
 0x8f3   : > { %5266 = vmatprep.mubr.msk.f32.mxu1 %vm906_vm3, %v2588_v34 }
 0x8f4   : > { %5267 = vmatmul.mubr.msk.f32.vlgmr.msra.gmra.mrb[18].mxu1 %vm906_vm3, %v5255_v36 }
 0x8f5   : > { %5273 = vmatprep.mubr.msk.f32.mxu1 %vm906_vm3, %v2578_v29  ;;  %5577 = vmatpush3.bf16.msra.mxu1 %v5574_v27  ;;  %v5258_v35 = vpop.f32.mrb[14].mxu1 }
 0x8f6   : > { %5579 = vmatprep.subr.bf16.mxu1 %v5578_v32  ;;  %v2598_v38 = vpop.f32.mrb[15].mxu1 }
 0x8f9   : > { %v5261_v57 = vpop.f32.mrb[16].mxu1 }
 0x8fa   : > { %v2608_v41 = vpop.f32.mrb[17].mxu1 }
 0x8fc   : > { %5274 = vmatmul.mubr.msk.f32.vlgmr.msra.gmra.mrb[18].mxu1 %vm906_vm3, %v5252_v28 }
 0x8fd   : > { %5581 = vmatpush3.bf16.msra.mxu1 %v5578_v32  ;;  %5280 = vmatprep.mubr.msk.f32.mxu1 %vm906_vm3, %v2598_v38 }
 0x8fe   : > { %5583 = vmatprep.subr.bf16.mxu1 %v5582_v40 }
 0x904   : > { %5281 = vmatmul.mubr.msk.f32.vlgmr.msra.gmra.mrb[18].mxu1 %vm906_vm3, %v5258_v35 }
 0x905   : > { %5585 = vmatpush3.bf16.msra.mxu1 %v5582_v40  ;;  %5287 = vmatprep.mubr.msk.f32.mxu1 %vm906_vm3, %v2608_v41 }
 0x90c   : > { %5288 = vmatmul.mubr.msk.f32.vlgmr.msra.gmra.mrb[18].mxu1 %vm906_vm3, %v5261_v57 }
 0x9df   : > { %v5289_v46 = vpop.f32.mrb[18].mxu1 }
 0x9e0   : > { %v2969_v48 = vadd.f32 %v5289_v46, %v2966_v15  ;;  %v2945_v49 = vpop.f32.mrb[19].mxu1 }
 0x9e1   : > { %v2968_v50 = vadd.f32 %v2961_v47, %v2945_v49 }
 0x9e2   : > { %2982 = vrot.lane.b32.xlu1 %v2969_v48, %s7998_s21 }
 0x9e3   : > { %2980 = vrot.lane.b32.xlu0 %v2968_v50, %s7998_s21 }
 0x9e6   : > { %2990 = vrot.lane.b32.xlu1 %v7121_v24, %s7998_s21 }
 0x9e7   : > { %2988 = vrot.lane.b32.xlu0 %v7119_v23, %s7998_s21  ;;  %s8012_s21 = sld [smem:[#allocation28_spill]] }
 0x9ea   : > { %3015 = vrot.lane.b32.xlu1 %v6972_v42, %s7997_s24 }
 0x9eb   : > { %3054 = vrot.lane.b32.xlu0 %v7009_v61, %s8000_s3  ;;  %s8009_s3 = sld [smem:[#allocation23_spill]] }
 0x9ee   : > { %3028 = vrot.lane.b32.xlu1 %v7005_v60, %s7986_s30 }
 0x9ef   : > { %3067 = vrot.lane.b32.xlu0 %v6980_v44, %s8008_s16 }
 0x9f1   : > { %v3229_v47 = vld [vmem:[%s8009_s3 + $0x8] sm:$0xff] }
 0x9f2   : > { %3041 = vrot.lane.b32.xlu1 %v6976_v43, %s7999_s15  ;;  %3316 = vmatprep.mubr.f32.mxu0 %v3229_v47  ;;  %s8044_s15 = sld [smem:[#allocation36_spill]] }
 0x9f3   : > { %3080 = vrot.lane.b32.xlu0 %v7013_v62, %s7987_s9 }
 0x9f7   : > { %3093 = vrot.lane.b32.xlu0 %v6984_v45, %s7985_s5 }
 0xa54   : > { %v2983_v23 = vpop.permute.xlu1 %2982 }
 0xa55   : > { %2987 = vst.msk [vmem:[#allocation3 + $0x8] sm:$0xff] %vm1624_vm14, %v2983_v23  ;;  %v2981_v42 = vpop.permute.xlu0 %2980 }
 0xa56   : > { %2986 = vst.msk [vmem:[#allocation3] sm:$0xff] %vm1624_vm14, %v2981_v42  ;;  %v3230_v42 = vld [vmem:[%s8009_s3 + $0x10] sm:$0xff] }
 0xa57   : > { %5298 = vmatprep.mubr.msk.f32.mxu1 %vm952_vm7, %v3230_v42 }
 0xa58   : > { %v2991_v61 = vpop.permute.xlu1 %2990 }
 0xa59   : > { %2995 = vst.msk [vmem:[#allocation3 + $0x18] sm:$0xff] %vm1624_vm14, %v2991_v61  ;;  %v2989_v60 = vpop.permute.xlu0 %2988 }
 0xa5a   : > { %2994 = vst.msk [vmem:[#allocation3 + $0x10] sm:$0xff] %vm1624_vm14, %v2989_v60  ;;  %vm8034_vm14 = vcmask 777216  }
 0xa5c   : > { %v2997_v44 = vld [vmem:[#allocation3 + $0x8] sm:$0xff]  ;;  %v3016_v45 = vpop.permute.xlu1 %3015 }
 0xa5d   : > { %v2996_v43 = vld [vmem:[#allocation3] sm:$0xff]  ;;  %v3055_v24 = vpop.permute.xlu0 %3054  ;;  %v3019_v59 = vmul.f32 %v3016_v45, %v2997_v44  ;;  %v7334_v6 = vmul.f32 %v7058_v31, %v2997_v44 }
 0xa5e   : > { %v3057_v51 = vmul.f32 %v3055_v24, %v2996_v43  ;;  %v3058_v62 = vmul.f32 %v3055_v24, %v2997_v44  ;;  %v5881_v52 = vpack.i.bf16 %v2997_v44, %v2996_v43  ;;  %v3018_v0 = vmul.f32 %v3016_v45, %v2996_v43 }
 0xa5f   : > { %v7331_v5 = vmul.f32 %v7058_v31, %v2996_v43 }
 0xa60   : > { %v7320_v53 = vld [vmem:[#allocation3 + $0x18] sm:$0xff]  ;;  %5882 = vrot.lane.b32.xlu1 %v5881_v52, %s8002_s20  ;;  %v5891_v58 = vpack.i.bf16 %v3058_v62, %v3057_v51  ;;  %v5901_v12 = vpack.i.bf16 %v3019_v59, %v3018_v0  ;;  %v3029_v14 = vpop.permute.xlu1 %3028  ;;  %v3872_v51 = vld [vmem:[%s7863_s12] sm:$0xff] }
 0xa61   : > { %v7323_v54 = vld [vmem:[#allocation3 + $0x10] sm:$0xff]  ;;  %v3060_v56 = vmul.f32 %v3055_v24, %v7320_v53  ;;  %v3068_v63 = vpop.permute.xlu0 %3067  ;;  %v3021_v11 = vmul.f32 %v3016_v45, %v7320_v53  ;;  %v5588_v13 = vpack.c.bf16 %v7334_v6, %v7331_v5  ;;  %v7348_v17 = vmul.f32 %v7058_v31, %v7320_v53  ;;  %v3235_v62 = vld [vmem:[%s7861_s10 + $0x8] sm:$0xff] }
 0xa62   : > { %v3059_v55 = vmul.f32 %v3055_v24, %v7323_v54  ;;  %v5886_v2 = vpack.i.bf16 %v7320_v53, %v7323_v54  ;;  %v3070_v7 = vmul.f32 %v3068_v63, %v2996_v43  ;;  %v3071_v8 = vmul.f32 %v3068_v63, %v2997_v44 }
 0xa63   : > { %v3020_v10 = vmul.f32 %v3016_v45, %v7323_v54  ;;  %v7344_v16 = vmul.f32 %v7058_v31, %v7323_v54  ;;  %v3072_v18 = vmul.f32 %v3068_v63, %v7323_v54  ;;  %v3073_v19 = vmul.f32 %v3068_v63, %v7320_v53 }
 0xa64   : > { %5892 = vrot.lane.b32.xlu1 %v5891_v58, %s8003_s22  ;;  %5887 = vrot.lane.b32.xlu0 %v5886_v2, %s8002_s20  ;;  %v5896_v9 = vpack.i.bf16 %v3060_v56, %v3059_v55  ;;  %v5911_v20 = vpack.i.bf16 %v3071_v8, %v3070_v7  ;;  %v3031_v25 = vmul.f32 %v3029_v14, %v2996_v43  ;;  %v3042_v34 = vpop.permute.xlu1 %3041 }
 0xa65   : > { %v3081_v21 = vpop.permute.xlu0 %3080  ;;  %v5592_v22 = vpack.c.bf16 %v7348_v17, %v7344_v16  ;;  %v3032_v26 = vmul.f32 %v3029_v14, %v2997_v44  ;;  %v5906_v27 = vpack.i.bf16 %v3021_v11, %v3020_v10  ;;  %v5916_v31 = vpack.i.bf16 %v3073_v19, %v3072_v18 }
 0xa66   : > { %v3083_v28 = vmul.f32 %v3081_v21, %v2996_v43  ;;  %v3084_v29 = vmul.f32 %v3081_v21, %v2997_v44  ;;  %v3033_v30 = vmul.f32 %v3029_v14, %v7323_v54  ;;  %v3034_v33 = vmul.f32 %v3029_v14, %v7320_v53 }
 0xa67   : > { %v5921_v36 = vpack.i.bf16 %v3032_v26, %v3031_v25  ;;  %v3085_v32 = vmul.f32 %v3081_v21, %v7323_v54  ;;  %v3086_v35 = vmul.f32 %v3081_v21, %v7320_v53  ;;  %v3044_v39 = vmul.f32 %v3042_v34, %v2996_v43 }
 0xa68   : > { %5897 = vrot.lane.b32.xlu1 %v5896_v9, %s8003_s22  ;;  %5902 = vrot.lane.b32.xlu0 %v5901_v12, %s7989_s25  ;;  %v5931_v38 = vpack.i.bf16 %v3084_v29, %v3083_v28  ;;  %v3045_v57 = vmul.f32 %v3042_v34, %v2997_v44  ;;  %v5926_v40 = vpack.i.bf16 %v3034_v33, %v3033_v30 }
 0xa69   : > { %v3094_v37 = vpop.permute.xlu0 %3093  ;;  %v5936_v46 = vpack.i.bf16 %v3086_v35, %v3085_v32  ;;  %v3046_v48 = vmul.f32 %v3042_v34, %v7323_v54  ;;  %v3047_v49 = vmul.f32 %v3042_v34, %v7320_v53 }
 0xa6a   : > { %v3096_v41 = vmul.f32 %v3094_v37, %v2996_v43  ;;  %v3097_v15 = vmul.f32 %v3094_v37, %v2997_v44  ;;  %v5941_v50 = vpack.i.bf16 %v3045_v57, %v3044_v39  ;;  %v3098_v61 = vmul.f32 %v3094_v37, %v7323_v54  ;;  %v3234_v43 = vld [vmem:[%s7861_s10] sm:$0xff] }
 0xa6b   : > { %v3099_v60 = vmul.f32 %v3094_v37, %v7320_v53  ;;  %v5946_v44 = vpack.i.bf16 %v3047_v49, %v3046_v48 }
 0xa6c   : > { %5912 = vrot.lane.b32.xlu1 %v5911_v20, %s7991_s29  ;;  %5907 = vrot.lane.b32.xlu0 %v5906_v27, %s7989_s25  ;;  %v5951_v23 = vpack.i.bf16 %v3097_v15, %v3096_v41 }
 0xa6d   : > { %v5956_v24 = vpack.i.bf16 %v3099_v60, %v3098_v61 }
 0xa70   : > { %5917 = vrot.lane.b32.xlu1 %v5916_v31, %s7991_s29  ;;  %5922 = vrot.lane.b32.xlu0 %v5921_v36, %s7988_s28 }
 0xa74   : > { %5932 = vrot.lane.b32.xlu1 %v5931_v38, %s7993_s6  ;;  %5927 = vrot.lane.b32.xlu0 %v5926_v40, %s7988_s28 }
 0xa78   : > { %5937 = vrot.lane.b32.xlu1 %v5936_v46, %s7993_s6  ;;  %5942 = vrot.lane.b32.xlu0 %v5941_v50, %s8001_s18 }
 0xa7c   : > { %5952 = vrot.lane.b32.xlu1 %v5951_v23, %s7992_s7  ;;  %5947 = vrot.lane.b32.xlu0 %v5946_v44, %s8001_s18  ;;  %s8043_s18 = sld [smem:[#allocation12_spill]] }
 0xa80   : > { %3238 = vperm.xlu1 %5839, %v3234_v43   ;;  %5957 = vrot.lane.b32.xlu0 %v5956_v24, %s7992_s7 }
 0xa84   : > { %3875 = vperm.xlu1 %5839, %v3872_v51   ;;  %3243 = vperm.xlu0 %5840, %v3235_v62  }
 0xad2   : > { %v5883_v52 = vpop.permute.xlu1 %5882 }
 0xad3   : > { %v5885_v53 = vunpack.i.h.bf16 %v5883_v52  ;;  %v5884_v45 = vunpack.i.l.bf16 %v5883_v52 }
 0xad5   : > { %v5586_v54 = vpack.c.bf16 %v5885_v53, %v5884_v45  ;;  %v3228_v45 = vld [vmem:[%s8009_s3] sm:$0xff] }
 0xad6   : > { %v5893_v55 = vpop.permute.xlu1 %5892  ;;  %v5888_v59 = vpop.permute.xlu0 %5887 }
 0xad7   : > { %5587 = vmatprep.subr.bf16.mxu0 %v5586_v54  ;;  %v5895_v56 = vunpack.i.h.bf16 %v5893_v55  ;;  %v5894_v58 = vunpack.i.l.bf16 %v5893_v55  ;;  %v5890_v63 = vunpack.i.h.bf16 %v5888_v59  ;;  %v5889_v0 = vunpack.i.l.bf16 %v5888_v59  ;;  %v3232_v55 = vld [vmem:[%s8009_s3 + $0x20] sm:$0xff] }
 0xad8   : > { %5589 = vmatpush3.bf16.msra.mxu0 %v5588_v13  ;;  %v3404_v59 = vld [vmem:[%s7862_s11] sm:$0xff] }
 0xad9   : > { %v5590_v7 = vpack.c.bf16 %v5890_v63, %v5889_v0  ;;  %v5594_v8 = vpack.c.bf16 %v5895_v56, %v5894_v58  ;;  %v3231_v56 = vld [vmem:[%s8009_s3 + $0x18] sm:$0xff]  ;;  %v3233_v58 = vld [vmem:[%s8009_s3 + $0x28] sm:$0xff] }
 0xada   : > { %v5898_v2 = vpop.permute.xlu1 %5897  ;;  %v5903_v9 = vpop.permute.xlu0 %5902 }
 0xadb   : > { %v5900_v10 = vunpack.i.h.bf16 %v5898_v2  ;;  %v5899_v11 = vunpack.i.l.bf16 %v5898_v2  ;;  %v5905_v12 = vunpack.i.h.bf16 %v5903_v9  ;;  %v5904_v14 = vunpack.i.l.bf16 %v5903_v9  ;;  %5591 = vmatprep.subr.bf16.mxu0 %v5590_v7 }
 0xadc   : > { %5593 = vmatpush3.bf16.msra.mxu0 %v5592_v22 }
 0xadd   : > { %v5596_v19 = vpack.c.bf16 %v5905_v12, %v5904_v14  ;;  %5595 = vmatprep.subr.bf16.mxu0 %v5594_v8  ;;  %v5598_v20 = vpack.c.bf16 %v5900_v10, %v5899_v11 }
 0xade   : > { %v5913_v18 = vpop.permute.xlu1 %5912  ;;  %v5908_v13 = vpop.permute.xlu0 %5907 }
 0xadf   : > { %v5915_v5 = vunpack.i.h.bf16 %v5913_v18  ;;  %v5914_v6 = vunpack.i.l.bf16 %v5913_v18  ;;  %v5910_v21 = vunpack.i.h.bf16 %v5908_v13  ;;  %v5909_v25 = vunpack.i.l.bf16 %v5908_v13  ;;  %v4809_v13 = vld [vmem:[%s8010_s0 + $0x88] sm:$0xff] }
 0xae0   : > { %5597 = vmatpush3.bf16.msra.mxu0 %v5596_v19 }
 0xae1   : > { %v5600_v27 = vpack.c.bf16 %v5910_v21, %v5909_v25  ;;  %5599 = vmatprep.subr.bf16.mxu0 %v5598_v20  ;;  %v5602_v28 = vpack.c.bf16 %v5915_v5, %v5914_v6  ;;  %v4811_v20 = vld [vmem:[%s8010_s0 + $0x98] sm:$0xff] }
 0xae2   : > { %v5918_v26 = vpop.permute.xlu1 %5917  ;;  %v5923_v29 = vpop.permute.xlu0 %5922 }
 0xae3   : > { %v5920_v31 = vunpack.i.h.bf16 %v5918_v26  ;;  %v5919_v30 = vunpack.i.l.bf16 %v5918_v26  ;;  %v5925_v33 = vunpack.i.h.bf16 %v5923_v29  ;;  %v5924_v16 = vunpack.i.l.bf16 %v5923_v29  ;;  %v4810_v29 = vld [vmem:[%s8010_s0 + $0x90] sm:$0xff] }
 0xae4   : > { %5601 = vmatpush3.bf16.msra.mxu0 %v5600_v27  ;;  %v5630_v27 = vpack.c.bf16 %v4811_v20, %v4809_v13  ;;  %v4826_v13 = vld [vmem:[%s8010_s0 + $0x100] sm:$0xff]  ;;  %v4828_v20 = vld [vmem:[%s8010_s0 + $0x110] sm:$0xff] }
 0xae5   : > { %v5604_v22 = vpack.c.bf16 %v5925_v33, %v5924_v16  ;;  %5603 = vmatprep.subr.bf16.mxu0 %v5602_v28  ;;  %v5606_v35 = vpack.c.bf16 %v5920_v31, %v5919_v30  ;;  %v4808_v28 = vld [vmem:[%s8010_s0 + $0x80] sm:$0xff]  ;;  %v4813_v31 = vld [vmem:[%s8010_s0 + $0xa8] sm:$0xff]  ;;  %v4815_v30 = vld [vmem:[%s8010_s0 + $0xb8] sm:$0xff] }
 0xae6   : > { %v5933_v17 = vpop.permute.xlu1 %5932  ;;  %v5928_v32 = vpop.permute.xlu0 %5927  ;;  %v3405_v33 = vld [vmem:[%s7862_s11 + $0x8] sm:$0xff]  ;;  %v5632_v16 = vpack.c.bf16 %v4810_v29, %v4808_v28  ;;  %v4830_v28 = vld [vmem:[%s8010_s0 + $0x120] sm:$0xff]  ;;  %v4832_v29 = vld [vmem:[%s8010_s0 + $0x130] sm:$0xff] }
 0xae7   : > { %v5935_v36 = vunpack.i.h.bf16 %v5933_v17  ;;  %v5934_v34 = vunpack.i.l.bf16 %v5933_v17  ;;  %v5930_v38 = vunpack.i.h.bf16 %v5928_v32  ;;  %v5929_v37 = vunpack.i.l.bf16 %v5928_v32  ;;  %v3406_v17 = vld [vmem:[%s7862_s11 + $0x10] sm:$0xff]  ;;  %v4817_v32 = vld [vmem:[%s8010_s0 + $0xc8] sm:$0xff] }
 0xae8   : > { %5605 = vmatpush3.bf16.msra.mxu0 %v5604_v22  ;;  %v5634_v22 = vpack.c.bf16 %v4815_v30, %v4813_v31  ;;  %v4835_v31 = vld [vmem:[%s8010_s0 + $0x148] sm:$0xff]  ;;  %v4837_v30 = vld [vmem:[%s8010_s0 + $0x158] sm:$0xff] }
 0xae9   : > { %v5608_v57 = vpack.c.bf16 %v5930_v38, %v5929_v37  ;;  %5607 = vmatprep.subr.bf16.mxu0 %v5606_v35  ;;  %v5610_v40 = vpack.c.bf16 %v5935_v36, %v5934_v34  ;;  %v4812_v36 = vld [vmem:[%s8010_s0 + $0xa0] sm:$0xff]  ;;  %v4814_v34 = vld [vmem:[%s8010_s0 + $0xb0] sm:$0xff]  ;;  %v4819_v35 = vld [vmem:[%s8010_s0 + $0xd8] sm:$0xff] }
 0xaea   : > { %v5938_v39 = vpop.permute.xlu1 %5937  ;;  %v5943_v41 = vpop.permute.xlu0 %5942  ;;  %v3407_v38 = vld [vmem:[%s7862_s11 + $0x18] sm:$0xff]  ;;  %v5636_v37 = vpack.c.bf16 %v4814_v34, %v4812_v36  ;;  %v4839_v36 = vld [vmem:[%s8010_s0 + $0x168] sm:$0xff] }
 0xaeb   : > { %v5940_v15 = vunpack.i.h.bf16 %v5938_v39  ;;  %v5939_v46 = vunpack.i.l.bf16 %v5938_v39  ;;  %v5945_v47 = vunpack.i.h.bf16 %v5943_v41  ;;  %v5944_v48 = vunpack.i.l.bf16 %v5943_v41  ;;  %v4821_v41 = vld [vmem:[%s8010_s0 + $0xe8] sm:$0xff]  ;;  %v4841_v34 = vld [vmem:[%s8010_s0 + $0x178] sm:$0xff] }
 0xaec   : > { %5609 = vmatpush3.bf16.msra.mxu0 %v5608_v57  ;;  %v5638_v39 = vpack.c.bf16 %v4819_v35, %v4817_v32  ;;  %v4816_v57 = vld [vmem:[%s8010_s0 + $0xc0] sm:$0xff]  ;;  %v5674_v35 = vpack.c.bf16 %v4841_v34, %v4839_v36 }
 0xaed   : > { %v5612_v50 = vpack.c.bf16 %v5945_v47, %v5944_v48  ;;  %5611 = vmatprep.subr.bf16.mxu0 %v5610_v40  ;;  %v5614_v60 = vpack.c.bf16 %v5940_v15, %v5939_v46  ;;  %v4818_v40 = vld [vmem:[%s8010_s0 + $0xd0] sm:$0xff]  ;;  %v4823_v15 = vld [vmem:[%s8010_s0 + $0xf8] sm:$0xff]  ;;  %v4820_v48 = vld [vmem:[%s8010_s0 + $0xe0] sm:$0xff] }
 0xaee   : > { %v5953_v49 = vpop.permute.xlu1 %5952  ;;  %v5948_v61 = vpop.permute.xlu0 %5947  ;;  %v5640_v46 = vpack.c.bf16 %v4818_v40, %v4816_v57  ;;  %v5642_v47 = vpack.c.bf16 %v4823_v15, %v4821_v41  ;;  %v4846_v57 = vld [vmem:[%s8010_s0 + $0x198] sm:$0xff]  ;;  %v4843_v15 = vld [vmem:[%s8010_s0 + $0x180] sm:$0xff] }
 0xaef   : > { %v5955_v23 = vunpack.i.h.bf16 %v5953_v49  ;;  %v5954_v42 = vunpack.i.l.bf16 %v5953_v49  ;;  %v5950_v43 = vunpack.i.h.bf16 %v5948_v61  ;;  %v5949_v24 = vunpack.i.l.bf16 %v5948_v61  ;;  %v4822_v49 = vld [vmem:[%s8010_s0 + $0xf0] sm:$0xff] }
 0xaf0   : > { %5613 = vmatpush3.bf16.msra.mxu0 %v5612_v50  ;;  %v5644_v50 = vpack.c.bf16 %v4822_v49, %v4820_v48  ;;  %v4850_v48 = vld [vmem:[%s8010_s0 + $0x1b8] sm:$0xff] }
 0xaf1   : > { %v5618_v44 = vpack.c.bf16 %v5955_v23, %v5954_v42  ;;  %v5616_v51 = vpack.c.bf16 %v5950_v43, %v5949_v24  ;;  %5615 = vmatprep.subr.bf16.mxu0 %v5614_v60  ;;  %v3506_v23 = vld [vmem:[%s8010_s0 + $0x8] sm:$0xff]  ;;  %v3508_v42 = vld [vmem:[%s8010_s0 + $0x18] sm:$0xff]  ;;  %v3505_v60 = vld [vmem:[%s8010_s0] sm:$0xff] }
 0xaf2   : > { %v5958_v62 = vpop.permute.xlu0 %5957  ;;  %v5646_v61 = vpack.c.bf16 %v3508_v42, %v3506_v23  ;;  %v3510_v43 = vld [vmem:[%s8010_s0 + $0x28] sm:$0xff]  ;;  %v3512_v24 = vld [vmem:[%s8010_s0 + $0x38] sm:$0xff]  ;;  %v4847_v23 = vld [vmem:[%s8010_s0 + $0x1a0] sm:$0xff] }
 0xaf3   : > { %5619 = vmatprep.subr.bf16.mxu1 %v5618_v44  ;;  %v5960_v52 = vunpack.i.h.bf16 %v5958_v62  ;;  %v5959_v53 = vunpack.i.l.bf16 %v5958_v62  ;;  %v5650_v62 = vpack.c.bf16 %v3512_v24, %v3510_v43  ;;  %v4849_v42 = vld [vmem:[%s8010_s0 + $0x1b0] sm:$0xff]  ;;  %v4851_v24 = vld [vmem:[%s8010_s0 + $0x1c0] sm:$0xff] }
 0xaf4   : > { %5621 = vmatpush3.bf16.msra.mxu1 %v5618_v44  ;;  %5617 = vmatpush3.bf16.msra.mxu0 %v5616_v51  ;;  %v3507_v44 = vld [vmem:[%s8010_s0 + $0x10] sm:$0xff] }
 0xaf5   : > { %v5622_v54 = vpack.c.bf16 %v5960_v52, %v5959_v53  ;;  %v5648_v51 = vpack.c.bf16 %v3507_v44, %v3505_v60  ;;  %v3509_v52 = vld [vmem:[%s8010_s0 + $0x20] sm:$0xff]  ;;  %v3511_v53 = vld [vmem:[%s8010_s0 + $0x30] sm:$0xff]  ;;  %v4854_v60 = vld [vmem:[%s8010_s0 + $0x1d8] sm:$0xff]  ;;  %v5684_v44 = vpack.c.bf16 %v4849_v42, %v4847_v23 }
 0xaf7   : > { %3317 = vmatmul.mubr.f32.vlgmr.msra.gmra.mrb[18].mxu0 %v3228_v45  ;;  %5623 = vmatprep.subr.bf16.mxu1 %v5622_v54 }
 0xaf8   : > { %5625 = vmatpush3.bf16.msra.mxu1 %v5622_v54  ;;  %3321 = vmatprep.mubr.f32.mxu0 %v3232_v55  ;;  %v3514_v54 = vld [vmem:[%s8010_s0 + $0x48] sm:$0xff]  ;;  %v3516_v55 = vld [vmem:[%s8010_s0 + $0x58] sm:$0xff] }
 0xafb   : > { %3322 = vmatmul.mubr.f32.gmra.mrb[20].mxu0 %v3231_v56  ;;  %5299 = vmatmul.mubr.msk.f32.vlgmr.msra.gmra.mrb[20].mxu1 %vm952_vm7, %v3233_v58  ;;  %v5652_v58 = vpack.c.bf16 %v3511_v53, %v3509_v52  ;;  %v4858_v52 = vld [vmem:[%s8010_s0 + $0x1f8] sm:$0xff] }
 0xafc   : > { %5305 = vmatprep.mubr.msk.f32.mxu1 %vm906_vm3, %v3404_v59  ;;  %v5654_v59 = vpack.c.bf16 %v3516_v55, %v3514_v54  ;;  %v4855_v54 = vld [vmem:[%s8010_s0 + $0x1e0] sm:$0xff]  ;;  %v4857_v55 = vld [vmem:[%s8010_s0 + $0x1f0] sm:$0xff] }
 0xaff   : > { %v3239_v7 = vpop.permute.xlu1 %3238 }
 0xb03   : > { %v3244_v19 = vpop.permute.xlu0 %3243 }
 0xbca   : > { %v5127_v63 = vpop.f32.mrb[18].mxu0 }
 0xbcb   : > { %v5128_v0 = vpop.f32.mrb[19].mxu0 }
 0xbcc   : > { %v5129_v2 = vadd.f32 %v5128_v0, %v5127_v63  ;;  %v3513_v63 = vld [vmem:[%s8010_s0 + $0x40] sm:$0xff]  ;;  %v3515_v0 = vld [vmem:[%s8010_s0 + $0x50] sm:$0xff] }
 0xbce   : > { %v5130_v8 = vpop.f32.mrb[20].mxu0  ;;  %v5300_v9 = vpop.f32.mrb[20].mxu1  ;;  %v3319_v10 = vadd.f32 %v5129_v2, %v3239_v7  ;;  %v3518_v2 = vld [vmem:[%s8010_s0 + $0x68] sm:$0xff]  ;;  %v3520_v7 = vld [vmem:[%s8010_s0 + $0x78] sm:$0xff] }
 0xbcf   : > { %v5131_v11 = vpop.f32.mrb[21].mxu0  ;;  %v3393_v12 = vpop.f32.mrb[21].mxu1 }
 0xbd0   : > { %v5132_v14 = vadd.f32 %v5131_v11, %v5130_v8  ;;  %v3394_v18 = vadd.f32 %v3393_v12, %v3319_v10  ;;  %v5656_v10 = vpack.c.bf16 %v3515_v0, %v3513_v63  ;;  %v5658_v11 = vpack.c.bf16 %v3520_v7, %v3518_v2  ;;  %v3517_v12 = vld [vmem:[%s8010_s0 + $0x60] sm:$0xff] }
 0xbd1   : > { %v4860_v7 = vld [vmem:[%s8012_s21 + $0x1] ss:$8 sm:$0x3] }
 0xbd2   : > { %v3324_v5 = vadd.f32 %v5132_v14, %v3244_v19  ;;  %v3402_v21 = vmax.f32 %v3394_v18, 0.0  ;;  %v3519_v14 = vld [vmem:[%s8010_s0 + $0x70] sm:$0xff]  ;;  %v4827_v18 = vld [vmem:[%s8010_s0 + $0x108] sm:$0xff]  ;;  %v4829_v19 = vld [vmem:[%s8010_s0 + $0x118] sm:$0xff] }
 0xbd4   : > { %v3399_v6 = vadd.f32 %v5300_v9, %v3324_v5  ;;  %v5660_v5 = vpack.c.bf16 %v3519_v14, %v3517_v12  ;;  %v4861_v12 = vld [vmem:[%s8012_s21 + $0x2] ss:$8 sm:$0x3] }
 0xbd5   : > { %v3965_v14 = vrot.slane %v4861_v12, %v6424_v3 }
 0xbd6   : > { %v3403_v25 = vmax.f32 %v3399_v6, 0.0  ;;  %v5662_v6 = vpack.c.bf16 %v4829_v19, %v4827_v18  ;;  %v3969_v18 = vrot.slane %v4861_v12, %v6429_v4  ;;  %v4862_v19 = vld [vmem:[%s8012_s21 + $0x3] ss:$8 sm:$0x3] }
 0xbd8   : > { %v5626_v26 = vpack.c.bf16 %v3403_v25, %v3402_v21  ;;  %v4831_v21 = vld [vmem:[%s8010_s0 + $0x128] sm:$0xff]  ;;  %v4833_v25 = vld [vmem:[%s8010_s0 + $0x138] sm:$0xff] }
 0xbda   : > { %5627 = vmatprep.subr.bf16.mxu1 %v5626_v26 }
 0xbdb   : > { %5629 = vmatpush3.bf16.msra.mxu1 %v5626_v26  ;;  %v5664_v26 = vpack.c.bf16 %v4828_v20, %v4826_v13  ;;  %v4863_v13 = vld [vmem:[%s8012_s21 + $0x5] ss:$8 sm:$0x3] }
 0xbdc   : > { %5631 = vmatprep.subr.bf16.mxu1 %v5630_v27  ;;  %v5666_v27 = vpack.c.bf16 %v4833_v25, %v4831_v21  ;;  %v4013_v20 = vrot.slane %v4863_v13, %v6424_v3  ;;  %v4017_v21 = vrot.slane %v4863_v13, %v6429_v4  ;;  %v4864_v25 = vld [vmem:[%s8012_s21 + $0x6] ss:$8 sm:$0x3] }
 0xbde   : > { %5306 = vmatmul.mubr.msk.f32.vlgmr.msra.gmra.mrb[22].mxu1 %vm906_vm3, %v3405_v33  ;;  %v5668_v33 = vpack.c.bf16 %v4832_v29, %v4830_v28  ;;  %v4865_v28 = vld [vmem:[%s8012_s21 + $0x7] ss:$8 sm:$0x3] }
 0xbdf   : > { %5308 = vmatprep.mubr.msk.f32.mxu1 %vm906_vm3, %v3406_v17  ;;  %5633 = vmatpush1.bf16.msra.mxu1 %v5632_v16  ;;  %v5670_v16 = vpack.c.bf16 %v4837_v30, %v4835_v31  ;;  %v4834_v17 = vld [vmem:[%s8010_s0 + $0x140] sm:$0xff]  ;;  %v4061_v29 = vrot.slane %v4865_v28, %v6424_v3  ;;  %v4065_v31 = vrot.slane %v4865_v28, %v6429_v4  ;;  %v4866_v30 = vld [vmem:[%s8012_s21 + $0x10] ss:$8 sm:$0x3] }
 0xbe0   : > { %5635 = vmatprep.subr.bf16.mxu1 %v5634_v22  ;;  %v4836_v22 = vld [vmem:[%s8010_s0 + $0x150] sm:$0xff] }
 0xbe1   : > { %v5672_v32 = vpack.c.bf16 %v4836_v22, %v4834_v17  ;;  %v3918_v22 = vld [vmem:[%s8012_s21] ss:$8 sm:$0x3]  ;;  %s8019_s21 = smov 94  }
 0xbe2   : > { %5309 = vmatmul.mubr.msk.f32.gmra.mrb[24].mxu1 %vm906_vm3, %v3407_v38  ;;  %v4838_v38 = vld [vmem:[%s8010_s0 + $0x160] sm:$0xff] }
 0xbe3   : > { %5637 = vmatpush1.bf16.msra.mxu1 %v5636_v37  ;;  %3605 = vmatprep.mubr.f32.mxu1 %v6167_v1  ;;  %v4840_v37 = vld [vmem:[%s8010_s0 + $0x170] sm:$0xff] }
 0xbe4   : > { %5639 = vmatprep.subr.bf16.mxu1 %v5638_v39  ;;  %v4844_v39 = vld [vmem:[%s8010_s0 + $0x188] sm:$0xff]  ;;  %v5676_v40 = vpack.c.bf16 %v4840_v37, %v4838_v38 }
 0xbe5   : > { %v5678_v41 = vpack.c.bf16 %v4846_v57, %v4844_v39 }
 0xbe7   : > { %5641 = vmatpush1.bf16.msra.mxu1 %v5640_v46  ;;  %v4845_v46 = vld [vmem:[%s8010_s0 + $0x190] sm:$0xff] }
 0xbe8   : > { %5643 = vmatprep.subr.bf16.mxu1 %v5642_v47  ;;  %v4848_v47 = vld [vmem:[%s8010_s0 + $0x1a8] sm:$0xff]  ;;  %v5680_v49 = vpack.c.bf16 %v4845_v46, %v4843_v15 }
 0xbeb   : > { %5645 = vmatpush1.bf16.msra.mxu1 %v5644_v50  ;;  %v5682_v50 = vpack.c.bf16 %v4850_v48, %v4848_v47  ;;  %v3923_v47 = vrot.slane %v3918_v22, %v6424_v3 }
 0xbec   : > { %5647 = vmatprep.subr.bf16.mxu1 %v5646_v61  ;;  %v4852_v61 = vld [vmem:[%s8010_s0 + $0x1c8] sm:$0xff] }
 0xbed   : > { %v5686_v43 = vpack.c.bf16 %v4854_v60, %v4852_v61 }
 0xcb1   : > { %v5307_v45 = vpop.f32.mrb[22].mxu1 }
 0xcb2   : > { %v3486_v56 = vpop.f32.mrb[23].mxu1  ;;  %4824 = vmatmul.mubr.msk.f32.vlgmr.msra.gmra.mrb[26].mxu1 %vm1840_vm13, %v5307_v45 }
 0xcb3   : > { %5649 = vmatpush1.bf16.msra.mxu1 %v5648_v51  ;;  %3679 = vmatprep.mubr.f32.mxu1 %v6167_v1  ;;  %v4853_v51 = vld [vmem:[%s8010_s0 + $0x1d0] sm:$0xff] }
 0xcb4   : > { %5651 = vmatprep.subr.bf16.mxu1 %v5650_v62  ;;  %v4856_v62 = vld [vmem:[%s8010_s0 + $0x1e8] sm:$0xff]  ;;  %v5688_v53 = vpack.c.bf16 %v4853_v51, %v4851_v24 }
 0xcb5   : > { %v7518_v8 = vpop.f32.mrb[24].mxu1  ;;  %v5690_v45 = vpack.c.bf16 %v4858_v52, %v4856_v62 }
 0xcb6   : > { %v3496_v9 = vpop.f32.mrb[25].mxu1 }
 0xcb7   : > { %5653 = vmatpush1.bf16.msra.mxu1 %v5652_v58  ;;  %v3876_v58 = vpop.permute.xlu1 %3875 }
 0xcb8   : > { %5655 = vmatprep.subr.bf16.mxu1 %v5654_v59 }
 0xcbb   : > { %5657 = vmatpush1.bf16.msra.mxu1 %v5656_v10  ;;  %v6090_v10 = vld [vmem:[%s8011_s19 + $0x18] sm:$0xff] }
 0xcbc   : > { %5659 = vmatprep.subr.bf16.mxu1 %v5658_v11  ;;  %v3945_v11 = vrot.slane %v4860_v7, %v6429_v4 }
 0xcbf   : > { %5661 = vmatpush1.bf16.msra.mxu1 %v5660_v5  ;;  %v3989_v5 = vrot.slane %v4862_v19, %v6424_v3 }
 0xcc0   : > { %5663 = vmatprep.subr.bf16.mxu1 %v5662_v6  ;;  %v3993_v6 = vrot.slane %v4862_v19, %v6429_v4 }
 0xcc2   : > { %4825 = vmatmul.mubr.msk.f32.vlgmr.msra.gmra.mrb[26].mxu1 %vm1840_vm13, %v3486_v56  ;;  %v5692_v56 = vpack.c.bf16 %v4857_v55, %v4855_v54 }
 0xcc3   : > { %5665 = vmatpush1.bf16.msra.mxu1 %v5664_v26  ;;  %3770 = vmatprep.mubr.f32.mxu1 %v6167_v1  ;;  %v4037_v26 = vrot.slane %v4864_v25, %v6424_v3 }
 0xcc4   : > { %5667 = vmatprep.subr.bf16.mxu1 %v5666_v27  ;;  %v4041_v27 = vrot.slane %v4864_v25, %v6429_v4 }
 0xcc7   : > { %5669 = vmatpush1.bf16.msra.mxu1 %v5668_v33  ;;  %v4085_v33 = vrot.slane %v4866_v30, %v6424_v3 }
 0xcc8   : > { %5671 = vmatprep.subr.bf16.mxu1 %v5670_v16  ;;  %v4089_v16 = vrot.slane %v4866_v30, %v6429_v4 }
 0xccb   : > { %5673 = vmatpush1.bf16.msra.mxu1 %v5672_v32  ;;  %v3927_v32 = vrot.slane %v3918_v22, %v6429_v4 }
 0xccc   : > { %5675 = vmatprep.subr.bf16.mxu1 %v5674_v35 }
 0xccf   : > { %5677 = vmatpush1.bf16.msra.mxu1 %v5676_v40 }
 0xcd0   : > { %5679 = vmatprep.subr.bf16.mxu1 %v5678_v41 }
 0xcd2   : > { %4842 = vmatmul.mubr.msk.f32.vlgmr.msra.gmra.mrb[26].mxu1 %vm1840_vm13, %v3496_v9  ;;  %v6089_v9 = vld [vmem:[%s8011_s19 + $0x10] sm:$0xff] }
 0xcd3   : > { %5681 = vmatpush1.bf16.msra.mxu1 %v5680_v49  ;;  %3863 = vmatprep.mubr.f32.mxu1 %v6167_v1 }
 0xcd4   : > { %5683 = vmatprep.subr.bf16.mxu1 %v5682_v50 }
 0xcd7   : > { %5685 = vmatpush1.bf16.msra.mxu1 %v5684_v44 }
 0xcd8   : > { %5687 = vmatprep.subr.bf16.mxu1 %v5686_v43 }
 0xcdb   : > { %5689 = vmatpush1.bf16.msra.mxu1 %v5688_v53 }
 0xcdc   : > { %5691 = vmatprep.subr.bf16.mxu1 %v5690_v45 }
 0xcdf   : > { %5693 = vmatpush1.bf16.msra.mxu1 %v5692_v56 }
 0xce2   : > { %4859 = vmatmul.mubr.msk.f32.vlgmr.msra.gmra.mrb[26].mxu1 %vm1840_vm13, %v7518_v8  ;;  %v3941_v8 = vrot.slane %v4860_v7, %v6424_v3  ;;  %vm8035_vm13 = vmmov %vm8034_vm14 }
 0xce3   : > { %vm8036_vm1 = vmmov %vm8035_vm13 }
 0xce4   : > { %vm8037_vm15 = vmmov %vm8036_vm1 }
 0xdb5   : > { %v3865_v59 = vpop.f32.mrb[26].mxu1 }
 0xdb6   : > { %v3878_v63 = vadd.f32 %v3876_v58, %v3865_v59  ;;  %v3867_v0 = vpop.f32.mrb[27].mxu1 }
 0xdb7   : > { %v3879_v2 = vadd.f32 %v3876_v58, %v3867_v0 }
 0xdb8   : > { %3880 = vst [vmem:[%s8011_s19] sm:$0xff] %v3878_v63  ;;  %3890 = vrot.lane.b32.xlu0 %v3878_v63, %s7987_s9 }
 0xdb9   : > { %3881 = vst [vmem:[%s8011_s19 + $0x8] sm:$0xff] %v3879_v2  ;;  %3892 = vrot.lane.b32.xlu1 %v3879_v2, %s7987_s9 }
 0xdbc   : > { %3903 = vrot.lane.b32.xlu0 %v6089_v9, %s7987_s9 }
 0xdbd   : > { %3905 = vrot.lane.b32.xlu1 %v6090_v10, %s7987_s9 }
 0xdc0   : > { %3946 = vrot.lane.b32.xlu0 %v3941_v8, %s7997_s24 }
 0xdc1   : > { %3948 = vrot.lane.b32.xlu1 %v3945_v11, %s7997_s24  ;;  %s8021_s24 = sld [smem:[#allocation27_spill]] }
 0xdc4   : > { %3970 = vrot.lane.b32.xlu0 %v3965_v14, %s7986_s30 }
 0xdc5   : > { %3972 = vrot.lane.b32.xlu1 %v3969_v18, %s7986_s30 }
 0xdc8   : > { %3994 = vrot.lane.b32.xlu0 %v3989_v5, %s8008_s16 }
 0xdc9   : > { %3996 = vrot.lane.b32.xlu1 %v3993_v6, %s8008_s16  ;;  %s8042_s16 = sld [smem:[#allocation26_spill]] }
 0xdcc   : > { %4018 = vrot.lane.b32.xlu0 %v4013_v20, %s7985_s5 }
 0xdcd   : > { %4020 = vrot.lane.b32.xlu1 %v4017_v21, %s7985_s5  ;;  %s8015_s5 = smov 34  }
 0xdd0   : > { %4042 = vrot.lane.b32.xlu0 %v4037_v26, %s8013_s8 }
 0xdd1   : > { %4044 = vrot.lane.b32.xlu1 %v4041_v27, %s8013_s8 }
 0xdd4   : > { %4066 = vrot.lane.b32.xlu0 %v4061_v29, %s8014_s13 }
 0xdd5   : > { %4068 = vrot.lane.b32.xlu1 %v4065_v31, %s8014_s13  ;;  %s4875_s13 = sshll.u32 %s8043_s18, 3 }
 0xdd8   : > { %4090 = vrot.lane.b32.xlu0 %v4085_v33, %s8015_s5 }
 0xdd9   : > { %4092 = vrot.lane.b32.xlu1 %v4089_v16, %s8015_s5 }
 0xe2a   : > { %v3891_v17 = vpop.permute.xlu0 %3890 }
 0xe2b   : > { %3898 = vst.msk [vmem:[#allocation2] sm:$0xff] %vm824_vm2, %v3891_v17  ;;  %v3893_v36 = vpop.permute.xlu1 %3892 }
 0xe2c   : > { %v7690_v34 = vsel %vm810_vm0, %v3891_v17, %v3893_v36  ;;  %3900 = vst.msk [vmem:[#allocation2 + $0x10] sm:$0xff] %vm810_vm0, %v3893_v36 }
 0xe2d   : > { %v3931_v39 = vmul.f32 %v3927_v32, %v7690_v34 }
 0xe2e   : > { %v3904_v35 = vpop.permute.xlu0 %3903 }
 0xe2f   : > { %3911 = vst.msk [vmem:[#allocation2 + $0x18] sm:$0xff] %vm824_vm2, %v3904_v35  ;;  %v3906_v38 = vpop.permute.xlu1 %3905 }
 0xe30   : > { %v7696_v37 = vsel %vm810_vm0, %v3904_v35, %v3906_v38  ;;  %3913 = vst.msk [vmem:[#allocation2 + $0x28] sm:$0xff] %vm810_vm0, %v3906_v38  ;;  %vm8022_vm0 = vcmask 908288  }
 0xe31   : > { %v3933_v57 = vmul.f32 %v3927_v32, %v7696_v37  ;;  %vm8023_vm2 = vmmov %vm8022_vm0 }
 0xe32   : > { %v3947_v40 = vpop.permute.xlu0 %3946  ;;  %v7703_v48 = vld [vmem:[#allocation2] sm:$0xff] }
 0xe33   : > { %v3949_v41 = vpop.permute.xlu1 %3948  ;;  %v5694_v15 = vpack.c.bf16 %v3933_v57, %v3931_v39  ;;  %v3930_v3 = vmul.f32 %v3923_v47, %v7703_v48  ;;  %v3954_v7 = vmul.f32 %v3947_v40, %v7703_v48  ;;  %v7729_v8 = vld [vmem:[#allocation2 + $0x10] sm:$0xff] }
 0xe34   : > { %v3950_v46 = vsel %vm860_vm4, %v3947_v40, %v3949_v41  ;;  %v3956_v14 = vmul.f32 %v3949_v41, %v7729_v8  ;;  %v5996_v21 = vpack.i.bf16 %v7729_v8, %v7690_v34  ;;  %vm8025_vm4 = vmmov %vm8022_vm0 }
 0xe35   : > { %5695 = vmatprep.subr.bf16.mxu0 %v5694_v15  ;;  %v3958_v42 = vmul.f32 %v3950_v46, %v7696_v37  ;;  %v3955_v18 = vmul.f32 %v3950_v46, %v7690_v34 }
 0xe36   : > { %v3971_v4 = vpop.permute.xlu0 %3970  ;;  %v7705_v49 = vld [vmem:[#allocation2 + $0x18] sm:$0xff] }
 0xe37   : > { %v7707_v50 = vld [vmem:[#allocation2 + $0x28] sm:$0xff]  ;;  %v3973_v23 = vpop.permute.xlu1 %3972  ;;  %v3932_v62 = vmul.f32 %v3923_v47, %v7705_v49  ;;  %v3957_v58 = vmul.f32 %v3947_v40, %v7705_v49  ;;  %v3978_v59 = vmul.f32 %v3971_v4, %v7703_v48  ;;  %v3981_v63 = vmul.f32 %v3971_v4, %v7705_v49 }
 0xe38   : > { %v3959_v61 = vmul.f32 %v3949_v41, %v7707_v50  ;;  %v3974_v60 = vsel %vm883_vm5, %v3971_v4, %v3973_v23  ;;  %v3983_v44 = vmul.f32 %v3973_v23, %v7707_v50  ;;  %v5976_v2 = vpack.i.bf16 %v7707_v50, %v7696_v37 }
 0xe39   : > { %v3982_v43 = vmul.f32 %v3974_v60, %v7696_v37  ;;  %v5696_v55 = vpack.c.bf16 %v3932_v62, %v3930_v3  ;;  %v5981_v9 = vpack.i.bf16 %v3957_v58, %v3954_v7  ;;  %v5986_v10 = vpack.i.bf16 %v3981_v63, %v3978_v59 }
 0xe3a   : > { %v5961_v24 = vpack.i.bf16 %v3959_v61, %v3958_v42  ;;  %v3995_v51 = vpop.permute.xlu0 %3994  ;;  %v3980_v19 = vmul.f32 %v3973_v23, %v7729_v8  ;;  %v3979_v5 = vmul.f32 %v3974_v60, %v7690_v34  ;;  %v6001_v25 = vpack.i.bf16 %v3956_v14, %v3955_v18 }
 0xe3b   : > { %v5966_v52 = vpack.i.bf16 %v3983_v44, %v3982_v43  ;;  %v3997_v53 = vpop.permute.xlu1 %3996  ;;  %5697 = vmatpush1.bf16.msra.mxu0 %v5696_v55  ;;  %v4002_v11 = vmul.f32 %v3995_v51, %v7703_v48  ;;  %v4005_v12 = vmul.f32 %v3995_v51, %v7705_v49  ;;  %v6011_v32 = vpack.i.bf16 %v7705_v49, %v7703_v48 }
 0xe3c   : > { %v3998_v45 = vsel %vm906_vm3, %v3995_v51, %v3997_v53  ;;  %v4007_v54 = vmul.f32 %v3997_v53, %v7707_v50  ;;  %5962 = vrot.lane.b32.xlu1 %v5961_v24, %s7989_s25  ;;  %v6006_v26 = vpack.i.bf16 %v3980_v19, %v3979_v5  ;;  %v4004_v33 = vmul.f32 %v3997_v53, %v7729_v8 }
 0xe3d   : > { %v4006_v56 = vmul.f32 %v3998_v45, %v7696_v37  ;;  %5967 = vrot.lane.b32.xlu0 %v5966_v52, %s7988_s28  ;;  %v5991_v6 = vpack.i.bf16 %v4005_v12, %v4002_v11  ;;  %v4003_v16 = vmul.f32 %v3998_v45, %v7690_v34  ;;  %vm8026_vm5 = vcmask 900096  }
 0xe3e   : > { %v4019_v13 = vpop.permute.xlu0 %4018 }
 0xe3f   : > { %v5971_v0 = vpack.i.bf16 %v4007_v54, %v4006_v56  ;;  %v4021_v20 = vpop.permute.xlu1 %4020  ;;  %v4026_v27 = vmul.f32 %v4019_v13, %v7703_v48  ;;  %v4029_v28 = vmul.f32 %v4019_v13, %v7705_v49  ;;  %v6026_v38 = vpack.i.bf16 %v4004_v33, %v4003_v16 }
 0xe40   : > { %v4022_v29 = vsel %vm929_vm6, %v4019_v13, %v4021_v20  ;;  %v4031_v22 = vmul.f32 %v4021_v20, %v7707_v50  ;;  %v4028_v47 = vmul.f32 %v4021_v20, %v7729_v8  ;;  %vm8027_vm6 = vmmov %vm8026_vm5 }
 0xe41   : > { %5977 = vrot.lane.b32.xlu0 %v5976_v2, %s7993_s6  ;;  %5972 = vrot.lane.b32.xlu1 %v5971_v0, %s7991_s29  ;;  %v4030_v17 = vmul.f32 %v4022_v29, %v7696_v37  ;;  %v6021_v36 = vpack.i.bf16 %v4029_v28, %v4026_v27  ;;  %v4027_v23 = vmul.f32 %v4022_v29, %v7690_v34 }
 0xe42   : > { %v4043_v31 = vpop.permute.xlu0 %4042 }
 0xe43   : > { %v4045_v30 = vpop.permute.xlu1 %4044  ;;  %v6016_v39 = vpack.i.bf16 %v4031_v22, %v4030_v17  ;;  %v4050_v57 = vmul.f32 %v4043_v31, %v7703_v48  ;;  %v4053_v40 = vmul.f32 %v4043_v31, %v7705_v49  ;;  %v6041_v3 = vpack.i.bf16 %v4028_v47, %v4027_v23 }
 0xe44   : > { %v4046_v35 = vsel %vm952_vm7, %v4043_v31, %v4045_v30  ;;  %v4055_v15 = vmul.f32 %v4045_v30, %v7707_v50  ;;  %v4052_v42 = vmul.f32 %v4045_v30, %v7729_v8  ;;  %vm8028_vm7 = vmmov %vm8026_vm5 }
 0xe45   : > { %5982 = vrot.lane.b32.xlu0 %v5981_v9, %s7989_s25  ;;  %5987 = vrot.lane.b32.xlu1 %v5986_v10, %s7988_s28  ;;  %v4054_v41 = vmul.f32 %v4046_v35, %v7696_v37  ;;  %v4051_v61 = vmul.f32 %v4046_v35, %v7690_v34  ;;  %v6036_v60 = vpack.i.bf16 %v4053_v40, %v4050_v57 }
 0xe46   : > { %v4067_v46 = vpop.permute.xlu0 %4066 }
 0xe47   : > { %v4069_v4 = vpop.permute.xlu1 %4068  ;;  %v6031_v44 = vpack.i.bf16 %v4055_v15, %v4054_v41  ;;  %v6046_v62 = vpack.i.bf16 %v4052_v42, %v4051_v61  ;;  %v4074_v52 = vmul.f32 %v4067_v46, %v7703_v48  ;;  %v4077_v53 = vmul.f32 %v4067_v46, %v7705_v49 }
 0xe48   : > { %v4070_v43 = vsel %vm975_vm8, %v4067_v46, %v4069_v4  ;;  %v4079_v54 = vmul.f32 %v4069_v4, %v7707_v50  ;;  %v4076_v56 = vmul.f32 %v4069_v4, %v7729_v8  ;;  %vm8029_vm8 = vmmov %vm8026_vm5 }
 0xe49   : > { %5992 = vrot.lane.b32.xlu0 %v5991_v6, %s7991_s29  ;;  %5997 = vrot.lane.b32.xlu1 %v5996_v21, %s7993_s6  ;;  %v4078_v45 = vmul.f32 %v4070_v43, %v7696_v37  ;;  %v4075_v58 = vmul.f32 %v4070_v43, %v7690_v34  ;;  %v6056_v59 = vpack.i.bf16 %v4077_v53, %v4074_v52 }
 0xe4a   : > { %v4091_v24 = vpop.permute.xlu0 %4090 }
 0xe4b   : > { %v4093_v51 = vpop.permute.xlu1 %4092  ;;  %v6051_v63 = vpack.i.bf16 %v4079_v54, %v4078_v45  ;;  %v6061_v7 = vpack.i.bf16 %v4076_v56, %v4075_v58  ;;  %v4098_v9 = vmul.f32 %v4091_v24, %v7703_v48  ;;  %v4101_v11 = vmul.f32 %v4091_v24, %v7705_v49  ;;  %v4314_v48 = vld [vmem:[%s8020_s17] sm:$0xff] }
 0xe4c   : > { %v4094_v55 = vsel %vm998_vm9, %v4091_v24, %v4093_v51  ;;  %v4100_v0 = vmul.f32 %v4093_v51, %v7729_v8  ;;  %v4103_v14 = vmul.f32 %v4093_v51, %v7707_v50  ;;  %vm8030_vm9 = vcmask 785408  }
 0xe4d   : > { %6002 = vrot.lane.b32.xlu0 %v6001_v25, %s7989_s25  ;;  %6007 = vrot.lane.b32.xlu1 %v6006_v26, %s7988_s28  ;;  %s8016_s28 = smov 96   ;;  %v4099_v2 = vmul.f32 %v4094_v55, %v7690_v34  ;;  %v4102_v12 = vmul.f32 %v4094_v55, %v7696_v37  ;;  %v6076_v34 = vpack.i.bf16 %v4101_v11, %v4098_v9  ;;  %v4397_v37 = vld [vmem:[%s8021_s24] sm:$0x7] }
 0xe4f   : > { %v6071_v8 = vpack.i.bf16 %v4100_v0, %v4099_v2  ;;  %v6066_v18 = vpack.i.bf16 %v4103_v14, %v4102_v12 }
 0xe51   : > { %6022 = vrot.lane.b32.xlu0 %v6021_v36, %s7992_s7  ;;  %6012 = vrot.lane.b32.xlu1 %v6011_v32, %s7993_s6  ;;  %s8018_s6 = sld [smem:[#allocation24_spill]] }
 0xe55   : > { %6027 = vrot.lane.b32.xlu0 %v6026_v38, %s7991_s29  ;;  %6017 = vrot.lane.b32.xlu1 %v6016_v39, %s7992_s7  ;;  %s8017_s29 = smov 95  }
 0xe57   : > { %v4313_v10 = vld [vmem:[%s8018_s6 + $0x8] sm:$0xff] }
 0xe58   : > { %4867 = vmatprep.mubr.msk.f32.mxu0 %vm906_vm3, %v4313_v10  ;;  %vm8024_vm3 = vmmov %vm8022_vm0 }
 0xe59   : > { %6037 = vrot.lane.b32.xlu1 %v6036_v60, %s8016_s28  ;;  %6032 = vrot.lane.b32.xlu0 %v6031_v44, %s8016_s28 }
 0xe5d   : > { %6042 = vrot.lane.b32.xlu0 %v6041_v3, %s7992_s7  ;;  %6047 = vrot.lane.b32.xlu1 %v6046_v62, %s8016_s28  ;;  %s807_s28 = scalar_lea.vmem %s8044_s15, %s4875_s13 }
 0xe61   : > { %6057 = vrot.lane.b32.xlu0 %v6056_v59, %s8017_s29  ;;  %6052 = vrot.lane.b32.xlu1 %v6051_v63, %s8017_s29 }
 0xe65   : > { %6062 = vrot.lane.b32.xlu0 %v6061_v7, %s8017_s29  ;;  %6072 = vrot.lane.b32.xlu1 %v6071_v8, %s8019_s21 }
 0xe69   : > { %6067 = vrot.lane.b32.xlu0 %v6066_v18, %s8019_s21  ;;  %6077 = vrot.lane.b32.xlu1 %v6076_v34, %s8019_s21 }
 0xe6d   : > { %4317 = vperm.xlu0 %5840, %v4314_v48   ;;  %4400 = vperm.xlu1 %5839, %v4397_v37  }
 0xeae   : > { %v5963_v49 = vpop.permute.xlu1 %5962 }
 0xeaf   : > { %v5968_v50 = vpop.permute.xlu0 %5967  ;;  %v5965_v25 = vunpack.i.h.bf16 %v5963_v49  ;;  %v5964_v26 = vunpack.i.l.bf16 %v5963_v49 }
 0xeb0   : > { %v5970_v28 = vunpack.i.h.bf16 %v5968_v50  ;;  %v5969_v29 = vunpack.i.l.bf16 %v5968_v50 }
 0xeb1   : > { %v4125_v38 = vsel %vm1015_vm10, %v5964_v26, %v5965_v25 }
 0xeb2   : > { %v4151_v42 = vsel %vm1029_vm12, %v5969_v29, %v5970_v28 }
 0xeb3   : > { %v7801_v19 = vpop.permute.xlu0 %5977  ;;  %v5973_v5 = vpop.permute.xlu1 %5972 }
 0xeb4   : > { %v5975_v61 = vunpack.i.h.bf16 %v5973_v5  ;;  %v5974_v60 = vunpack.i.l.bf16 %v5973_v5  ;;  %v5980_v62 = vunpack.i.h.bf16 %v7801_v19  ;;  %v5979_v52 = vunpack.i.l.bf16 %v7801_v19 }
 0xeb6   : > { %v4177_v0 = vsel %vm1043_vm11, %v5974_v60, %v5975_v61  ;;  %v4203_v48 = vsel %vm8025_vm4, %v5979_v52, %v5980_v62 }
 0xeb7   : > { %v5983_v6 = vpop.permute.xlu0 %5982  ;;  %v5988_v13 = vpop.permute.xlu1 %5987 }
 0xeb8   : > { %v5985_v27 = vunpack.i.h.bf16 %v5983_v6  ;;  %v5984_v31 = vunpack.i.l.bf16 %v5983_v6  ;;  %v5990_v32 = vunpack.i.h.bf16 %v5988_v13  ;;  %v5989_v35 = vunpack.i.l.bf16 %v5988_v13 }
 0xeba   : > { %v4124_v39 = vsel %vm1015_vm10, %v5985_v27, %v5964_v26  ;;  %v4150_v43 = vsel %vm1029_vm12, %v5990_v32, %v5969_v29 }
 0xebb   : > { %v5993_v20 = vpop.permute.xlu0 %5992  ;;  %v5998_v21 = vpop.permute.xlu1 %5997 }
 0xebc   : > { %v5995_v24 = vunpack.i.h.bf16 %v5993_v20  ;;  %v6000_v51 = vunpack.i.h.bf16 %v5998_v21  ;;  %v5999_v3 = vunpack.i.l.bf16 %v5998_v21  ;;  %v5994_v53 = vunpack.i.l.bf16 %v5993_v20 }
 0xebe   : > { %v4176_v2 = vsel %vm1043_vm11, %v5995_v24, %v5974_v60  ;;  %v4201_v10 = vsel %vm8022_vm0, %v5999_v3, %v6000_v51  ;;  %vm8038_vm0 = vcmask 769024  }
 0xebf   : > { %v6003_v30 = vpop.permute.xlu0 %6002  ;;  %v6008_v33 = vpop.permute.xlu1 %6007  ;;  %v5710_v50 = vpack.c.bf16 %v4203_v48, %v4201_v10  ;;  %vm8041_vm4 = vmmov %vm8038_vm0 }
 0xec0   : > { %v6005_v16 = vunpack.i.h.bf16 %v6003_v30  ;;  %v6004_v17 = vunpack.i.l.bf16 %v6003_v30  ;;  %v6010_v22 = vunpack.i.h.bf16 %v6008_v33  ;;  %v6009_v36 = vunpack.i.l.bf16 %v6008_v33 }
 0xec2   : > { %v4122_v57 = vsel %vm1015_vm10, %v5984_v31, %v6004_v17  ;;  %v4123_v40 = vsel %vm1015_vm10, %v6004_v17, %v6005_v16  ;;  %v4149_v41 = vsel %vm1029_vm12, %v6009_v36, %v6010_v22  ;;  %v4148_v23 = vsel %vm1029_vm12, %v5989_v35, %v6009_v36  ;;  %vm8031_vm10 = vmmov %vm8030_vm9 }
 0xec3   : > { %v5700_v15 = vpack.c.bf16 %v4124_v39, %v4122_v57  ;;  %v6023_v46 = vpop.permute.xlu0 %6022  ;;  %v6013_v4 = vpop.permute.xlu1 %6012  ;;  %v5698_v47 = vpack.c.bf16 %v4125_v38, %v4123_v40  ;;  %v5702_v44 = vpack.c.bf16 %v4151_v42, %v4149_v41  ;;  %v5704_v45 = vpack.c.bf16 %v4150_v43, %v4148_v23  ;;  %vm8033_vm12 = vmmov %vm8030_vm9 }
 0xec4   : > { %v6015_v56 = vunpack.i.h.bf16 %v6013_v4  ;;  %v6014_v58 = vunpack.i.l.bf16 %v6013_v4  ;;  %v6025_v19 = vunpack.i.h.bf16 %v6023_v46  ;;  %v6024_v5 = vunpack.i.l.bf16 %v6023_v46 }
 0xec5   : > { %5699 = vmatprep.subr.bf16.mxu0 %v5698_v47 }
 0xec6   : > { %5701 = vmatpush1.bf16.msra.mxu0 %v5700_v15  ;;  %v4202_v34 = vsel %vm8023_vm2, %v6015_v56, %v5979_v52  ;;  %v4200_v18 = vsel %vm8024_vm3, %v6014_v58, %v5999_v3  ;;  %vm8039_vm2 = vmmov %vm8038_vm0 }
 0xec7   : > { %v6028_v54 = vpop.permute.xlu0 %6027  ;;  %v6018_v55 = vpop.permute.xlu1 %6017  ;;  %5703 = vmatprep.subr.bf16.mxu0 %v5702_v44  ;;  %v5712_v6 = vpack.c.bf16 %v4202_v34, %v4200_v18  ;;  %vm8040_vm3 = vmmov %vm8038_vm0 }
 0xec8   : > { %v6030_v59 = vunpack.i.h.bf16 %v6028_v54  ;;  %v6029_v63 = vunpack.i.l.bf16 %v6028_v54  ;;  %v6020_v37 = vunpack.i.h.bf16 %v6018_v55  ;;  %v6019_v49 = vunpack.i.l.bf16 %v6018_v55 }
 0xeca   : > { %v4174_v7 = vsel %vm1043_vm11, %v5994_v53, %v6029_v63  ;;  %5705 = vmatpush1.bf16.msra.mxu0 %v5704_v45  ;;  %v4175_v9 = vsel %vm1043_vm11, %v6029_v63, %v6030_v59  ;;  %v4228_v31 = vsel %vm8026_vm5, %v6025_v19, %v6019_v49  ;;  %v4229_v30 = vsel %vm8027_vm6, %v6019_v49, %v6020_v37  ;;  %vm8032_vm11 = vmmov %vm8030_vm9  ;;  %v4396_v19 = vld [vmem:[%s8042_s16] sm:$0x7] }
 0xecb   : > { %v5708_v11 = vpack.c.bf16 %v4176_v2, %v4174_v7  ;;  %v6033_v12 = vpop.permute.xlu0 %6032  ;;  %v6038_v14 = vpop.permute.xlu1 %6037  ;;  %v5706_v8 = vpack.c.bf16 %v4177_v0, %v4175_v9  ;;  %vm4403_vm5 = vcmask 64512  }
 0xecc   : > { %v6035_v13 = vunpack.i.h.bf16 %v6033_v12  ;;  %v6034_v20 = vunpack.i.l.bf16 %v6033_v12  ;;  %v6039_v33 = vunpack.i.l.bf16 %v6038_v14  ;;  %v6040_v36 = vunpack.i.h.bf16 %v6038_v14  ;;  %v4312_v14 = vld [vmem:[%s8018_s6] sm:$0xff] }
 0xecd   : > { %5707 = vmatprep.subr.bf16.mxu0 %v5706_v8 }
 0xece   : > { %5709 = vmatpush1.bf16.msra.mxu0 %v5708_v11  ;;  %v4255_v40 = vsel %vm8032_vm11, %v6034_v20, %v6035_v13  ;;  %v4254_v47 = vsel %vm8033_vm12, %v6040_v36, %v6034_v20 }
 0xecf   : > { %v6043_v21 = vpop.permute.xlu0 %6042  ;;  %v6048_v25 = vpop.permute.xlu1 %6047  ;;  %5711 = vmatprep.subr.bf16.mxu0 %v5710_v50 }
 0xed0   : > { %v6045_v26 = vunpack.i.h.bf16 %v6043_v21  ;;  %v6044_v27 = vunpack.i.l.bf16 %v6043_v21  ;;  %v6050_v28 = vunpack.i.h.bf16 %v6048_v25  ;;  %v6049_v29 = vunpack.i.l.bf16 %v6048_v25 }
 0xed2   : > { %v4226_v16 = vsel %vm8028_vm7, %v6024_v5, %v6044_v27  ;;  %5713 = vmatpush1.bf16.msra.mxu0 %v5712_v6  ;;  %v4227_v17 = vsel %vm8029_vm8, %v6044_v27, %v6045_v26  ;;  %v4253_v22 = vsel %vm8030_vm9, %v6049_v29, %v6050_v28  ;;  %v4252_v57 = vsel %vm8031_vm10, %v6039_v33, %v6049_v29 }
 0xed3   : > { %v5716_v32 = vpack.c.bf16 %v4228_v31, %v4226_v16  ;;  %v6058_v35 = vpop.permute.xlu0 %6057  ;;  %v6053_v38 = vpop.permute.xlu1 %6052  ;;  %v5714_v39 = vpack.c.bf16 %v4229_v30, %v4227_v17  ;;  %v5718_v4 = vpack.c.bf16 %v4255_v40, %v4253_v22  ;;  %v5720_v61 = vpack.c.bf16 %v4254_v47, %v4252_v57 }
 0xed4   : > { %v6060_v41 = vunpack.i.h.bf16 %v6058_v35  ;;  %v6055_v15 = vunpack.i.h.bf16 %v6053_v38  ;;  %v6054_v46 = vunpack.i.l.bf16 %v6053_v38  ;;  %v6059_v60 = vunpack.i.l.bf16 %v6058_v35 }
 0xed5   : > { %5715 = vmatprep.subr.bf16.mxu0 %v5714_v39 }
 0xed6   : > { %5717 = vmatpush1.bf16.msra.mxu0 %v5716_v32  ;;  %v4280_v24 = vsel %vm8034_vm14, %v6060_v41, %v6054_v46  ;;  %v4281_v51 = vsel %vm8035_vm13, %v6054_v46, %v6055_v15 }
 0xed7   : > { %v6063_v23 = vpop.permute.xlu0 %6062  ;;  %v6073_v42 = vpop.permute.xlu1 %6072  ;;  %5719 = vmatprep.subr.bf16.mxu0 %v5718_v4 }
 0xed8   : > { %v6065_v44 = vunpack.i.h.bf16 %v6063_v23  ;;  %v6064_v43 = vunpack.i.l.bf16 %v6063_v23  ;;  %v6075_v62 = vunpack.i.h.bf16 %v6073_v42  ;;  %v6074_v52 = vunpack.i.l.bf16 %v6073_v42 }
 0xeda   : > { %v4278_v3 = vsel %vm8036_vm1, %v6059_v60, %v6064_v43  ;;  %5721 = vmatpush1.bf16.msra.mxu0 %v5720_v61  ;;  %v4279_v53 = vsel %vm8037_vm15, %v6064_v43, %v6065_v44  ;;  %v4305_v9 = vsel %vm8040_vm3, %v6074_v52, %v6075_v62 }
 0xedb   : > { %v5724_v45 = vpack.c.bf16 %v4280_v24, %v4278_v3  ;;  %v6068_v54 = vpop.permute.xlu0 %6067  ;;  %v6078_v55 = vpop.permute.xlu1 %6077  ;;  %v5722_v56 = vpack.c.bf16 %v4281_v51, %v4279_v53 }
 0xedc   : > { %v6070_v58 = vunpack.i.h.bf16 %v6068_v54  ;;  %v6069_v59 = vunpack.i.l.bf16 %v6068_v54  ;;  %v6080_v63 = vunpack.i.h.bf16 %v6078_v55  ;;  %v6079_v0 = vunpack.i.l.bf16 %v6078_v55 }
 0xedd   : > { %5723 = vmatprep.subr.bf16.mxu0 %v5722_v56 }
 0xede   : > { %v4306_v2 = vsel %vm8038_vm0, %v6080_v63, %v6069_v59  ;;  %v4304_v7 = vsel %vm8039_vm2, %v6079_v0, %v6074_v52  ;;  %5725 = vmatpush1.bf16.msra.mxu0 %v5724_v45  ;;  %v4307_v10 = vsel %vm8041_vm4, %v6069_v59, %v6070_v58 }
 0xedf   : > { %v5728_v11 = vpack.c.bf16 %v4306_v2, %v4304_v7  ;;  %v5726_v12 = vpack.c.bf16 %v4307_v10, %v4305_v9 }
 0xee1   : > { %5727 = vmatprep.subr.bf16.mxu0 %v5726_v12 }
 0xee2   : > { %5729 = vmatpush1.bf16.msra.mxu0 %v5728_v11 }
 0xee5   : > { %4388 = vmatmul.mubr.f32.vlgmr.msra.gmra.mrb[22].mxu0 %v4312_v14 }
 0xee6   : > { %4471 = vmatprep.mubr.f32.mxu0 %v6167_v1 }
 0xeec   : > { %v4318_v8 = vpop.permute.xlu0 %4317  ;;  %v4401_v5 = vpop.permute.xlu1 %4400 }
 0xfb8   : > { %v4389_v34 = vpop.f32.mrb[22].mxu0 }
 0xfb9   : > { %v4390_v18 = vadd.f32 %v4389_v34, %v4318_v8  ;;  %v4391_v48 = vpop.f32.mrb[23].mxu0 }
 0xfba   : > { %v4392_v37 = vadd.f32 %v4391_v48, %v4318_v8 }
 0xfbb   : > { %v4394_v50 = vmax.f32 %v4390_v18, 0.0 }
 0xfbc   : > { %v4395_v49 = vmax.f32 %v4392_v37, 0.0 }
 0xfbe   : > { %4407 = vmatprep.subr.mxu0 %v4395_v49 }
 0xfbf   : > { %4408 = vmatpush1.msra.mxu0 %v4394_v50 }
 0xfc0   : > { %4868 = vmatmul.mubr.msk.f32.vlgmr.msra.gmra.mrb[24].mxu0 %vm4403_vm5, %v4396_v19 }
0x1093   : > { %v4473_v6 = vpop.f32.mrb[24].mxu0 }
0x1094   : > { %v4474_v13 = vadd.f32 %v4473_v6, %v4401_v5  ;;  %v4475_v1 = vpop.f32.mrb[25].mxu0 }
0x1095   : > { %v4476_v20 = vadd.f32 %v4475_v1, %v4401_v5 }
0x1096   : > { %v4869_v21 = vmul.f32 -1.442695, %v4474_v13 }
0x1097   : > { %v4870_v25 = vmul.f32 -1.442695, %v4476_v20 }
0x1098   : > { %6081 = vpow2.f32 %v4869_v21 }
0x1099   : > { %6083 = vpow2.f32 %v4870_v25 }
0x10a2   : > { %v6082_v26 = vpop.eup %6081 }
0x10a3   : > { %v6084_v27 = vpop.eup %6083  ;;  %v4484_v28 = vadd.f32 1.0, %v6082_v26 }
0x10a4   : > { %v4485_v29 = vadd.f32 1.0, %v6084_v27 }
0x10a5   : > { %6085 = vrcp.f32 %v4484_v28 }
0x10a6   : > { %6087 = vrcp.f32 %v4485_v29 }
0x10af   : > { %v6086_v31 = vpop.eup %6085 }
0x10b0   : > { %v6088_v30 = vpop.eup %6087 }
0x10b1   : > { %v4492_v33 = vcombine.low %v6086_v31, %v6088_v30 }
0x10b3   : > { %4494 = vst [vmem:[%s807_s28] sm:$0x77] %v4492_v33 }
0x10b4 PF: > { %s8045_s29 = sld [smem:[#allocation11_spill]] }
0x10ba   : > { %s38_s29 = sadd.s32 1, %s8045_s29  }
0x10bb   : > { %p35_p5 = scmp.ge.s32.totalorder %s38_s29, 4  }
0x10bd   :  { %37 = sbr.rel (!%p35_p5) target bundleno = 26 (0x1a), region = 186 }
0x10c4   :  { %4532 = vsyncpa [#allocation6], 1 }
0x10c5   :  { %4534 = vsyncpa [#allocation6 + $0x1], 1 }
0x10c6   :  { %4535 = vsyncpa [#allocation8], 1 }

</bundles_post_ra>
